<compile_context>
chip_gen: v5e
topology: v5e:2x2
jax: 0.10.0
libtpu: 0.0.40
codegen_flags: <defaults>
</compile_context>

<pallas_src>
import functools

import jax
import jax.numpy as jnp
from jax import lax
from jax.experimental import pallas as pl
from jax.experimental.pallas import tpu as pltpu  # noqa: F401  (kept for TPU-backend pallas)

# ------------------------- tiny RoBERTa-style config ------------------------
VOCAB = 64
MAX_POS = 66          # roberta position table has a +2 padding offset
PAD_IDX = 1
HIDDEN = 32           # config.hidden_size (scaled down from 1024)
NUM_HEADS = 4
HEAD_DIM = HIDDEN // NUM_HEADS
INTERMEDIATE = 64
NUM_LAYERS = 2
LN_EPS = 1e-5
NUM_LABELS = 2        # classifier is nn.Linear(2*hidden, 2) in the reference
B, T = 2, 8


# ------------------------------ in-kernel helpers ----------------------------
def _mxu_dot(a, b):
    # bf16 operands for the MXU (native on v5e/v6e/v7x), f32 accumulation.
    return jnp.dot(a.astype(jnp.bfloat16), b.astype(jnp.bfloat16),
                   preferred_element_type=jnp.float32)


def _layernorm(x, g, b):
    mu = jnp.mean(x, axis=-1, keepdims=True)
    var = jnp.mean(jnp.square(x - mu), axis=-1, keepdims=True)
    return (x - mu) * lax.rsqrt(var + LN_EPS) * g + b


def _gelu(y):
    # TODO(synk): tanh-approx GELU (HF RoBERTa uses erf-GELU; ~1e-3 deviation).
    return 0.5 * y * (1.0 + jnp.tanh(0.7978845608028654 * (y + 0.044715 * y * y * y)))


# ------------------------------ fused forward kernel -------------------------
def _fused_forward_kernel(
        emb_ref, bias_ref, emb_g_ref, emb_b_ref,
        wqkv_ref, bqkv_ref, wo_ref, bo_ref, ln1g_ref, ln1b_ref,
        w1_ref, b1_ref, w2_ref, b2_ref, ln2g_ref, ln2b_ref,
        wih_ref, whh_ref, lstm_b_ref, cls_w_ref, cls_b_ref,
        out_ref, *, batch, seq):
    """Whole forward pass in a single kernel; activations never leave VMEM."""
    # ---- RoBERTa embedding LayerNorm (plain LN, no zeros residual) ----
    x = _layernorm(emb_ref[...], emb_g_ref[...], emb_b_ref[...])     # (B*T, H)
    bias = bias_ref[...]                                             # (B, T) additive key mask
    scale = 1.0 / float(HEAD_DIM) ** 0.5

    # ---- transformer encoder layers (static unroll; weights indexed by l) ----
    for l in range(NUM_LAYERS):
        # fused QKV projection: one (B*T,32)x(32,96) MXU push instead of three.
        qkv = _mxu_dot(x, wqkv_ref[l]) + bqkv_ref[l]                 # (B*T, 3H)

        ctx_heads = []
        for h in range(NUM_HEADS):                                   # head split via lane slices
            q = qkv[:, h * HEAD_DIM:(h + 1) * HEAD_DIM].reshape(batch, seq, HEAD_DIM)
            k = qkv[:, HIDDEN + h * HEAD_DIM:HIDDEN + (h + 1) * HEAD_DIM].reshape(batch, seq, HEAD_DIM)
            v = qkv[:, 2 * HIDDEN + h * HEAD_DIM:2 * HIDDEN + (h + 1) * HEAD_DIM].reshape(batch, seq, HEAD_DIM)
            s = jnp.einsum("bqd,bkd->bqk", q, k,
                           preferred_element_type=jnp.float32) * scale
            s = s + bias[:, None, :]                                  # broadcast over queries
            m = jnp.max(s, axis=-1, keepdims=True)
            p = jnp.exp(s - m)
            p = p * pl.reciprocal(jnp.sum(p, axis=-1, keepdims=True), approx=True)
            ctx_h = jnp.einsum("bqk,bkd->bqd", p, v,
                               preferred_element_type=jnp.float32)
            ctx_heads.append(ctx_h.reshape(batch * seq, HEAD_DIM))
        ctx = jnp.concatenate(ctx_heads, axis=-1)                    # (B*T, H), merged in-kernel

        attn_out = _mxu_dot(ctx, wo_ref[l]) + bo_ref[l]
        x = _layernorm(attn_out + x, ln1g_ref[l], ln1b_ref[l])
        hmid = _gelu(_mxu_dot(x, w1_ref[l]) + b1_ref[l])
        ffn = _mxu_dot(hmid, w2_ref[l]) + b2_ref[l]
        x = _layernorm(ffn + x, ln2g_ref[l], ln2b_ref[l])

    # ---- BiLSTM: both directions in the same kernel/loop.
    # Input->hidden projection hoisted out of the serial recurrence (one batched
    # matmul per direction instead of one per timestep on the critical path).
    xw_fw = (_mxu_dot(x, wih_ref[0]) + lstm_b_ref[0]).reshape(batch, seq, 4 * HIDDEN)
    xw_bw = (_mxu_dot(x, wih_ref[1]) + lstm_b_ref[1]).reshape(batch, seq, 4 * HIDDEN)
    whh_fw = whh_ref[0]
    whh_bw = whh_ref[1]

    def cell(gates, c_prev):
        # full-width (128-lane) sigmoid/tanh on the EUP, then lane slices i,f,g,o
        sg = jax.nn.sigmoid(gates)
        th = jnp.tanh(gates)
        i = sg[:, 0 * HIDDEN:1 * HIDDEN]      # PyTorch gate order i, f, g, o
        f = sg[:, 1 * HIDDEN:2 * HIDDEN]
        g = th[:, 2 * HIDDEN:3 * HIDDEN]
        o = sg[:, 3 * HIDDEN:4 * HIDDEN]
        c = f * c_prev + i * g
        return o * jnp.tanh(c), c

    h_fw = jnp.zeros((batch, HIDDEN), jnp.float32)
    c_fw = jnp.zeros((batch, HIDDEN), jnp.float32)
    h_bw = jnp.zeros((batch, HIDDEN), jnp.float32)
    c_bw = jnp.zeros((batch, HIDDEN), jnp.float32)
    for t in range(seq):                      # static unroll; backward time = seq-1-t (no reversed copy)
        h_fw, c_fw = cell(xw_fw[:, t, :] + _mxu_dot(h_fw, whh_fw), c_fw)
        h_bw, c_bw = cell(xw_bw[:, seq - 1 - t, :] + _mxu_dot(h_bw, whh_bw), c_bw)

    # ---- dropout (inference) == identity; classifier fused into the same kernel ----
    h_cat = jnp.concatenate([h_fw, h_bw], axis=-1)                   # (B, 2H)
    out_ref[...] = _mxu_dot(h_cat, cls_w_ref[...]) + cls_b_ref[...]  # (B, 2)


# -------------------------------- parameters --------------------------------
def init_params(key):
    keys = iter(jax.random.split(key, 64))

    def w(shape, scale=0.02):
        return (scale * jax.random.normal(next(keys), shape)).astype(jnp.float32)

    L = NUM_LAYERS
    return dict(
        word_emb=w((VOCAB, HIDDEN)),
        pos_emb=w((MAX_POS, HIDDEN)),
        type_emb=w((1, HIDDEN)),
        emb_ln_g=jnp.ones((1, HIDDEN), jnp.float32),
        emb_ln_b=jnp.zeros((1, HIDDEN), jnp.float32),
        # per-layer weights stacked on a leading layer axis (indexed statically in-kernel)
        wqkv=w((L, HIDDEN, 3 * HIDDEN)),
        bqkv=jnp.zeros((L, 1, 3 * HIDDEN), jnp.float32),
        wo=w((L, HIDDEN, HIDDEN)),
        bo=jnp.zeros((L, 1, HIDDEN), jnp.float32),
        ln1_g=jnp.ones((L, 1, HIDDEN), jnp.float32),
        ln1_b=jnp.zeros((L, 1, HIDDEN), jnp.float32),
        w1=w((L, HIDDEN, INTERMEDIATE)),
        b1=jnp.zeros((L, 1, INTERMEDIATE), jnp.float32),
        w2=w((L, INTERMEDIATE, HIDDEN)),
        b2=jnp.zeros((L, 1, HIDDEN), jnp.float32),
        ln2_g=jnp.ones((L, 1, HIDDEN), jnp.float32),
        ln2_b=jnp.zeros((L, 1, HIDDEN), jnp.float32),
        # BiLSTM: [0]=forward, [1]=backward; b = b_ih + b_hh folded together
        lstm_w_ih=w((2, HIDDEN, 4 * HIDDEN)),
        lstm_w_hh=w((2, HIDDEN, 4 * HIDDEN)),
        lstm_b=w((2, 1, 4 * HIDDEN)),
        cls_w=w((2 * HIDDEN, NUM_LABELS)),
        cls_b=jnp.zeros((1, NUM_LABELS), jnp.float32),
    )


# --------------------------------- forward ----------------------------------
def forward(params, input_ids, attention_mask):
    bb, tt = input_ids.shape

    # --- RoBERTa embedding gathers stay in XLA (glue); everything else is one kernel ---
    # TODO(synk): table gathers (word/pos/type) have no clean small-scale Pallas equivalent.
    mask = (input_ids != PAD_IDX).astype(jnp.int32)
    position_ids = jnp.cumsum(mask, axis=1) * mask + PAD_IDX
    emb = (params["word_emb"][input_ids]
           + params["pos_emb"][position_ids]
           + params["type_emb"][0][None, None, :])
    emb2d = emb.reshape(bb * tt, HIDDEN)

    # (B, T) additive key bias; expanded per-head inside the kernel (no jnp.repeat).
    attn_bias = (1.0 - attention_mask.astype(jnp.float32)) * -1e9

    kernel = functools.partial(_fused_forward_kernel, batch=bb, seq=tt)
    logits = pl.pallas_call(
        kernel,
        out_shape=jax.ShapeDtypeStruct((bb, NUM_LABELS), jnp.float32),
    )(emb2d, attn_bias,
      params["emb_ln_g"], params["emb_ln_b"],
      params["wqkv"], params["bqkv"], params["wo"], params["bo"],
      params["ln1_g"], params["ln1_b"],
      params["w1"], params["b1"], params["w2"], params["b2"],
      params["ln2_g"], params["ln2_b"],
      params["lstm_w_ih"], params["lstm_w_hh"], params["lstm_b"],
      params["cls_w"], params["cls_b"])
    return logits


# ----------------------------------- main ------------------------------------
if __name__ == "__main__":
    key = jax.random.PRNGKey(0)
    k_par, k_ids = jax.random.split(key)
    params = init_params(k_par)
    input_ids = jax.random.randint(k_ids, (B, T), 3, VOCAB, dtype=jnp.int32)
    attention_mask = jnp.ones((B, T), dtype=jnp.int32)

    logits = jax.jit(forward)(params, input_ids, attention_mask)
    jax.block_until_ready(logits)
    assert logits.shape == (B, NUM_LABELS)
    print("KERNEL_OK")
</pallas_src>

<mosaic_0001>
module attributes {stable_mosaic.version = 11 : i64} {
  func.func @_fused_forward_kernel(%arg0: memref<16x32xf32, #tpu.memory_space<vmem>>, %arg1: memref<2x8xf32, #tpu.memory_space<vmem>>, %arg2: memref<1x32xf32, #tpu.memory_space<vmem>>, %arg3: memref<1x32xf32, #tpu.memory_space<vmem>>, %arg4: memref<2x32x96xf32, #tpu.memory_space<vmem>>, %arg5: memref<2x1x96xf32, #tpu.memory_space<vmem>>, %arg6: memref<2x32x32xf32, #tpu.memory_space<vmem>>, %arg7: memref<2x1x32xf32, #tpu.memory_space<vmem>>, %arg8: memref<2x1x32xf32, #tpu.memory_space<vmem>>, %arg9: memref<2x1x32xf32, #tpu.memory_space<vmem>>, %arg10: memref<2x32x64xf32, #tpu.memory_space<vmem>>, %arg11: memref<2x1x64xf32, #tpu.memory_space<vmem>>, %arg12: memref<2x64x32xf32, #tpu.memory_space<vmem>>, %arg13: memref<2x1x32xf32, #tpu.memory_space<vmem>>, %arg14: memref<2x1x32xf32, #tpu.memory_space<vmem>>, %arg15: memref<2x1x32xf32, #tpu.memory_space<vmem>>, %arg16: memref<2x32x128xf32, #tpu.memory_space<vmem>>, %arg17: memref<2x32x128xf32, #tpu.memory_space<vmem>>, %arg18: memref<2x1x128xf32, #tpu.memory_space<vmem>>, %arg19: memref<64x2xf32, #tpu.memory_space<vmem>>, %arg20: memref<1x2xf32, #tpu.memory_space<vmem>>, %arg21: memref<2x2xf32, #tpu.memory_space<vmem>>) attributes {dimension_semantics = [], scalar_prefetch = 0 : i64, scratch_operands = 0 : i64, tpu.core_type = #tpu.core_type<tc>} {
    %c0 = arith.constant 0 : index
    %c0_0 = arith.constant 0 : index
    %0 = vector.load %arg0[%c0, %c0_0] : memref<16x32xf32, #tpu.memory_space<vmem>>, vector<16x32xf32>
    %c0_1 = arith.constant 0 : index
    %c0_2 = arith.constant 0 : index
    %1 = vector.load %arg2[%c0_1, %c0_2] : memref<1x32xf32, #tpu.memory_space<vmem>>, vector<1x32xf32>
    %c0_3 = arith.constant 0 : index
    %c0_4 = arith.constant 0 : index
    %2 = vector.load %arg3[%c0_3, %c0_4] : memref<1x32xf32, #tpu.memory_space<vmem>>, vector<1x32xf32>
    %cst = arith.constant dense<0.000000e+00> : vector<16xf32>
    %3 = vector.multi_reduction <add>, %0, %cst [1] : vector<16x32xf32> to vector<16xf32>
    %4 = vector.shape_cast %3 : vector<16xf32> to vector<16x1xf32>
    %cst_5 = arith.constant 3.200000e+01 : f32
    %5 = vector.broadcast %cst_5 : f32 to vector<16x1xf32>
    %6 = arith.divf %4, %5 : vector<16x1xf32>
    %7 = vector.broadcast %6 : vector<16x1xf32> to vector<16x32xf32>
    %8 = arith.subf %0, %7 : vector<16x32xf32>
    %9 = arith.mulf %8, %8 : vector<16x32xf32>
    %cst_6 = arith.constant dense<0.000000e+00> : vector<16xf32>
    %10 = vector.multi_reduction <add>, %9, %cst_6 [1] : vector<16x32xf32> to vector<16xf32>
    %11 = vector.shape_cast %10 : vector<16xf32> to vector<16x1xf32>
    %cst_7 = arith.constant 3.200000e+01 : f32
    %12 = vector.broadcast %cst_7 : f32 to vector<16x1xf32>
    %13 = arith.divf %11, %12 : vector<16x1xf32>
    %14 = vector.broadcast %6 : vector<16x1xf32> to vector<16x32xf32>
    %15 = arith.subf %0, %14 : vector<16x32xf32>
    %cst_8 = arith.constant 9.99999974E-6 : f32
    %16 = vector.broadcast %cst_8 : f32 to vector<16x1xf32>
    %17 = arith.addf %13, %16 : vector<16x1xf32>
    %18 = math.rsqrt %17 : vector<16x1xf32>
    %19 = vector.broadcast %18 : vector<16x1xf32> to vector<16x32xf32>
    %20 = arith.mulf %15, %19 : vector<16x32xf32>
    %21 = vector.broadcast %1 : vector<1x32xf32> to vector<16x32xf32>
    %22 = arith.mulf %20, %21 : vector<16x32xf32>
    %23 = vector.broadcast %2 : vector<1x32xf32> to vector<16x32xf32>
    %24 = arith.addf %22, %23 : vector<16x32xf32>
    %c0_9 = arith.constant 0 : index
    %c0_10 = arith.constant 0 : index
    %25 = vector.load %arg1[%c0_9, %c0_10] : memref<2x8xf32, #tpu.memory_space<vmem>>, vector<2x8xf32>
    %c0_11 = arith.constant 0 : index
    %c0_12 = arith.constant 0 : index
    %c0_13 = arith.constant 0 : index
    %26 = vector.load %arg4[%c0_11, %c0_12, %c0_13] : memref<2x32x96xf32, #tpu.memory_space<vmem>>, vector<1x32x96xf32>
    %27 = vector.shape_cast %26 : vector<1x32x96xf32> to vector<32x96xf32>
    %28 = arith.truncf %24 : vector<16x32xf32> to vector<16x32xbf16>
    %29 = arith.truncf %27 : vector<32x96xf32> to vector<32x96xbf16>
    %cst_14 = arith.constant dense<0.000000e+00> : vector<16x96xf32>
    %30 = tpu.matmul %28, %29, %cst_14 {dimension_numbers = #tpu.dot_dimension_numbers<[1], [0], [0], [1], [0, 0, 1, 1], [], []>} : vector<16x32xbf16>, vector<32x96xbf16>, vector<16x96xf32> -> vector<16x96xf32>
    %c0_15 = arith.constant 0 : index
    %c0_16 = arith.constant 0 : index
    %c0_17 = arith.constant 0 : index
    %31 = vector.load %arg5[%c0_15, %c0_16, %c0_17] : memref<2x1x96xf32, #tpu.memory_space<vmem>>, vector<1x1x96xf32>
    %32 = vector.shape_cast %31 : vector<1x1x96xf32> to vector<1x96xf32>
    %33 = vector.broadcast %32 : vector<1x96xf32> to vector<16x96xf32>
    %34 = arith.addf %30, %33 : vector<16x96xf32>
    %35 = vector.extract_strided_slice %34 {offsets = [0, 0], sizes = [16, 8], strides = [1, 1]} : vector<16x96xf32> to vector<16x8xf32>
    %36 = vector.shape_cast %35 : vector<16x8xf32> to vector<2x8x8xf32>
    %37 = vector.extract_strided_slice %34 {offsets = [0, 32], sizes = [16, 8], strides = [1, 1]} : vector<16x96xf32> to vector<16x8xf32>
    %38 = vector.shape_cast %37 : vector<16x8xf32> to vector<2x8x8xf32>
    %39 = vector.extract_strided_slice %34 {offsets = [0, 64], sizes = [16, 8], strides = [1, 1]} : vector<16x96xf32> to vector<16x8xf32>
    %40 = vector.shape_cast %39 : vector<16x8xf32> to vector<2x8x8xf32>
    "tpu.trace_start"() <{level = 10 : i32, message = "bqd,bkd->bqk"}> : () -> ()
    %cst_18 = arith.constant dense<0.000000e+00> : vector<2x8x8xf32>
    %41 = tpu.matmul %36, %38, %cst_18 {dimension_numbers = #tpu.dot_dimension_numbers<[2], [2], [1], [1], [0, 0, 0, 1, 1, 1], [0], [0]>} : vector<2x8x8xf32>, vector<2x8x8xf32>, vector<2x8x8xf32> -> vector<2x8x8xf32>
    "tpu.trace_stop"() : () -> ()
    %cst_19 = arith.constant 0.353553385 : f32
    %42 = vector.broadcast %cst_19 : f32 to vector<2x8x8xf32>
    %43 = arith.mulf %41, %42 : vector<2x8x8xf32>
    %44 = vector.shape_cast %25 : vector<2x8xf32> to vector<2x1x8xf32>
    %45 = vector.broadcast %44 : vector<2x1x8xf32> to vector<2x8x8xf32>
    %46 = arith.addf %43, %45 : vector<2x8x8xf32>
    %cst_20 = arith.constant dense<0xFF800000> : vector<2x8xf32>
    %47 = vector.multi_reduction <maximumf>, %46, %cst_20 [2] : vector<2x8x8xf32> to vector<2x8xf32>
    %48 = vector.shape_cast %47 : vector<2x8xf32> to vector<2x8x1xf32>
    %49 = vector.broadcast %48 : vector<2x8x1xf32> to vector<2x8x8xf32>
    %50 = arith.subf %46, %49 : vector<2x8x8xf32>
    %51 = math.exp %50 : vector<2x8x8xf32>
    %cst_21 = arith.constant dense<0.000000e+00> : vector<2x8xf32>
    %52 = vector.multi_reduction <add>, %51, %cst_21 [2] : vector<2x8x8xf32> to vector<2x8xf32>
    %53 = vector.shape_cast %52 : vector<2x8xf32> to vector<2x8x1xf32>
    %54 = tpu.reciprocal %53 {approx = true} : vector<2x8x1xf32> -> vector<2x8x1xf32>
    %55 = vector.broadcast %54 : vector<2x8x1xf32> to vector<2x8x8xf32>
    %56 = arith.mulf %51, %55 : vector<2x8x8xf32>
    "tpu.trace_start"() <{level = 10 : i32, message = "bqk,bkd->bqd"}> : () -> ()
    %cst_22 = arith.constant dense<0.000000e+00> : vector<2x8x8xf32>
    %57 = tpu.matmul %56, %40, %cst_22 {dimension_numbers = #tpu.dot_dimension_numbers<[2], [1], [1], [2], [0, 0, 0, 1, 1, 2], [0], [0]>} : vector<2x8x8xf32>, vector<2x8x8xf32>, vector<2x8x8xf32> -> vector<2x8x8xf32>
    "tpu.trace_stop"() : () -> ()
    %58 = vector.shape_cast %57 : vector<2x8x8xf32> to vector<16x8xf32>
    %59 = vector.extract_strided_slice %34 {offsets = [0, 8], sizes = [16, 8], strides = [1, 1]} : vector<16x96xf32> to vector<16x8xf32>
    %60 = vector.shape_cast %59 : vector<16x8xf32> to vector<2x8x8xf32>
    %61 = vector.extract_strided_slice %34 {offsets = [0, 40], sizes = [16, 8], strides = [1, 1]} : vector<16x96xf32> to vector<16x8xf32>
    %62 = vector.shape_cast %61 : vector<16x8xf32> to vector<2x8x8xf32>
    %63 = vector.extract_strided_slice %34 {offsets = [0, 72], sizes = [16, 8], strides = [1, 1]} : vector<16x96xf32> to vector<16x8xf32>
    %64 = vector.shape_cast %63 : vector<16x8xf32> to vector<2x8x8xf32>
    "tpu.trace_start"() <{level = 10 : i32, message = "bqd,bkd->bqk"}> : () -> ()
    %cst_23 = arith.constant dense<0.000000e+00> : vector<2x8x8xf32>
    %65 = tpu.matmul %60, %62, %cst_23 {dimension_numbers = #tpu.dot_dimension_numbers<[2], [2], [1], [1], [0, 0, 0, 1, 1, 1], [0], [0]>} : vector<2x8x8xf32>, vector<2x8x8xf32>, vector<2x8x8xf32> -> vector<2x8x8xf32>
    "tpu.trace_stop"() : () -> ()
    %cst_24 = arith.constant 0.353553385 : f32
    %66 = vector.broadcast %cst_24 : f32 to vector<2x8x8xf32>
    %67 = arith.mulf %65, %66 : vector<2x8x8xf32>
    %68 = vector.shape_cast %25 : vector<2x8xf32> to vector<2x1x8xf32>
    %69 = vector.broadcast %68 : vector<2x1x8xf32> to vector<2x8x8xf32>
    %70 = arith.addf %67, %69 : vector<2x8x8xf32>
    %cst_25 = arith.constant dense<0xFF800000> : vector<2x8xf32>
    %71 = vector.multi_reduction <maximumf>, %70, %cst_25 [2] : vector<2x8x8xf32> to vector<2x8xf32>
    %72 = vector.shape_cast %71 : vector<2x8xf32> to vector<2x8x1xf32>
    %73 = vector.broadcast %72 : vector<2x8x1xf32> to vector<2x8x8xf32>
    %74 = arith.subf %70, %73 : vector<2x8x8xf32>
    %75 = math.exp %74 : vector<2x8x8xf32>
    %cst_26 = arith.constant dense<0.000000e+00> : vector<2x8xf32>
    %76 = vector.multi_reduction <add>, %75, %cst_26 [2] : vector<2x8x8xf32> to vector<2x8xf32>
    %77 = vector.shape_cast %76 : vector<2x8xf32> to vector<2x8x1xf32>
    %78 = tpu.reciprocal %77 {approx = true} : vector<2x8x1xf32> -> vector<2x8x1xf32>
    %79 = vector.broadcast %78 : vector<2x8x1xf32> to vector<2x8x8xf32>
    %80 = arith.mulf %75, %79 : vector<2x8x8xf32>
    "tpu.trace_start"() <{level = 10 : i32, message = "bqk,bkd->bqd"}> : () -> ()
    %cst_27 = arith.constant dense<0.000000e+00> : vector<2x8x8xf32>
    %81 = tpu.matmul %80, %64, %cst_27 {dimension_numbers = #tpu.dot_dimension_numbers<[2], [1], [1], [2], [0, 0, 0, 1, 1, 2], [0], [0]>} : vector<2x8x8xf32>, vector<2x8x8xf32>, vector<2x8x8xf32> -> vector<2x8x8xf32>
    "tpu.trace_stop"() : () -> ()
    %82 = vector.shape_cast %81 : vector<2x8x8xf32> to vector<16x8xf32>
    %83 = vector.extract_strided_slice %34 {offsets = [0, 16], sizes = [16, 8], strides = [1, 1]} : vector<16x96xf32> to vector<16x8xf32>
    %84 = vector.shape_cast %83 : vector<16x8xf32> to vector<2x8x8xf32>
    %85 = vector.extract_strided_slice %34 {offsets = [0, 48], sizes = [16, 8], strides = [1, 1]} : vector<16x96xf32> to vector<16x8xf32>
    %86 = vector.shape_cast %85 : vector<16x8xf32> to vector<2x8x8xf32>
    %87 = vector.extract_strided_slice %34 {offsets = [0, 80], sizes = [16, 8], strides = [1, 1]} : vector<16x96xf32> to vector<16x8xf32>
    %88 = vector.shape_cast %87 : vector<16x8xf32> to vector<2x8x8xf32>
    "tpu.trace_start"() <{level = 10 : i32, message = "bqd,bkd->bqk"}> : () -> ()
    %cst_28 = arith.constant dense<0.000000e+00> : vector<2x8x8xf32>
    %89 = tpu.matmul %84, %86, %cst_28 {dimension_numbers = #tpu.dot_dimension_numbers<[2], [2], [1], [1], [0, 0, 0, 1, 1, 1], [0], [0]>} : vector<2x8x8xf32>, vector<2x8x8xf32>, vector<2x8x8xf32> -> vector<2x8x8xf32>
    "tpu.trace_stop"() : () -> ()
    %cst_29 = arith.constant 0.353553385 : f32
    %90 = vector.broadcast %cst_29 : f32 to vector<2x8x8xf32>
    %91 = arith.mulf %89, %90 : vector<2x8x8xf32>
    %92 = vector.shape_cast %25 : vector<2x8xf32> to vector<2x1x8xf32>
    %93 = vector.broadcast %92 : vector<2x1x8xf32> to vector<2x8x8xf32>
    %94 = arith.addf %91, %93 : vector<2x8x8xf32>
    %cst_30 = arith.constant dense<0xFF800000> : vector<2x8xf32>
    %95 = vector.multi_reduction <maximumf>, %94, %cst_30 [2] : vector<2x8x8xf32> to vector<2x8xf32>
    %96 = vector.shape_cast %95 : vector<2x8xf32> to vector<2x8x1xf32>
    %97 = vector.broadcast %96 : vector<2x8x1xf32> to vector<2x8x8xf32>
    %98 = arith.subf %94, %97 : vector<2x8x8xf32>
    %99 = math.exp %98 : vector<2x8x8xf32>
    %cst_31 = arith.constant dense<0.000000e+00> : vector<2x8xf32>
    %100 = vector.multi_reduction <add>, %99, %cst_31 [2] : vector<2x8x8xf32> to vector<2x8xf32>
    %101 = vector.shape_cast %100 : vector<2x8xf32> to vector<2x8x1xf32>
    %102 = tpu.reciprocal %101 {approx = true} : vector<2x8x1xf32> -> vector<2x8x1xf32>
    %103 = vector.broadcast %102 : vector<2x8x1xf32> to vector<2x8x8xf32>
    %104 = arith.mulf %99, %103 : vector<2x8x8xf32>
    "tpu.trace_start"() <{level = 10 : i32, message = "bqk,bkd->bqd"}> : () -> ()
    %cst_32 = arith.constant dense<0.000000e+00> : vector<2x8x8xf32>
    %105 = tpu.matmul %104, %88, %cst_32 {dimension_numbers = #tpu.dot_dimension_numbers<[2], [1], [1], [2], [0, 0, 0, 1, 1, 2], [0], [0]>} : vector<2x8x8xf32>, vector<2x8x8xf32>, vector<2x8x8xf32> -> vector<2x8x8xf32>
    "tpu.trace_stop"() : () -> ()
    %106 = vector.shape_cast %105 : vector<2x8x8xf32> to vector<16x8xf32>
    %107 = vector.extract_strided_slice %34 {offsets = [0, 24], sizes = [16, 8], strides = [1, 1]} : vector<16x96xf32> to vector<16x8xf32>
    %108 = vector.shape_cast %107 : vector<16x8xf32> to vector<2x8x8xf32>
    %109 = vector.extract_strided_slice %34 {offsets = [0, 56], sizes = [16, 8], strides = [1, 1]} : vector<16x96xf32> to vector<16x8xf32>
    %110 = vector.shape_cast %109 : vector<16x8xf32> to vector<2x8x8xf32>
    %111 = vector.extract_strided_slice %34 {offsets = [0, 88], sizes = [16, 8], strides = [1, 1]} : vector<16x96xf32> to vector<16x8xf32>
    %112 = vector.shape_cast %111 : vector<16x8xf32> to vector<2x8x8xf32>
    "tpu.trace_start"() <{level = 10 : i32, message = "bqd,bkd->bqk"}> : () -> ()
    %cst_33 = arith.constant dense<0.000000e+00> : vector<2x8x8xf32>
    %113 = tpu.matmul %108, %110, %cst_33 {dimension_numbers = #tpu.dot_dimension_numbers<[2], [2], [1], [1], [0, 0, 0, 1, 1, 1], [0], [0]>} : vector<2x8x8xf32>, vector<2x8x8xf32>, vector<2x8x8xf32> -> vector<2x8x8xf32>
    "tpu.trace_stop"() : () -> ()
    %cst_34 = arith.constant 0.353553385 : f32
    %114 = vector.broadcast %cst_34 : f32 to vector<2x8x8xf32>
    %115 = arith.mulf %113, %114 : vector<2x8x8xf32>
    %116 = vector.shape_cast %25 : vector<2x8xf32> to vector<2x1x8xf32>
    %117 = vector.broadcast %116 : vector<2x1x8xf32> to vector<2x8x8xf32>
    %118 = arith.addf %115, %117 : vector<2x8x8xf32>
    %cst_35 = arith.constant dense<0xFF800000> : vector<2x8xf32>
    %119 = vector.multi_reduction <maximumf>, %118, %cst_35 [2] : vector<2x8x8xf32> to vector<2x8xf32>
    %120 = vector.shape_cast %119 : vector<2x8xf32> to vector<2x8x1xf32>
    %121 = vector.broadcast %120 : vector<2x8x1xf32> to vector<2x8x8xf32>
    %122 = arith.subf %118, %121 : vector<2x8x8xf32>
    %123 = math.exp %122 : vector<2x8x8xf32>
    %cst_36 = arith.constant dense<0.000000e+00> : vector<2x8xf32>
    %124 = vector.multi_reduction <add>, %123, %cst_36 [2] : vector<2x8x8xf32> to vector<2x8xf32>
    %125 = vector.shape_cast %124 : vector<2x8xf32> to vector<2x8x1xf32>
    %126 = tpu.reciprocal %125 {approx = true} : vector<2x8x1xf32> -> vector<2x8x1xf32>
    %127 = vector.broadcast %126 : vector<2x8x1xf32> to vector<2x8x8xf32>
    %128 = arith.mulf %123, %127 : vector<2x8x8xf32>
    "tpu.trace_start"() <{level = 10 : i32, message = "bqk,bkd->bqd"}> : () -> ()
    %cst_37 = arith.constant dense<0.000000e+00> : vector<2x8x8xf32>
    %129 = tpu.matmul %128, %112, %cst_37 {dimension_numbers = #tpu.dot_dimension_numbers<[2], [1], [1], [2], [0, 0, 0, 1, 1, 2], [0], [0]>} : vector<2x8x8xf32>, vector<2x8x8xf32>, vector<2x8x8xf32> -> vector<2x8x8xf32>
    "tpu.trace_stop"() : () -> ()
    %130 = vector.shape_cast %129 : vector<2x8x8xf32> to vector<16x8xf32>
    %131 = tpu.concatenate %58, %82, %106, %130 in 1 : vector<16x8xf32>, vector<16x8xf32>, vector<16x8xf32>, vector<16x8xf32> -> vector<16x32xf32>
    %c0_38 = arith.constant 0 : index
    %c0_39 = arith.constant 0 : index
    %c0_40 = arith.constant 0 : index
    %132 = vector.load %arg6[%c0_38, %c0_39, %c0_40] : memref<2x32x32xf32, #tpu.memory_space<vmem>>, vector<1x32x32xf32>
    %133 = vector.shape_cast %132 : vector<1x32x32xf32> to vector<32x32xf32>
    %134 = arith.truncf %131 : vector<16x32xf32> to vector<16x32xbf16>
    %135 = arith.truncf %133 : vector<32x32xf32> to vector<32x32xbf16>
    %cst_41 = arith.constant dense<0.000000e+00> : vector<16x32xf32>
    %136 = tpu.matmul %134, %135, %cst_41 {dimension_numbers = #tpu.dot_dimension_numbers<[1], [0], [0], [1], [0, 0, 1, 1], [], []>} : vector<16x32xbf16>, vector<32x32xbf16>, vector<16x32xf32> -> vector<16x32xf32>
    %c0_42 = arith.constant 0 : index
    %c0_43 = arith.constant 0 : index
    %c0_44 = arith.constant 0 : index
    %137 = vector.load %arg7[%c0_42, %c0_43, %c0_44] : memref<2x1x32xf32, #tpu.memory_space<vmem>>, vector<1x1x32xf32>
    %138 = vector.shape_cast %137 : vector<1x1x32xf32> to vector<1x32xf32>
    %139 = vector.broadcast %138 : vector<1x32xf32> to vector<16x32xf32>
    %140 = arith.addf %136, %139 : vector<16x32xf32>
    %141 = arith.addf %140, %24 : vector<16x32xf32>
    %c0_45 = arith.constant 0 : index
    %c0_46 = arith.constant 0 : index
    %c0_47 = arith.constant 0 : index
    %142 = vector.load %arg8[%c0_45, %c0_46, %c0_47] : memref<2x1x32xf32, #tpu.memory_space<vmem>>, vector<1x1x32xf32>
    %143 = vector.shape_cast %142 : vector<1x1x32xf32> to vector<1x32xf32>
    %c0_48 = arith.constant 0 : index
    %c0_49 = arith.constant 0 : index
    %c0_50 = arith.constant 0 : index
    %144 = vector.load %arg9[%c0_48, %c0_49, %c0_50] : memref<2x1x32xf32, #tpu.memory_space<vmem>>, vector<1x1x32xf32>
    %145 = vector.shape_cast %144 : vector<1x1x32xf32> to vector<1x32xf32>
    %cst_51 = arith.constant dense<0.000000e+00> : vector<16xf32>
    %146 = vector.multi_reduction <add>, %141, %cst_51 [1] : vector<16x32xf32> to vector<16xf32>
    %147 = vector.shape_cast %146 : vector<16xf32> to vector<16x1xf32>
    %cst_52 = arith.constant 3.200000e+01 : f32
    %148 = vector.broadcast %cst_52 : f32 to vector<16x1xf32>
    %149 = arith.divf %147, %148 : vector<16x1xf32>
    %150 = vector.broadcast %149 : vector<16x1xf32> to vector<16x32xf32>
    %151 = arith.subf %141, %150 : vector<16x32xf32>
    %152 = arith.mulf %151, %151 : vector<16x32xf32>
    %cst_53 = arith.constant dense<0.000000e+00> : vector<16xf32>
    %153 = vector.multi_reduction <add>, %152, %cst_53 [1] : vector<16x32xf32> to vector<16xf32>
    %154 = vector.shape_cast %153 : vector<16xf32> to vector<16x1xf32>
    %cst_54 = arith.constant 3.200000e+01 : f32
    %155 = vector.broadcast %cst_54 : f32 to vector<16x1xf32>
    %156 = arith.divf %154, %155 : vector<16x1xf32>
    %157 = vector.broadcast %149 : vector<16x1xf32> to vector<16x32xf32>
    %158 = arith.subf %141, %157 : vector<16x32xf32>
    %cst_55 = arith.constant 9.99999974E-6 : f32
    %159 = vector.broadcast %cst_55 : f32 to vector<16x1xf32>
    %160 = arith.addf %156, %159 : vector<16x1xf32>
    %161 = math.rsqrt %160 : vector<16x1xf32>
    %162 = vector.broadcast %161 : vector<16x1xf32> to vector<16x32xf32>
    %163 = arith.mulf %158, %162 : vector<16x32xf32>
    %164 = vector.broadcast %143 : vector<1x32xf32> to vector<16x32xf32>
    %165 = arith.mulf %163, %164 : vector<16x32xf32>
    %166 = vector.broadcast %145 : vector<1x32xf32> to vector<16x32xf32>
    %167 = arith.addf %165, %166 : vector<16x32xf32>
    %c0_56 = arith.constant 0 : index
    %c0_57 = arith.constant 0 : index
    %c0_58 = arith.constant 0 : index
    %168 = vector.load %arg10[%c0_56, %c0_57, %c0_58] : memref<2x32x64xf32, #tpu.memory_space<vmem>>, vector<1x32x64xf32>
    %169 = vector.shape_cast %168 : vector<1x32x64xf32> to vector<32x64xf32>
    %170 = arith.truncf %167 : vector<16x32xf32> to vector<16x32xbf16>
    %171 = arith.truncf %169 : vector<32x64xf32> to vector<32x64xbf16>
    %cst_59 = arith.constant dense<0.000000e+00> : vector<16x64xf32>
    %172 = tpu.matmul %170, %171, %cst_59 {dimension_numbers = #tpu.dot_dimension_numbers<[1], [0], [0], [1], [0, 0, 1, 1], [], []>} : vector<16x32xbf16>, vector<32x64xbf16>, vector<16x64xf32> -> vector<16x64xf32>
    %c0_60 = arith.constant 0 : index
    %c0_61 = arith.constant 0 : index
    %c0_62 = arith.constant 0 : index
    %173 = vector.load %arg11[%c0_60, %c0_61, %c0_62] : memref<2x1x64xf32, #tpu.memory_space<vmem>>, vector<1x1x64xf32>
    %174 = vector.shape_cast %173 : vector<1x1x64xf32> to vector<1x64xf32>
    %175 = vector.broadcast %174 : vector<1x64xf32> to vector<16x64xf32>
    %176 = arith.addf %172, %175 : vector<16x64xf32>
    %cst_63 = arith.constant 5.000000e-01 : f32
    %177 = vector.broadcast %cst_63 : f32 to vector<16x64xf32>
    %178 = arith.mulf %177, %176 : vector<16x64xf32>
    %cst_64 = arith.constant 4.471500e-02 : f32
    %179 = vector.broadcast %cst_64 : f32 to vector<16x64xf32>
    %180 = arith.mulf %179, %176 : vector<16x64xf32>
    %181 = arith.mulf %180, %176 : vector<16x64xf32>
    %182 = arith.mulf %181, %176 : vector<16x64xf32>
    %183 = arith.addf %176, %182 : vector<16x64xf32>
    %cst_65 = arith.constant 0.797884583 : f32
    %184 = vector.broadcast %cst_65 : f32 to vector<16x64xf32>
    %185 = arith.mulf %184, %183 : vector<16x64xf32>
    %186 = math.tanh %185 : vector<16x64xf32>
    %cst_66 = arith.constant 1.000000e+00 : f32
    %187 = vector.broadcast %cst_66 : f32 to vector<16x64xf32>
    %188 = arith.addf %187, %186 : vector<16x64xf32>
    %189 = arith.mulf %178, %188 : vector<16x64xf32>
    %c0_67 = arith.constant 0 : index
    %c0_68 = arith.constant 0 : index
    %c0_69 = arith.constant 0 : index
    %190 = vector.load %arg12[%c0_67, %c0_68, %c0_69] : memref<2x64x32xf32, #tpu.memory_space<vmem>>, vector<1x64x32xf32>
    %191 = vector.shape_cast %190 : vector<1x64x32xf32> to vector<64x32xf32>
    %192 = arith.truncf %189 : vector<16x64xf32> to vector<16x64xbf16>
    %193 = arith.truncf %191 : vector<64x32xf32> to vector<64x32xbf16>
    %cst_70 = arith.constant dense<0.000000e+00> : vector<16x32xf32>
    %194 = tpu.matmul %192, %193, %cst_70 {dimension_numbers = #tpu.dot_dimension_numbers<[1], [0], [0], [1], [0, 0, 1, 1], [], []>} : vector<16x64xbf16>, vector<64x32xbf16>, vector<16x32xf32> -> vector<16x32xf32>
    %c0_71 = arith.constant 0 : index
    %c0_72 = arith.constant 0 : index
    %c0_73 = arith.constant 0 : index
    %195 = vector.load %arg13[%c0_71, %c0_72, %c0_73] : memref<2x1x32xf32, #tpu.memory_space<vmem>>, vector<1x1x32xf32>
    %196 = vector.shape_cast %195 : vector<1x1x32xf32> to vector<1x32xf32>
    %197 = vector.broadcast %196 : vector<1x32xf32> to vector<16x32xf32>
    %198 = arith.addf %194, %197 : vector<16x32xf32>
    %199 = arith.addf %198, %167 : vector<16x32xf32>
    %c0_74 = arith.constant 0 : index
    %c0_75 = arith.constant 0 : index
    %c0_76 = arith.constant 0 : index
    %200 = vector.load %arg14[%c0_74, %c0_75, %c0_76] : memref<2x1x32xf32, #tpu.memory_space<vmem>>, vector<1x1x32xf32>
    %201 = vector.shape_cast %200 : vector<1x1x32xf32> to vector<1x32xf32>
    %c0_77 = arith.constant 0 : index
    %c0_78 = arith.constant 0 : index
    %c0_79 = arith.constant 0 : index
    %202 = vector.load %arg15[%c0_77, %c0_78, %c0_79] : memref<2x1x32xf32, #tpu.memory_space<vmem>>, vector<1x1x32xf32>
    %203 = vector.shape_cast %202 : vector<1x1x32xf32> to vector<1x32xf32>
    %cst_80 = arith.constant dense<0.000000e+00> : vector<16xf32>
    %204 = vector.multi_reduction <add>, %199, %cst_80 [1] : vector<16x32xf32> to vector<16xf32>
    %205 = vector.shape_cast %204 : vector<16xf32> to vector<16x1xf32>
    %cst_81 = arith.constant 3.200000e+01 : f32
    %206 = vector.broadcast %cst_81 : f32 to vector<16x1xf32>
    %207 = arith.divf %205, %206 : vector<16x1xf32>
    %208 = vector.broadcast %207 : vector<16x1xf32> to vector<16x32xf32>
    %209 = arith.subf %199, %208 : vector<16x32xf32>
    %210 = arith.mulf %209, %209 : vector<16x32xf32>
    %cst_82 = arith.constant dense<0.000000e+00> : vector<16xf32>
    %211 = vector.multi_reduction <add>, %210, %cst_82 [1] : vector<16x32xf32> to vector<16xf32>
    %212 = vector.shape_cast %211 : vector<16xf32> to vector<16x1xf32>
    %cst_83 = arith.constant 3.200000e+01 : f32
    %213 = vector.broadcast %cst_83 : f32 to vector<16x1xf32>
    %214 = arith.divf %212, %213 : vector<16x1xf32>
    %215 = vector.broadcast %207 : vector<16x1xf32> to vector<16x32xf32>
    %216 = arith.subf %199, %215 : vector<16x32xf32>
    %cst_84 = arith.constant 9.99999974E-6 : f32
    %217 = vector.broadcast %cst_84 : f32 to vector<16x1xf32>
    %218 = arith.addf %214, %217 : vector<16x1xf32>
    %219 = math.rsqrt %218 : vector<16x1xf32>
    %220 = vector.broadcast %219 : vector<16x1xf32> to vector<16x32xf32>
    %221 = arith.mulf %216, %220 : vector<16x32xf32>
    %222 = vector.broadcast %201 : vector<1x32xf32> to vector<16x32xf32>
    %223 = arith.mulf %221, %222 : vector<16x32xf32>
    %224 = vector.broadcast %203 : vector<1x32xf32> to vector<16x32xf32>
    %225 = arith.addf %223, %224 : vector<16x32xf32>
    %c1 = arith.constant 1 : index
    %c0_85 = arith.constant 0 : index
    %c0_86 = arith.constant 0 : index
    %226 = vector.load %arg4[%c1, %c0_85, %c0_86] : memref<2x32x96xf32, #tpu.memory_space<vmem>>, vector<1x32x96xf32>
    %227 = vector.shape_cast %226 : vector<1x32x96xf32> to vector<32x96xf32>
    %228 = arith.truncf %225 : vector<16x32xf32> to vector<16x32xbf16>
    %229 = arith.truncf %227 : vector<32x96xf32> to vector<32x96xbf16>
    %cst_87 = arith.constant dense<0.000000e+00> : vector<16x96xf32>
    %230 = tpu.matmul %228, %229, %cst_87 {dimension_numbers = #tpu.dot_dimension_numbers<[1], [0], [0], [1], [0, 0, 1, 1], [], []>} : vector<16x32xbf16>, vector<32x96xbf16>, vector<16x96xf32> -> vector<16x96xf32>
    %c1_88 = arith.constant 1 : index
    %c0_89 = arith.constant 0 : index
    %c0_90 = arith.constant 0 : index
    %231 = vector.load %arg5[%c1_88, %c0_89, %c0_90] : memref<2x1x96xf32, #tpu.memory_space<vmem>>, vector<1x1x96xf32>
    %232 = vector.shape_cast %231 : vector<1x1x96xf32> to vector<1x96xf32>
    %233 = vector.broadcast %232 : vector<1x96xf32> to vector<16x96xf32>
    %234 = arith.addf %230, %233 : vector<16x96xf32>
    %235 = vector.extract_strided_slice %234 {offsets = [0, 0], sizes = [16, 8], strides = [1, 1]} : vector<16x96xf32> to vector<16x8xf32>
    %236 = vector.shape_cast %235 : vector<16x8xf32> to vector<2x8x8xf32>
    %237 = vector.extract_strided_slice %234 {offsets = [0, 32], sizes = [16, 8], strides = [1, 1]} : vector<16x96xf32> to vector<16x8xf32>
    %238 = vector.shape_cast %237 : vector<16x8xf32> to vector<2x8x8xf32>
    %239 = vector.extract_strided_slice %234 {offsets = [0, 64], sizes = [16, 8], strides = [1, 1]} : vector<16x96xf32> to vector<16x8xf32>
    %240 = vector.shape_cast %239 : vector<16x8xf32> to vector<2x8x8xf32>
    "tpu.trace_start"() <{level = 10 : i32, message = "bqd,bkd->bqk"}> : () -> ()
    %cst_91 = arith.constant dense<0.000000e+00> : vector<2x8x8xf32>
    %241 = tpu.matmul %236, %238, %cst_91 {dimension_numbers = #tpu.dot_dimension_numbers<[2], [2], [1], [1], [0, 0, 0, 1, 1, 1], [0], [0]>} : vector<2x8x8xf32>, vector<2x8x8xf32>, vector<2x8x8xf32> -> vector<2x8x8xf32>
    "tpu.trace_stop"() : () -> ()
    %cst_92 = arith.constant 0.353553385 : f32
    %242 = vector.broadcast %cst_92 : f32 to vector<2x8x8xf32>
    %243 = arith.mulf %241, %242 : vector<2x8x8xf32>
    %244 = vector.shape_cast %25 : vector<2x8xf32> to vector<2x1x8xf32>
    %245 = vector.broadcast %244 : vector<2x1x8xf32> to vector<2x8x8xf32>
    %246 = arith.addf %243, %245 : vector<2x8x8xf32>
    %cst_93 = arith.constant dense<0xFF800000> : vector<2x8xf32>
    %247 = vector.multi_reduction <maximumf>, %246, %cst_93 [2] : vector<2x8x8xf32> to vector<2x8xf32>
    %248 = vector.shape_cast %247 : vector<2x8xf32> to vector<2x8x1xf32>
    %249 = vector.broadcast %248 : vector<2x8x1xf32> to vector<2x8x8xf32>
    %250 = arith.subf %246, %249 : vector<2x8x8xf32>
    %251 = math.exp %250 : vector<2x8x8xf32>
    %cst_94 = arith.constant dense<0.000000e+00> : vector<2x8xf32>
    %252 = vector.multi_reduction <add>, %251, %cst_94 [2] : vector<2x8x8xf32> to vector<2x8xf32>
    %253 = vector.shape_cast %252 : vector<2x8xf32> to vector<2x8x1xf32>
    %254 = tpu.reciprocal %253 {approx = true} : vector<2x8x1xf32> -> vector<2x8x1xf32>
    %255 = vector.broadcast %254 : vector<2x8x1xf32> to vector<2x8x8xf32>
    %256 = arith.mulf %251, %255 : vector<2x8x8xf32>
    "tpu.trace_start"() <{level = 10 : i32, message = "bqk,bkd->bqd"}> : () -> ()
    %cst_95 = arith.constant dense<0.000000e+00> : vector<2x8x8xf32>
    %257 = tpu.matmul %256, %240, %cst_95 {dimension_numbers = #tpu.dot_dimension_numbers<[2], [1], [1], [2], [0, 0, 0, 1, 1, 2], [0], [0]>} : vector<2x8x8xf32>, vector<2x8x8xf32>, vector<2x8x8xf32> -> vector<2x8x8xf32>
    "tpu.trace_stop"() : () -> ()
    %258 = vector.shape_cast %257 : vector<2x8x8xf32> to vector<16x8xf32>
    %259 = vector.extract_strided_slice %234 {offsets = [0, 8], sizes = [16, 8], strides = [1, 1]} : vector<16x96xf32> to vector<16x8xf32>
    %260 = vector.shape_cast %259 : vector<16x8xf32> to vector<2x8x8xf32>
    %261 = vector.extract_strided_slice %234 {offsets = [0, 40], sizes = [16, 8], strides = [1, 1]} : vector<16x96xf32> to vector<16x8xf32>
    %262 = vector.shape_cast %261 : vector<16x8xf32> to vector<2x8x8xf32>
    %263 = vector.extract_strided_slice %234 {offsets = [0, 72], sizes = [16, 8], strides = [1, 1]} : vector<16x96xf32> to vector<16x8xf32>
    %264 = vector.shape_cast %263 : vector<16x8xf32> to vector<2x8x8xf32>
    "tpu.trace_start"() <{level = 10 : i32, message = "bqd,bkd->bqk"}> : () -> ()
    %cst_96 = arith.constant dense<0.000000e+00> : vector<2x8x8xf32>
    %265 = tpu.matmul %260, %262, %cst_96 {dimension_numbers = #tpu.dot_dimension_numbers<[2], [2], [1], [1], [0, 0, 0, 1, 1, 1], [0], [0]>} : vector<2x8x8xf32>, vector<2x8x8xf32>, vector<2x8x8xf32> -> vector<2x8x8xf32>
    "tpu.trace_stop"() : () -> ()
    %cst_97 = arith.constant 0.353553385 : f32
    %266 = vector.broadcast %cst_97 : f32 to vector<2x8x8xf32>
    %267 = arith.mulf %265, %266 : vector<2x8x8xf32>
    %268 = vector.shape_cast %25 : vector<2x8xf32> to vector<2x1x8xf32>
    %269 = vector.broadcast %268 : vector<2x1x8xf32> to vector<2x8x8xf32>
    %270 = arith.addf %267, %269 : vector<2x8x8xf32>
    %cst_98 = arith.constant dense<0xFF800000> : vector<2x8xf32>
    %271 = vector.multi_reduction <maximumf>, %270, %cst_98 [2] : vector<2x8x8xf32> to vector<2x8xf32>
    %272 = vector.shape_cast %271 : vector<2x8xf32> to vector<2x8x1xf32>
    %273 = vector.broadcast %272 : vector<2x8x1xf32> to vector<2x8x8xf32>
    %274 = arith.subf %270, %273 : vector<2x8x8xf32>
    %275 = math.exp %274 : vector<2x8x8xf32>
    %cst_99 = arith.constant dense<0.000000e+00> : vector<2x8xf32>
    %276 = vector.multi_reduction <add>, %275, %cst_99 [2] : vector<2x8x8xf32> to vector<2x8xf32>
    %277 = vector.shape_cast %276 : vector<2x8xf32> to vector<2x8x1xf32>
    %278 = tpu.reciprocal %277 {approx = true} : vector<2x8x1xf32> -> vector<2x8x1xf32>
    %279 = vector.broadcast %278 : vector<2x8x1xf32> to vector<2x8x8xf32>
    %280 = arith.mulf %275, %279 : vector<2x8x8xf32>
    "tpu.trace_start"() <{level = 10 : i32, message = "bqk,bkd->bqd"}> : () -> ()
    %cst_100 = arith.constant dense<0.000000e+00> : vector<2x8x8xf32>
    %281 = tpu.matmul %280, %264, %cst_100 {dimension_numbers = #tpu.dot_dimension_numbers<[2], [1], [1], [2], [0, 0, 0, 1, 1, 2], [0], [0]>} : vector<2x8x8xf32>, vector<2x8x8xf32>, vector<2x8x8xf32> -> vector<2x8x8xf32>
    "tpu.trace_stop"() : () -> ()
    %282 = vector.shape_cast %281 : vector<2x8x8xf32> to vector<16x8xf32>
    %283 = vector.extract_strided_slice %234 {offsets = [0, 16], sizes = [16, 8], strides = [1, 1]} : vector<16x96xf32> to vector<16x8xf32>
    %284 = vector.shape_cast %283 : vector<16x8xf32> to vector<2x8x8xf32>
    %285 = vector.extract_strided_slice %234 {offsets = [0, 48], sizes = [16, 8], strides = [1, 1]} : vector<16x96xf32> to vector<16x8xf32>
    %286 = vector.shape_cast %285 : vector<16x8xf32> to vector<2x8x8xf32>
    %287 = vector.extract_strided_slice %234 {offsets = [0, 80], sizes = [16, 8], strides = [1, 1]} : vector<16x96xf32> to vector<16x8xf32>
    %288 = vector.shape_cast %287 : vector<16x8xf32> to vector<2x8x8xf32>
    "tpu.trace_start"() <{level = 10 : i32, message = "bqd,bkd->bqk"}> : () -> ()
    %cst_101 = arith.constant dense<0.000000e+00> : vector<2x8x8xf32>
    %289 = tpu.matmul %284, %286, %cst_101 {dimension_numbers = #tpu.dot_dimension_numbers<[2], [2], [1], [1], [0, 0, 0, 1, 1, 1], [0], [0]>} : vector<2x8x8xf32>, vector<2x8x8xf32>, vector<2x8x8xf32> -> vector<2x8x8xf32>
    "tpu.trace_stop"() : () -> ()
    %cst_102 = arith.constant 0.353553385 : f32
    %290 = vector.broadcast %cst_102 : f32 to vector<2x8x8xf32>
    %291 = arith.mulf %289, %290 : vector<2x8x8xf32>
    %292 = vector.shape_cast %25 : vector<2x8xf32> to vector<2x1x8xf32>
    %293 = vector.broadcast %292 : vector<2x1x8xf32> to vector<2x8x8xf32>
    %294 = arith.addf %291, %293 : vector<2x8x8xf32>
    %cst_103 = arith.constant dense<0xFF800000> : vector<2x8xf32>
    %295 = vector.multi_reduction <maximumf>, %294, %cst_103 [2] : vector<2x8x8xf32> to vector<2x8xf32>
    %296 = vector.shape_cast %295 : vector<2x8xf32> to vector<2x8x1xf32>
    %297 = vector.broadcast %296 : vector<2x8x1xf32> to vector<2x8x8xf32>
    %298 = arith.subf %294, %297 : vector<2x8x8xf32>
    %299 = math.exp %298 : vector<2x8x8xf32>
    %cst_104 = arith.constant dense<0.000000e+00> : vector<2x8xf32>
    %300 = vector.multi_reduction <add>, %299, %cst_104 [2] : vector<2x8x8xf32> to vector<2x8xf32>
    %301 = vector.shape_cast %300 : vector<2x8xf32> to vector<2x8x1xf32>
    %302 = tpu.reciprocal %301 {approx = true} : vector<2x8x1xf32> -> vector<2x8x1xf32>
    %303 = vector.broadcast %302 : vector<2x8x1xf32> to vector<2x8x8xf32>
    %304 = arith.mulf %299, %303 : vector<2x8x8xf32>
    "tpu.trace_start"() <{level = 10 : i32, message = "bqk,bkd->bqd"}> : () -> ()
    %cst_105 = arith.constant dense<0.000000e+00> : vector<2x8x8xf32>
    %305 = tpu.matmul %304, %288, %cst_105 {dimension_numbers = #tpu.dot_dimension_numbers<[2], [1], [1], [2], [0, 0, 0, 1, 1, 2], [0], [0]>} : vector<2x8x8xf32>, vector<2x8x8xf32>, vector<2x8x8xf32> -> vector<2x8x8xf32>
    "tpu.trace_stop"() : () -> ()
    %306 = vector.shape_cast %305 : vector<2x8x8xf32> to vector<16x8xf32>
    %307 = vector.extract_strided_slice %234 {offsets = [0, 24], sizes = [16, 8], strides = [1, 1]} : vector<16x96xf32> to vector<16x8xf32>
    %308 = vector.shape_cast %307 : vector<16x8xf32> to vector<2x8x8xf32>
    %309 = vector.extract_strided_slice %234 {offsets = [0, 56], sizes = [16, 8], strides = [1, 1]} : vector<16x96xf32> to vector<16x8xf32>
    %310 = vector.shape_cast %309 : vector<16x8xf32> to vector<2x8x8xf32>
    %311 = vector.extract_strided_slice %234 {offsets = [0, 88], sizes = [16, 8], strides = [1, 1]} : vector<16x96xf32> to vector<16x8xf32>
    %312 = vector.shape_cast %311 : vector<16x8xf32> to vector<2x8x8xf32>
    "tpu.trace_start"() <{level = 10 : i32, message = "bqd,bkd->bqk"}> : () -> ()
    %cst_106 = arith.constant dense<0.000000e+00> : vector<2x8x8xf32>
    %313 = tpu.matmul %308, %310, %cst_106 {dimension_numbers = #tpu.dot_dimension_numbers<[2], [2], [1], [1], [0, 0, 0, 1, 1, 1], [0], [0]>} : vector<2x8x8xf32>, vector<2x8x8xf32>, vector<2x8x8xf32> -> vector<2x8x8xf32>
    "tpu.trace_stop"() : () -> ()
    %cst_107 = arith.constant 0.353553385 : f32
    %314 = vector.broadcast %cst_107 : f32 to vector<2x8x8xf32>
    %315 = arith.mulf %313, %314 : vector<2x8x8xf32>
    %316 = vector.shape_cast %25 : vector<2x8xf32> to vector<2x1x8xf32>
    %317 = vector.broadcast %316 : vector<2x1x8xf32> to vector<2x8x8xf32>
    %318 = arith.addf %315, %317 : vector<2x8x8xf32>
    %cst_108 = arith.constant dense<0xFF800000> : vector<2x8xf32>
    %319 = vector.multi_reduction <maximumf>, %318, %cst_108 [2] : vector<2x8x8xf32> to vector<2x8xf32>
    %320 = vector.shape_cast %319 : vector<2x8xf32> to vector<2x8x1xf32>
    %321 = vector.broadcast %320 : vector<2x8x1xf32> to vector<2x8x8xf32>
    %322 = arith.subf %318, %321 : vector<2x8x8xf32>
    %323 = math.exp %322 : vector<2x8x8xf32>
    %cst_109 = arith.constant dense<0.000000e+00> : vector<2x8xf32>
    %324 = vector.multi_reduction <add>, %323, %cst_109 [2] : vector<2x8x8xf32> to vector<2x8xf32>
    %325 = vector.shape_cast %324 : vector<2x8xf32> to vector<2x8x1xf32>
    %326 = tpu.reciprocal %325 {approx = true} : vector<2x8x1xf32> -> vector<2x8x1xf32>
    %327 = vector.broadcast %326 : vector<2x8x1xf32> to vector<2x8x8xf32>
    %328 = arith.mulf %323, %327 : vector<2x8x8xf32>
    "tpu.trace_start"() <{level = 10 : i32, message = "bqk,bkd->bqd"}> : () -> ()
    %cst_110 = arith.constant dense<0.000000e+00> : vector<2x8x8xf32>
    %329 = tpu.matmul %328, %312, %cst_110 {dimension_numbers = #tpu.dot_dimension_numbers<[2], [1], [1], [2], [0, 0, 0, 1, 1, 2], [0], [0]>} : vector<2x8x8xf32>, vector<2x8x8xf32>, vector<2x8x8xf32> -> vector<2x8x8xf32>
    "tpu.trace_stop"() : () -> ()
    %330 = vector.shape_cast %329 : vector<2x8x8xf32> to vector<16x8xf32>
    %331 = tpu.concatenate %258, %282, %306, %330 in 1 : vector<16x8xf32>, vector<16x8xf32>, vector<16x8xf32>, vector<16x8xf32> -> vector<16x32xf32>
    %c1_111 = arith.constant 1 : index
    %c0_112 = arith.constant 0 : index
    %c0_113 = arith.constant 0 : index
    %332 = vector.load %arg6[%c1_111, %c0_112, %c0_113] : memref<2x32x32xf32, #tpu.memory_space<vmem>>, vector<1x32x32xf32>
    %333 = vector.shape_cast %332 : vector<1x32x32xf32> to vector<32x32xf32>
    %334 = arith.truncf %331 : vector<16x32xf32> to vector<16x32xbf16>
    %335 = arith.truncf %333 : vector<32x32xf32> to vector<32x32xbf16>
    %cst_114 = arith.constant dense<0.000000e+00> : vector<16x32xf32>
    %336 = tpu.matmul %334, %335, %cst_114 {dimension_numbers = #tpu.dot_dimension_numbers<[1], [0], [0], [1], [0, 0, 1, 1], [], []>} : vector<16x32xbf16>, vector<32x32xbf16>, vector<16x32xf32> -> vector<16x32xf32>
    %c1_115 = arith.constant 1 : index
    %c0_116 = arith.constant 0 : index
    %c0_117 = arith.constant 0 : index
    %337 = vector.load %arg7[%c1_115, %c0_116, %c0_117] : memref<2x1x32xf32, #tpu.memory_space<vmem>>, vector<1x1x32xf32>
    %338 = vector.shape_cast %337 : vector<1x1x32xf32> to vector<1x32xf32>
    %339 = vector.broadcast %338 : vector<1x32xf32> to vector<16x32xf32>
    %340 = arith.addf %336, %339 : vector<16x32xf32>
    %341 = arith.addf %340, %225 : vector<16x32xf32>
    %c1_118 = arith.constant 1 : index
    %c0_119 = arith.constant 0 : index
    %c0_120 = arith.constant 0 : index
    %342 = vector.load %arg8[%c1_118, %c0_119, %c0_120] : memref<2x1x32xf32, #tpu.memory_space<vmem>>, vector<1x1x32xf32>
    %343 = vector.shape_cast %342 : vector<1x1x32xf32> to vector<1x32xf32>
    %c1_121 = arith.constant 1 : index
    %c0_122 = arith.constant 0 : index
    %c0_123 = arith.constant 0 : index
    %344 = vector.load %arg9[%c1_121, %c0_122, %c0_123] : memref<2x1x32xf32, #tpu.memory_space<vmem>>, vector<1x1x32xf32>
    %345 = vector.shape_cast %344 : vector<1x1x32xf32> to vector<1x32xf32>
    %cst_124 = arith.constant dense<0.000000e+00> : vector<16xf32>
    %346 = vector.multi_reduction <add>, %341, %cst_124 [1] : vector<16x32xf32> to vector<16xf32>
    %347 = vector.shape_cast %346 : vector<16xf32> to vector<16x1xf32>
    %cst_125 = arith.constant 3.200000e+01 : f32
    %348 = vector.broadcast %cst_125 : f32 to vector<16x1xf32>
    %349 = arith.divf %347, %348 : vector<16x1xf32>
    %350 = vector.broadcast %349 : vector<16x1xf32> to vector<16x32xf32>
    %351 = arith.subf %341, %350 : vector<16x32xf32>
    %352 = arith.mulf %351, %351 : vector<16x32xf32>
    %cst_126 = arith.constant dense<0.000000e+00> : vector<16xf32>
    %353 = vector.multi_reduction <add>, %352, %cst_126 [1] : vector<16x32xf32> to vector<16xf32>
    %354 = vector.shape_cast %353 : vector<16xf32> to vector<16x1xf32>
    %cst_127 = arith.constant 3.200000e+01 : f32
    %355 = vector.broadcast %cst_127 : f32 to vector<16x1xf32>
    %356 = arith.divf %354, %355 : vector<16x1xf32>
    %357 = vector.broadcast %349 : vector<16x1xf32> to vector<16x32xf32>
    %358 = arith.subf %341, %357 : vector<16x32xf32>
    %cst_128 = arith.constant 9.99999974E-6 : f32
    %359 = vector.broadcast %cst_128 : f32 to vector<16x1xf32>
    %360 = arith.addf %356, %359 : vector<16x1xf32>
    %361 = math.rsqrt %360 : vector<16x1xf32>
    %362 = vector.broadcast %361 : vector<16x1xf32> to vector<16x32xf32>
    %363 = arith.mulf %358, %362 : vector<16x32xf32>
    %364 = vector.broadcast %343 : vector<1x32xf32> to vector<16x32xf32>
    %365 = arith.mulf %363, %364 : vector<16x32xf32>
    %366 = vector.broadcast %345 : vector<1x32xf32> to vector<16x32xf32>
    %367 = arith.addf %365, %366 : vector<16x32xf32>
    %c1_129 = arith.constant 1 : index
    %c0_130 = arith.constant 0 : index
    %c0_131 = arith.constant 0 : index
    %368 = vector.load %arg10[%c1_129, %c0_130, %c0_131] : memref<2x32x64xf32, #tpu.memory_space<vmem>>, vector<1x32x64xf32>
    %369 = vector.shape_cast %368 : vector<1x32x64xf32> to vector<32x64xf32>
    %370 = arith.truncf %367 : vector<16x32xf32> to vector<16x32xbf16>
    %371 = arith.truncf %369 : vector<32x64xf32> to vector<32x64xbf16>
    %cst_132 = arith.constant dense<0.000000e+00> : vector<16x64xf32>
    %372 = tpu.matmul %370, %371, %cst_132 {dimension_numbers = #tpu.dot_dimension_numbers<[1], [0], [0], [1], [0, 0, 1, 1], [], []>} : vector<16x32xbf16>, vector<32x64xbf16>, vector<16x64xf32> -> vector<16x64xf32>
    %c1_133 = arith.constant 1 : index
    %c0_134 = arith.constant 0 : index
    %c0_135 = arith.constant 0 : index
    %373 = vector.load %arg11[%c1_133, %c0_134, %c0_135] : memref<2x1x64xf32, #tpu.memory_space<vmem>>, vector<1x1x64xf32>
    %374 = vector.shape_cast %373 : vector<1x1x64xf32> to vector<1x64xf32>
    %375 = vector.broadcast %374 : vector<1x64xf32> to vector<16x64xf32>
    %376 = arith.addf %372, %375 : vector<16x64xf32>
    %cst_136 = arith.constant 5.000000e-01 : f32
    %377 = vector.broadcast %cst_136 : f32 to vector<16x64xf32>
    %378 = arith.mulf %377, %376 : vector<16x64xf32>
    %cst_137 = arith.constant 4.471500e-02 : f32
    %379 = vector.broadcast %cst_137 : f32 to vector<16x64xf32>
    %380 = arith.mulf %379, %376 : vector<16x64xf32>
    %381 = arith.mulf %380, %376 : vector<16x64xf32>
    %382 = arith.mulf %381, %376 : vector<16x64xf32>
    %383 = arith.addf %376, %382 : vector<16x64xf32>
    %cst_138 = arith.constant 0.797884583 : f32
    %384 = vector.broadcast %cst_138 : f32 to vector<16x64xf32>
    %385 = arith.mulf %384, %383 : vector<16x64xf32>
    %386 = math.tanh %385 : vector<16x64xf32>
    %cst_139 = arith.constant 1.000000e+00 : f32
    %387 = vector.broadcast %cst_139 : f32 to vector<16x64xf32>
    %388 = arith.addf %387, %386 : vector<16x64xf32>
    %389 = arith.mulf %378, %388 : vector<16x64xf32>
    %c1_140 = arith.constant 1 : index
    %c0_141 = arith.constant 0 : index
    %c0_142 = arith.constant 0 : index
    %390 = vector.load %arg12[%c1_140, %c0_141, %c0_142] : memref<2x64x32xf32, #tpu.memory_space<vmem>>, vector<1x64x32xf32>
    %391 = vector.shape_cast %390 : vector<1x64x32xf32> to vector<64x32xf32>
    %392 = arith.truncf %389 : vector<16x64xf32> to vector<16x64xbf16>
    %393 = arith.truncf %391 : vector<64x32xf32> to vector<64x32xbf16>
    %cst_143 = arith.constant dense<0.000000e+00> : vector<16x32xf32>
    %394 = tpu.matmul %392, %393, %cst_143 {dimension_numbers = #tpu.dot_dimension_numbers<[1], [0], [0], [1], [0, 0, 1, 1], [], []>} : vector<16x64xbf16>, vector<64x32xbf16>, vector<16x32xf32> -> vector<16x32xf32>
    %c1_144 = arith.constant 1 : index
    %c0_145 = arith.constant 0 : index
    %c0_146 = arith.constant 0 : index
    %395 = vector.load %arg13[%c1_144, %c0_145, %c0_146] : memref<2x1x32xf32, #tpu.memory_space<vmem>>, vector<1x1x32xf32>
    %396 = vector.shape_cast %395 : vector<1x1x32xf32> to vector<1x32xf32>
    %397 = vector.broadcast %396 : vector<1x32xf32> to vector<16x32xf32>
    %398 = arith.addf %394, %397 : vector<16x32xf32>
    %399 = arith.addf %398, %367 : vector<16x32xf32>
    %c1_147 = arith.constant 1 : index
    %c0_148 = arith.constant 0 : index
    %c0_149 = arith.constant 0 : index
    %400 = vector.load %arg14[%c1_147, %c0_148, %c0_149] : memref<2x1x32xf32, #tpu.memory_space<vmem>>, vector<1x1x32xf32>
    %401 = vector.shape_cast %400 : vector<1x1x32xf32> to vector<1x32xf32>
    %c1_150 = arith.constant 1 : index
    %c0_151 = arith.constant 0 : index
    %c0_152 = arith.constant 0 : index
    %402 = vector.load %arg15[%c1_150, %c0_151, %c0_152] : memref<2x1x32xf32, #tpu.memory_space<vmem>>, vector<1x1x32xf32>
    %403 = vector.shape_cast %402 : vector<1x1x32xf32> to vector<1x32xf32>
    %cst_153 = arith.constant dense<0.000000e+00> : vector<16xf32>
    %404 = vector.multi_reduction <add>, %399, %cst_153 [1] : vector<16x32xf32> to vector<16xf32>
    %405 = vector.shape_cast %404 : vector<16xf32> to vector<16x1xf32>
    %cst_154 = arith.constant 3.200000e+01 : f32
    %406 = vector.broadcast %cst_154 : f32 to vector<16x1xf32>
    %407 = arith.divf %405, %406 : vector<16x1xf32>
    %408 = vector.broadcast %407 : vector<16x1xf32> to vector<16x32xf32>
    %409 = arith.subf %399, %408 : vector<16x32xf32>
    %410 = arith.mulf %409, %409 : vector<16x32xf32>
    %cst_155 = arith.constant dense<0.000000e+00> : vector<16xf32>
    %411 = vector.multi_reduction <add>, %410, %cst_155 [1] : vector<16x32xf32> to vector<16xf32>
    %412 = vector.shape_cast %411 : vector<16xf32> to vector<16x1xf32>
    %cst_156 = arith.constant 3.200000e+01 : f32
    %413 = vector.broadcast %cst_156 : f32 to vector<16x1xf32>
    %414 = arith.divf %412, %413 : vector<16x1xf32>
    %415 = vector.broadcast %407 : vector<16x1xf32> to vector<16x32xf32>
    %416 = arith.subf %399, %415 : vector<16x32xf32>
    %cst_157 = arith.constant 9.99999974E-6 : f32
    %417 = vector.broadcast %cst_157 : f32 to vector<16x1xf32>
    %418 = arith.addf %414, %417 : vector<16x1xf32>
    %419 = math.rsqrt %418 : vector<16x1xf32>
    %420 = vector.broadcast %419 : vector<16x1xf32> to vector<16x32xf32>
    %421 = arith.mulf %416, %420 : vector<16x32xf32>
    %422 = vector.broadcast %401 : vector<1x32xf32> to vector<16x32xf32>
    %423 = arith.mulf %421, %422 : vector<16x32xf32>
    %424 = vector.broadcast %403 : vector<1x32xf32> to vector<16x32xf32>
    %425 = arith.addf %423, %424 : vector<16x32xf32>
    %c0_158 = arith.constant 0 : index
    %c0_159 = arith.constant 0 : index
    %c0_160 = arith.constant 0 : index
    %426 = vector.load %arg16[%c0_158, %c0_159, %c0_160] : memref<2x32x128xf32, #tpu.memory_space<vmem>>, vector<1x32x128xf32>
    %427 = vector.shape_cast %426 : vector<1x32x128xf32> to vector<32x128xf32>
    %428 = arith.truncf %425 : vector<16x32xf32> to vector<16x32xbf16>
    %429 = arith.truncf %427 : vector<32x128xf32> to vector<32x128xbf16>
    %cst_161 = arith.constant dense<0.000000e+00> : vector<16x128xf32>
    %430 = tpu.matmul %428, %429, %cst_161 {dimension_numbers = #tpu.dot_dimension_numbers<[1], [0], [0], [1], [0, 0, 1, 1], [], []>} : vector<16x32xbf16>, vector<32x128xbf16>, vector<16x128xf32> -> vector<16x128xf32>
    %c0_162 = arith.constant 0 : index
    %c0_163 = arith.constant 0 : index
    %c0_164 = arith.constant 0 : index
    %431 = vector.load %arg18[%c0_162, %c0_163, %c0_164] : memref<2x1x128xf32, #tpu.memory_space<vmem>>, vector<1x1x128xf32>
    %432 = vector.shape_cast %431 : vector<1x1x128xf32> to vector<1x128xf32>
    %433 = vector.broadcast %432 : vector<1x128xf32> to vector<16x128xf32>
    %434 = arith.addf %430, %433 : vector<16x128xf32>
    %435 = vector.shape_cast %434 : vector<16x128xf32> to vector<2x8x128xf32>
    %c1_165 = arith.constant 1 : index
    %c0_166 = arith.constant 0 : index
    %c0_167 = arith.constant 0 : index
    %436 = vector.load %arg16[%c1_165, %c0_166, %c0_167] : memref<2x32x128xf32, #tpu.memory_space<vmem>>, vector<1x32x128xf32>
    %437 = vector.shape_cast %436 : vector<1x32x128xf32> to vector<32x128xf32>
    %438 = arith.truncf %425 : vector<16x32xf32> to vector<16x32xbf16>
    %439 = arith.truncf %437 : vector<32x128xf32> to vector<32x128xbf16>
    %cst_168 = arith.constant dense<0.000000e+00> : vector<16x128xf32>
    %440 = tpu.matmul %438, %439, %cst_168 {dimension_numbers = #tpu.dot_dimension_numbers<[1], [0], [0], [1], [0, 0, 1, 1], [], []>} : vector<16x32xbf16>, vector<32x128xbf16>, vector<16x128xf32> -> vector<16x128xf32>
    %c1_169 = arith.constant 1 : index
    %c0_170 = arith.constant 0 : index
    %c0_171 = arith.constant 0 : index
    %441 = vector.load %arg18[%c1_169, %c0_170, %c0_171] : memref<2x1x128xf32, #tpu.memory_space<vmem>>, vector<1x1x128xf32>
    %442 = vector.shape_cast %441 : vector<1x1x128xf32> to vector<1x128xf32>
    %443 = vector.broadcast %442 : vector<1x128xf32> to vector<16x128xf32>
    %444 = arith.addf %440, %443 : vector<16x128xf32>
    %445 = vector.shape_cast %444 : vector<16x128xf32> to vector<2x8x128xf32>
    %c0_172 = arith.constant 0 : index
    %c0_173 = arith.constant 0 : index
    %c0_174 = arith.constant 0 : index
    %446 = vector.load %arg17[%c0_172, %c0_173, %c0_174] : memref<2x32x128xf32, #tpu.memory_space<vmem>>, vector<1x32x128xf32>
    %447 = vector.shape_cast %446 : vector<1x32x128xf32> to vector<32x128xf32>
    %c1_175 = arith.constant 1 : index
    %c0_176 = arith.constant 0 : index
    %c0_177 = arith.constant 0 : index
    %448 = vector.load %arg17[%c1_175, %c0_176, %c0_177] : memref<2x32x128xf32, #tpu.memory_space<vmem>>, vector<1x32x128xf32>
    %449 = vector.shape_cast %448 : vector<1x32x128xf32> to vector<32x128xf32>
    %cst_178 = arith.constant 0.000000e+00 : f32
    %450 = vector.broadcast %cst_178 : f32 to vector<2x32xf32>
    %cst_179 = arith.constant 0.000000e+00 : f32
    %451 = vector.broadcast %cst_179 : f32 to vector<2x32xf32>
    %cst_180 = arith.constant 0.000000e+00 : f32
    %452 = vector.broadcast %cst_180 : f32 to vector<2x32xf32>
    %cst_181 = arith.constant 0.000000e+00 : f32
    %453 = vector.broadcast %cst_181 : f32 to vector<2x32xf32>
    %454 = vector.extract_strided_slice %435 {offsets = [0, 0, 0], sizes = [2, 1, 128], strides = [1, 1, 1]} : vector<2x8x128xf32> to vector<2x1x128xf32>
    %455 = vector.shape_cast %454 : vector<2x1x128xf32> to vector<2x128xf32>
    %456 = arith.truncf %450 : vector<2x32xf32> to vector<2x32xbf16>
    %457 = arith.truncf %447 : vector<32x128xf32> to vector<32x128xbf16>
    %cst_182 = arith.constant dense<0.000000e+00> : vector<2x128xf32>
    %458 = tpu.matmul %456, %457, %cst_182 {dimension_numbers = #tpu.dot_dimension_numbers<[1], [0], [0], [1], [0, 0, 1, 1], [], []>} : vector<2x32xbf16>, vector<32x128xbf16>, vector<2x128xf32> -> vector<2x128xf32>
    %459 = arith.addf %455, %458 : vector<2x128xf32>
    %460 = arith.negf %459 : vector<2x128xf32>
    %461 = math.exp %460 : vector<2x128xf32>
    %cst_183 = arith.constant 1.000000e+00 : f32
    %462 = vector.broadcast %cst_183 : f32 to vector<2x128xf32>
    %463 = arith.addf %462, %461 : vector<2x128xf32>
    %464 = arith.divf %462, %463 : vector<2x128xf32>
    %465 = math.tanh %459 : vector<2x128xf32>
    %466 = vector.extract_strided_slice %464 {offsets = [0, 0], sizes = [2, 32], strides = [1, 1]} : vector<2x128xf32> to vector<2x32xf32>
    %467 = vector.extract_strided_slice %464 {offsets = [0, 32], sizes = [2, 32], strides = [1, 1]} : vector<2x128xf32> to vector<2x32xf32>
    %468 = vector.extract_strided_slice %465 {offsets = [0, 64], sizes = [2, 32], strides = [1, 1]} : vector<2x128xf32> to vector<2x32xf32>
    %469 = vector.extract_strided_slice %464 {offsets = [0, 96], sizes = [2, 32], strides = [1, 1]} : vector<2x128xf32> to vector<2x32xf32>
    %470 = arith.mulf %467, %451 : vector<2x32xf32>
    %471 = arith.mulf %466, %468 : vector<2x32xf32>
    %472 = arith.addf %470, %471 : vector<2x32xf32>
    %473 = math.tanh %472 : vector<2x32xf32>
    %474 = arith.mulf %469, %473 : vector<2x32xf32>
    %475 = vector.extract_strided_slice %445 {offsets = [0, 7, 0], sizes = [2, 1, 128], strides = [1, 1, 1]} : vector<2x8x128xf32> to vector<2x1x128xf32>
    %476 = vector.shape_cast %475 : vector<2x1x128xf32> to vector<2x128xf32>
    %477 = arith.truncf %452 : vector<2x32xf32> to vector<2x32xbf16>
    %478 = arith.truncf %449 : vector<32x128xf32> to vector<32x128xbf16>
    %cst_184 = arith.constant dense<0.000000e+00> : vector<2x128xf32>
    %479 = tpu.matmul %477, %478, %cst_184 {dimension_numbers = #tpu.dot_dimension_numbers<[1], [0], [0], [1], [0, 0, 1, 1], [], []>} : vector<2x32xbf16>, vector<32x128xbf16>, vector<2x128xf32> -> vector<2x128xf32>
    %480 = arith.addf %476, %479 : vector<2x128xf32>
    %481 = arith.negf %480 : vector<2x128xf32>
    %482 = math.exp %481 : vector<2x128xf32>
    %cst_185 = arith.constant 1.000000e+00 : f32
    %483 = vector.broadcast %cst_185 : f32 to vector<2x128xf32>
    %484 = arith.addf %483, %482 : vector<2x128xf32>
    %485 = arith.divf %483, %484 : vector<2x128xf32>
    %486 = math.tanh %480 : vector<2x128xf32>
    %487 = vector.extract_strided_slice %485 {offsets = [0, 0], sizes = [2, 32], strides = [1, 1]} : vector<2x128xf32> to vector<2x32xf32>
    %488 = vector.extract_strided_slice %485 {offsets = [0, 32], sizes = [2, 32], strides = [1, 1]} : vector<2x128xf32> to vector<2x32xf32>
    %489 = vector.extract_strided_slice %486 {offsets = [0, 64], sizes = [2, 32], strides = [1, 1]} : vector<2x128xf32> to vector<2x32xf32>
    %490 = vector.extract_strided_slice %485 {offsets = [0, 96], sizes = [2, 32], strides = [1, 1]} : vector<2x128xf32> to vector<2x32xf32>
    %491 = arith.mulf %488, %453 : vector<2x32xf32>
    %492 = arith.mulf %487, %489 : vector<2x32xf32>
    %493 = arith.addf %491, %492 : vector<2x32xf32>
    %494 = math.tanh %493 : vector<2x32xf32>
    %495 = arith.mulf %490, %494 : vector<2x32xf32>
    %496 = vector.extract_strided_slice %435 {offsets = [0, 1, 0], sizes = [2, 1, 128], strides = [1, 1, 1]} : vector<2x8x128xf32> to vector<2x1x128xf32>
    %497 = vector.shape_cast %496 : vector<2x1x128xf32> to vector<2x128xf32>
    %498 = arith.truncf %474 : vector<2x32xf32> to vector<2x32xbf16>
    %499 = arith.truncf %447 : vector<32x128xf32> to vector<32x128xbf16>
    %cst_186 = arith.constant dense<0.000000e+00> : vector<2x128xf32>
    %500 = tpu.matmul %498, %499, %cst_186 {dimension_numbers = #tpu.dot_dimension_numbers<[1], [0], [0], [1], [0, 0, 1, 1], [], []>} : vector<2x32xbf16>, vector<32x128xbf16>, vector<2x128xf32> -> vector<2x128xf32>
    %501 = arith.addf %497, %500 : vector<2x128xf32>
    %502 = arith.negf %501 : vector<2x128xf32>
    %503 = math.exp %502 : vector<2x128xf32>
    %cst_187 = arith.constant 1.000000e+00 : f32
    %504 = vector.broadcast %cst_187 : f32 to vector<2x128xf32>
    %505 = arith.addf %504, %503 : vector<2x128xf32>
    %506 = arith.divf %504, %505 : vector<2x128xf32>
    %507 = math.tanh %501 : vector<2x128xf32>
    %508 = vector.extract_strided_slice %506 {offsets = [0, 0], sizes = [2, 32], strides = [1, 1]} : vector<2x128xf32> to vector<2x32xf32>
    %509 = vector.extract_strided_slice %506 {offsets = [0, 32], sizes = [2, 32], strides = [1, 1]} : vector<2x128xf32> to vector<2x32xf32>
    %510 = vector.extract_strided_slice %507 {offsets = [0, 64], sizes = [2, 32], strides = [1, 1]} : vector<2x128xf32> to vector<2x32xf32>
    %511 = vector.extract_strided_slice %506 {offsets = [0, 96], sizes = [2, 32], strides = [1, 1]} : vector<2x128xf32> to vector<2x32xf32>
    %512 = arith.mulf %509, %472 : vector<2x32xf32>
    %513 = arith.mulf %508, %510 : vector<2x32xf32>
    %514 = arith.addf %512, %513 : vector<2x32xf32>
    %515 = math.tanh %514 : vector<2x32xf32>
    %516 = arith.mulf %511, %515 : vector<2x32xf32>
    %517 = vector.extract_strided_slice %445 {offsets = [0, 6, 0], sizes = [2, 1, 128], strides = [1, 1, 1]} : vector<2x8x128xf32> to vector<2x1x128xf32>
    %518 = vector.shape_cast %517 : vector<2x1x128xf32> to vector<2x128xf32>
    %519 = arith.truncf %495 : vector<2x32xf32> to vector<2x32xbf16>
    %520 = arith.truncf %449 : vector<32x128xf32> to vector<32x128xbf16>
    %cst_188 = arith.constant dense<0.000000e+00> : vector<2x128xf32>
    %521 = tpu.matmul %519, %520, %cst_188 {dimension_numbers = #tpu.dot_dimension_numbers<[1], [0], [0], [1], [0, 0, 1, 1], [], []>} : vector<2x32xbf16>, vector<32x128xbf16>, vector<2x128xf32> -> vector<2x128xf32>
    %522 = arith.addf %518, %521 : vector<2x128xf32>
    %523 = arith.negf %522 : vector<2x128xf32>
    %524 = math.exp %523 : vector<2x128xf32>
    %cst_189 = arith.constant 1.000000e+00 : f32
    %525 = vector.broadcast %cst_189 : f32 to vector<2x128xf32>
    %526 = arith.addf %525, %524 : vector<2x128xf32>
    %527 = arith.divf %525, %526 : vector<2x128xf32>
    %528 = math.tanh %522 : vector<2x128xf32>
    %529 = vector.extract_strided_slice %527 {offsets = [0, 0], sizes = [2, 32], strides = [1, 1]} : vector<2x128xf32> to vector<2x32xf32>
    %530 = vector.extract_strided_slice %527 {offsets = [0, 32], sizes = [2, 32], strides = [1, 1]} : vector<2x128xf32> to vector<2x32xf32>
    %531 = vector.extract_strided_slice %528 {offsets = [0, 64], sizes = [2, 32], strides = [1, 1]} : vector<2x128xf32> to vector<2x32xf32>
    %532 = vector.extract_strided_slice %527 {offsets = [0, 96], sizes = [2, 32], strides = [1, 1]} : vector<2x128xf32> to vector<2x32xf32>
    %533 = arith.mulf %530, %493 : vector<2x32xf32>
    %534 = arith.mulf %529, %531 : vector<2x32xf32>
    %535 = arith.addf %533, %534 : vector<2x32xf32>
    %536 = math.tanh %535 : vector<2x32xf32>
    %537 = arith.mulf %532, %536 : vector<2x32xf32>
    %538 = vector.extract_strided_slice %435 {offsets = [0, 2, 0], sizes = [2, 1, 128], strides = [1, 1, 1]} : vector<2x8x128xf32> to vector<2x1x128xf32>
    %539 = vector.shape_cast %538 : vector<2x1x128xf32> to vector<2x128xf32>
    %540 = arith.truncf %516 : vector<2x32xf32> to vector<2x32xbf16>
    %541 = arith.truncf %447 : vector<32x128xf32> to vector<32x128xbf16>
    %cst_190 = arith.constant dense<0.000000e+00> : vector<2x128xf32>
    %542 = tpu.matmul %540, %541, %cst_190 {dimension_numbers = #tpu.dot_dimension_numbers<[1], [0], [0], [1], [0, 0, 1, 1], [], []>} : vector<2x32xbf16>, vector<32x128xbf16>, vector<2x128xf32> -> vector<2x128xf32>
    %543 = arith.addf %539, %542 : vector<2x128xf32>
    %544 = arith.negf %543 : vector<2x128xf32>
    %545 = math.exp %544 : vector<2x128xf32>
    %cst_191 = arith.constant 1.000000e+00 : f32
    %546 = vector.broadcast %cst_191 : f32 to vector<2x128xf32>
    %547 = arith.addf %546, %545 : vector<2x128xf32>
    %548 = arith.divf %546, %547 : vector<2x128xf32>
    %549 = math.tanh %543 : vector<2x128xf32>
    %550 = vector.extract_strided_slice %548 {offsets = [0, 0], sizes = [2, 32], strides = [1, 1]} : vector<2x128xf32> to vector<2x32xf32>
    %551 = vector.extract_strided_slice %548 {offsets = [0, 32], sizes = [2, 32], strides = [1, 1]} : vector<2x128xf32> to vector<2x32xf32>
    %552 = vector.extract_strided_slice %549 {offsets = [0, 64], sizes = [2, 32], strides = [1, 1]} : vector<2x128xf32> to vector<2x32xf32>
    %553 = vector.extract_strided_slice %548 {offsets = [0, 96], sizes = [2, 32], strides = [1, 1]} : vector<2x128xf32> to vector<2x32xf32>
    %554 = arith.mulf %551, %514 : vector<2x32xf32>
    %555 = arith.mulf %550, %552 : vector<2x32xf32>
    %556 = arith.addf %554, %555 : vector<2x32xf32>
    %557 = math.tanh %556 : vector<2x32xf32>
    %558 = arith.mulf %553, %557 : vector<2x32xf32>
    %559 = vector.extract_strided_slice %445 {offsets = [0, 5, 0], sizes = [2, 1, 128], strides = [1, 1, 1]} : vector<2x8x128xf32> to vector<2x1x128xf32>
    %560 = vector.shape_cast %559 : vector<2x1x128xf32> to vector<2x128xf32>
    %561 = arith.truncf %537 : vector<2x32xf32> to vector<2x32xbf16>
    %562 = arith.truncf %449 : vector<32x128xf32> to vector<32x128xbf16>
    %cst_192 = arith.constant dense<0.000000e+00> : vector<2x128xf32>
    %563 = tpu.matmul %561, %562, %cst_192 {dimension_numbers = #tpu.dot_dimension_numbers<[1], [0], [0], [1], [0, 0, 1, 1], [], []>} : vector<2x32xbf16>, vector<32x128xbf16>, vector<2x128xf32> -> vector<2x128xf32>
    %564 = arith.addf %560, %563 : vector<2x128xf32>
    %565 = arith.negf %564 : vector<2x128xf32>
    %566 = math.exp %565 : vector<2x128xf32>
    %cst_193 = arith.constant 1.000000e+00 : f32
    %567 = vector.broadcast %cst_193 : f32 to vector<2x128xf32>
    %568 = arith.addf %567, %566 : vector<2x128xf32>
    %569 = arith.divf %567, %568 : vector<2x128xf32>
    %570 = math.tanh %564 : vector<2x128xf32>
    %571 = vector.extract_strided_slice %569 {offsets = [0, 0], sizes = [2, 32], strides = [1, 1]} : vector<2x128xf32> to vector<2x32xf32>
    %572 = vector.extract_strided_slice %569 {offsets = [0, 32], sizes = [2, 32], strides = [1, 1]} : vector<2x128xf32> to vector<2x32xf32>
    %573 = vector.extract_strided_slice %570 {offsets = [0, 64], sizes = [2, 32], strides = [1, 1]} : vector<2x128xf32> to vector<2x32xf32>
    %574 = vector.extract_strided_slice %569 {offsets = [0, 96], sizes = [2, 32], strides = [1, 1]} : vector<2x128xf32> to vector<2x32xf32>
    %575 = arith.mulf %572, %535 : vector<2x32xf32>
    %576 = arith.mulf %571, %573 : vector<2x32xf32>
    %577 = arith.addf %575, %576 : vector<2x32xf32>
    %578 = math.tanh %577 : vector<2x32xf32>
    %579 = arith.mulf %574, %578 : vector<2x32xf32>
    %580 = vector.extract_strided_slice %435 {offsets = [0, 3, 0], sizes = [2, 1, 128], strides = [1, 1, 1]} : vector<2x8x128xf32> to vector<2x1x128xf32>
    %581 = vector.shape_cast %580 : vector<2x1x128xf32> to vector<2x128xf32>
    %582 = arith.truncf %558 : vector<2x32xf32> to vector<2x32xbf16>
    %583 = arith.truncf %447 : vector<32x128xf32> to vector<32x128xbf16>
    %cst_194 = arith.constant dense<0.000000e+00> : vector<2x128xf32>
    %584 = tpu.matmul %582, %583, %cst_194 {dimension_numbers = #tpu.dot_dimension_numbers<[1], [0], [0], [1], [0, 0, 1, 1], [], []>} : vector<2x32xbf16>, vector<32x128xbf16>, vector<2x128xf32> -> vector<2x128xf32>
    %585 = arith.addf %581, %584 : vector<2x128xf32>
    %586 = arith.negf %585 : vector<2x128xf32>
    %587 = math.exp %586 : vector<2x128xf32>
    %cst_195 = arith.constant 1.000000e+00 : f32
    %588 = vector.broadcast %cst_195 : f32 to vector<2x128xf32>
    %589 = arith.addf %588, %587 : vector<2x128xf32>
    %590 = arith.divf %588, %589 : vector<2x128xf32>
    %591 = math.tanh %585 : vector<2x128xf32>
    %592 = vector.extract_strided_slice %590 {offsets = [0, 0], sizes = [2, 32], strides = [1, 1]} : vector<2x128xf32> to vector<2x32xf32>
    %593 = vector.extract_strided_slice %590 {offsets = [0, 32], sizes = [2, 32], strides = [1, 1]} : vector<2x128xf32> to vector<2x32xf32>
    %594 = vector.extract_strided_slice %591 {offsets = [0, 64], sizes = [2, 32], strides = [1, 1]} : vector<2x128xf32> to vector<2x32xf32>
    %595 = vector.extract_strided_slice %590 {offsets = [0, 96], sizes = [2, 32], strides = [1, 1]} : vector<2x128xf32> to vector<2x32xf32>
    %596 = arith.mulf %593, %556 : vector<2x32xf32>
    %597 = arith.mulf %592, %594 : vector<2x32xf32>
    %598 = arith.addf %596, %597 : vector<2x32xf32>
    %599 = math.tanh %598 : vector<2x32xf32>
    %600 = arith.mulf %595, %599 : vector<2x32xf32>
    %601 = vector.extract_strided_slice %445 {offsets = [0, 4, 0], sizes = [2, 1, 128], strides = [1, 1, 1]} : vector<2x8x128xf32> to vector<2x1x128xf32>
    %602 = vector.shape_cast %601 : vector<2x1x128xf32> to vector<2x128xf32>
    %603 = arith.truncf %579 : vector<2x32xf32> to vector<2x32xbf16>
    %604 = arith.truncf %449 : vector<32x128xf32> to vector<32x128xbf16>
    %cst_196 = arith.constant dense<0.000000e+00> : vector<2x128xf32>
    %605 = tpu.matmul %603, %604, %cst_196 {dimension_numbers = #tpu.dot_dimension_numbers<[1], [0], [0], [1], [0, 0, 1, 1], [], []>} : vector<2x32xbf16>, vector<32x128xbf16>, vector<2x128xf32> -> vector<2x128xf32>
    %606 = arith.addf %602, %605 : vector<2x128xf32>
    %607 = arith.negf %606 : vector<2x128xf32>
    %608 = math.exp %607 : vector<2x128xf32>
    %cst_197 = arith.constant 1.000000e+00 : f32
    %609 = vector.broadcast %cst_197 : f32 to vector<2x128xf32>
    %610 = arith.addf %609, %608 : vector<2x128xf32>
    %611 = arith.divf %609, %610 : vector<2x128xf32>
    %612 = math.tanh %606 : vector<2x128xf32>
    %613 = vector.extract_strided_slice %611 {offsets = [0, 0], sizes = [2, 32], strides = [1, 1]} : vector<2x128xf32> to vector<2x32xf32>
    %614 = vector.extract_strided_slice %611 {offsets = [0, 32], sizes = [2, 32], strides = [1, 1]} : vector<2x128xf32> to vector<2x32xf32>
    %615 = vector.extract_strided_slice %612 {offsets = [0, 64], sizes = [2, 32], strides = [1, 1]} : vector<2x128xf32> to vector<2x32xf32>
    %616 = vector.extract_strided_slice %611 {offsets = [0, 96], sizes = [2, 32], strides = [1, 1]} : vector<2x128xf32> to vector<2x32xf32>
    %617 = arith.mulf %614, %577 : vector<2x32xf32>
    %618 = arith.mulf %613, %615 : vector<2x32xf32>
    %619 = arith.addf %617, %618 : vector<2x32xf32>
    %620 = math.tanh %619 : vector<2x32xf32>
    %621 = arith.mulf %616, %620 : vector<2x32xf32>
    %622 = vector.extract_strided_slice %435 {offsets = [0, 4, 0], sizes = [2, 1, 128], strides = [1, 1, 1]} : vector<2x8x128xf32> to vector<2x1x128xf32>
    %623 = vector.shape_cast %622 : vector<2x1x128xf32> to vector<2x128xf32>
    %624 = arith.truncf %600 : vector<2x32xf32> to vector<2x32xbf16>
    %625 = arith.truncf %447 : vector<32x128xf32> to vector<32x128xbf16>
    %cst_198 = arith.constant dense<0.000000e+00> : vector<2x128xf32>
    %626 = tpu.matmul %624, %625, %cst_198 {dimension_numbers = #tpu.dot_dimension_numbers<[1], [0], [0], [1], [0, 0, 1, 1], [], []>} : vector<2x32xbf16>, vector<32x128xbf16>, vector<2x128xf32> -> vector<2x128xf32>
    %627 = arith.addf %623, %626 : vector<2x128xf32>
    %628 = arith.negf %627 : vector<2x128xf32>
    %629 = math.exp %628 : vector<2x128xf32>
    %cst_199 = arith.constant 1.000000e+00 : f32
    %630 = vector.broadcast %cst_199 : f32 to vector<2x128xf32>
    %631 = arith.addf %630, %629 : vector<2x128xf32>
    %632 = arith.divf %630, %631 : vector<2x128xf32>
    %633 = math.tanh %627 : vector<2x128xf32>
    %634 = vector.extract_strided_slice %632 {offsets = [0, 0], sizes = [2, 32], strides = [1, 1]} : vector<2x128xf32> to vector<2x32xf32>
    %635 = vector.extract_strided_slice %632 {offsets = [0, 32], sizes = [2, 32], strides = [1, 1]} : vector<2x128xf32> to vector<2x32xf32>
    %636 = vector.extract_strided_slice %633 {offsets = [0, 64], sizes = [2, 32], strides = [1, 1]} : vector<2x128xf32> to vector<2x32xf32>
    %637 = vector.extract_strided_slice %632 {offsets = [0, 96], sizes = [2, 32], strides = [1, 1]} : vector<2x128xf32> to vector<2x32xf32>
    %638 = arith.mulf %635, %598 : vector<2x32xf32>
    %639 = arith.mulf %634, %636 : vector<2x32xf32>
    %640 = arith.addf %638, %639 : vector<2x32xf32>
    %641 = math.tanh %640 : vector<2x32xf32>
    %642 = arith.mulf %637, %641 : vector<2x32xf32>
    %643 = vector.extract_strided_slice %445 {offsets = [0, 3, 0], sizes = [2, 1, 128], strides = [1, 1, 1]} : vector<2x8x128xf32> to vector<2x1x128xf32>
    %644 = vector.shape_cast %643 : vector<2x1x128xf32> to vector<2x128xf32>
    %645 = arith.truncf %621 : vector<2x32xf32> to vector<2x32xbf16>
    %646 = arith.truncf %449 : vector<32x128xf32> to vector<32x128xbf16>
    %cst_200 = arith.constant dense<0.000000e+00> : vector<2x128xf32>
    %647 = tpu.matmul %645, %646, %cst_200 {dimension_numbers = #tpu.dot_dimension_numbers<[1], [0], [0], [1], [0, 0, 1, 1], [], []>} : vector<2x32xbf16>, vector<32x128xbf16>, vector<2x128xf32> -> vector<2x128xf32>
    %648 = arith.addf %644, %647 : vector<2x128xf32>
    %649 = arith.negf %648 : vector<2x128xf32>
    %650 = math.exp %649 : vector<2x128xf32>
    %cst_201 = arith.constant 1.000000e+00 : f32
    %651 = vector.broadcast %cst_201 : f32 to vector<2x128xf32>
    %652 = arith.addf %651, %650 : vector<2x128xf32>
    %653 = arith.divf %651, %652 : vector<2x128xf32>
    %654 = math.tanh %648 : vector<2x128xf32>
    %655 = vector.extract_strided_slice %653 {offsets = [0, 0], sizes = [2, 32], strides = [1, 1]} : vector<2x128xf32> to vector<2x32xf32>
    %656 = vector.extract_strided_slice %653 {offsets = [0, 32], sizes = [2, 32], strides = [1, 1]} : vector<2x128xf32> to vector<2x32xf32>
    %657 = vector.extract_strided_slice %654 {offsets = [0, 64], sizes = [2, 32], strides = [1, 1]} : vector<2x128xf32> to vector<2x32xf32>
    %658 = vector.extract_strided_slice %653 {offsets = [0, 96], sizes = [2, 32], strides = [1, 1]} : vector<2x128xf32> to vector<2x32xf32>
    %659 = arith.mulf %656, %619 : vector<2x32xf32>
    %660 = arith.mulf %655, %657 : vector<2x32xf32>
    %661 = arith.addf %659, %660 : vector<2x32xf32>
    %662 = math.tanh %661 : vector<2x32xf32>
    %663 = arith.mulf %658, %662 : vector<2x32xf32>
    %664 = vector.extract_strided_slice %435 {offsets = [0, 5, 0], sizes = [2, 1, 128], strides = [1, 1, 1]} : vector<2x8x128xf32> to vector<2x1x128xf32>
    %665 = vector.shape_cast %664 : vector<2x1x128xf32> to vector<2x128xf32>
    %666 = arith.truncf %642 : vector<2x32xf32> to vector<2x32xbf16>
    %667 = arith.truncf %447 : vector<32x128xf32> to vector<32x128xbf16>
    %cst_202 = arith.constant dense<0.000000e+00> : vector<2x128xf32>
    %668 = tpu.matmul %666, %667, %cst_202 {dimension_numbers = #tpu.dot_dimension_numbers<[1], [0], [0], [1], [0, 0, 1, 1], [], []>} : vector<2x32xbf16>, vector<32x128xbf16>, vector<2x128xf32> -> vector<2x128xf32>
    %669 = arith.addf %665, %668 : vector<2x128xf32>
    %670 = arith.negf %669 : vector<2x128xf32>
    %671 = math.exp %670 : vector<2x128xf32>
    %cst_203 = arith.constant 1.000000e+00 : f32
    %672 = vector.broadcast %cst_203 : f32 to vector<2x128xf32>
    %673 = arith.addf %672, %671 : vector<2x128xf32>
    %674 = arith.divf %672, %673 : vector<2x128xf32>
    %675 = math.tanh %669 : vector<2x128xf32>
    %676 = vector.extract_strided_slice %674 {offsets = [0, 0], sizes = [2, 32], strides = [1, 1]} : vector<2x128xf32> to vector<2x32xf32>
    %677 = vector.extract_strided_slice %674 {offsets = [0, 32], sizes = [2, 32], strides = [1, 1]} : vector<2x128xf32> to vector<2x32xf32>
    %678 = vector.extract_strided_slice %675 {offsets = [0, 64], sizes = [2, 32], strides = [1, 1]} : vector<2x128xf32> to vector<2x32xf32>
    %679 = vector.extract_strided_slice %674 {offsets = [0, 96], sizes = [2, 32], strides = [1, 1]} : vector<2x128xf32> to vector<2x32xf32>
    %680 = arith.mulf %677, %640 : vector<2x32xf32>
    %681 = arith.mulf %676, %678 : vector<2x32xf32>
    %682 = arith.addf %680, %681 : vector<2x32xf32>
    %683 = math.tanh %682 : vector<2x32xf32>
    %684 = arith.mulf %679, %683 : vector<2x32xf32>
    %685 = vector.extract_strided_slice %445 {offsets = [0, 2, 0], sizes = [2, 1, 128], strides = [1, 1, 1]} : vector<2x8x128xf32> to vector<2x1x128xf32>
    %686 = vector.shape_cast %685 : vector<2x1x128xf32> to vector<2x128xf32>
    %687 = arith.truncf %663 : vector<2x32xf32> to vector<2x32xbf16>
    %688 = arith.truncf %449 : vector<32x128xf32> to vector<32x128xbf16>
    %cst_204 = arith.constant dense<0.000000e+00> : vector<2x128xf32>
    %689 = tpu.matmul %687, %688, %cst_204 {dimension_numbers = #tpu.dot_dimension_numbers<[1], [0], [0], [1], [0, 0, 1, 1], [], []>} : vector<2x32xbf16>, vector<32x128xbf16>, vector<2x128xf32> -> vector<2x128xf32>
    %690 = arith.addf %686, %689 : vector<2x128xf32>
    %691 = arith.negf %690 : vector<2x128xf32>
    %692 = math.exp %691 : vector<2x128xf32>
    %cst_205 = arith.constant 1.000000e+00 : f32
    %693 = vector.broadcast %cst_205 : f32 to vector<2x128xf32>
    %694 = arith.addf %693, %692 : vector<2x128xf32>
    %695 = arith.divf %693, %694 : vector<2x128xf32>
    %696 = math.tanh %690 : vector<2x128xf32>
    %697 = vector.extract_strided_slice %695 {offsets = [0, 0], sizes = [2, 32], strides = [1, 1]} : vector<2x128xf32> to vector<2x32xf32>
    %698 = vector.extract_strided_slice %695 {offsets = [0, 32], sizes = [2, 32], strides = [1, 1]} : vector<2x128xf32> to vector<2x32xf32>
    %699 = vector.extract_strided_slice %696 {offsets = [0, 64], sizes = [2, 32], strides = [1, 1]} : vector<2x128xf32> to vector<2x32xf32>
    %700 = vector.extract_strided_slice %695 {offsets = [0, 96], sizes = [2, 32], strides = [1, 1]} : vector<2x128xf32> to vector<2x32xf32>
    %701 = arith.mulf %698, %661 : vector<2x32xf32>
    %702 = arith.mulf %697, %699 : vector<2x32xf32>
    %703 = arith.addf %701, %702 : vector<2x32xf32>
    %704 = math.tanh %703 : vector<2x32xf32>
    %705 = arith.mulf %700, %704 : vector<2x32xf32>
    %706 = vector.extract_strided_slice %435 {offsets = [0, 6, 0], sizes = [2, 1, 128], strides = [1, 1, 1]} : vector<2x8x128xf32> to vector<2x1x128xf32>
    %707 = vector.shape_cast %706 : vector<2x1x128xf32> to vector<2x128xf32>
    %708 = arith.truncf %684 : vector<2x32xf32> to vector<2x32xbf16>
    %709 = arith.truncf %447 : vector<32x128xf32> to vector<32x128xbf16>
    %cst_206 = arith.constant dense<0.000000e+00> : vector<2x128xf32>
    %710 = tpu.matmul %708, %709, %cst_206 {dimension_numbers = #tpu.dot_dimension_numbers<[1], [0], [0], [1], [0, 0, 1, 1], [], []>} : vector<2x32xbf16>, vector<32x128xbf16>, vector<2x128xf32> -> vector<2x128xf32>
    %711 = arith.addf %707, %710 : vector<2x128xf32>
    %712 = arith.negf %711 : vector<2x128xf32>
    %713 = math.exp %712 : vector<2x128xf32>
    %cst_207 = arith.constant 1.000000e+00 : f32
    %714 = vector.broadcast %cst_207 : f32 to vector<2x128xf32>
    %715 = arith.addf %714, %713 : vector<2x128xf32>
    %716 = arith.divf %714, %715 : vector<2x128xf32>
    %717 = math.tanh %711 : vector<2x128xf32>
    %718 = vector.extract_strided_slice %716 {offsets = [0, 0], sizes = [2, 32], strides = [1, 1]} : vector<2x128xf32> to vector<2x32xf32>
    %719 = vector.extract_strided_slice %716 {offsets = [0, 32], sizes = [2, 32], strides = [1, 1]} : vector<2x128xf32> to vector<2x32xf32>
    %720 = vector.extract_strided_slice %717 {offsets = [0, 64], sizes = [2, 32], strides = [1, 1]} : vector<2x128xf32> to vector<2x32xf32>
    %721 = vector.extract_strided_slice %716 {offsets = [0, 96], sizes = [2, 32], strides = [1, 1]} : vector<2x128xf32> to vector<2x32xf32>
    %722 = arith.mulf %719, %682 : vector<2x32xf32>
    %723 = arith.mulf %718, %720 : vector<2x32xf32>
    %724 = arith.addf %722, %723 : vector<2x32xf32>
    %725 = math.tanh %724 : vector<2x32xf32>
    %726 = arith.mulf %721, %725 : vector<2x32xf32>
    %727 = vector.extract_strided_slice %445 {offsets = [0, 1, 0], sizes = [2, 1, 128], strides = [1, 1, 1]} : vector<2x8x128xf32> to vector<2x1x128xf32>
    %728 = vector.shape_cast %727 : vector<2x1x128xf32> to vector<2x128xf32>
    %729 = arith.truncf %705 : vector<2x32xf32> to vector<2x32xbf16>
    %730 = arith.truncf %449 : vector<32x128xf32> to vector<32x128xbf16>
    %cst_208 = arith.constant dense<0.000000e+00> : vector<2x128xf32>
    %731 = tpu.matmul %729, %730, %cst_208 {dimension_numbers = #tpu.dot_dimension_numbers<[1], [0], [0], [1], [0, 0, 1, 1], [], []>} : vector<2x32xbf16>, vector<32x128xbf16>, vector<2x128xf32> -> vector<2x128xf32>
    %732 = arith.addf %728, %731 : vector<2x128xf32>
    %733 = arith.negf %732 : vector<2x128xf32>
    %734 = math.exp %733 : vector<2x128xf32>
    %cst_209 = arith.constant 1.000000e+00 : f32
    %735 = vector.broadcast %cst_209 : f32 to vector<2x128xf32>
    %736 = arith.addf %735, %734 : vector<2x128xf32>
    %737 = arith.divf %735, %736 : vector<2x128xf32>
    %738 = math.tanh %732 : vector<2x128xf32>
    %739 = vector.extract_strided_slice %737 {offsets = [0, 0], sizes = [2, 32], strides = [1, 1]} : vector<2x128xf32> to vector<2x32xf32>
    %740 = vector.extract_strided_slice %737 {offsets = [0, 32], sizes = [2, 32], strides = [1, 1]} : vector<2x128xf32> to vector<2x32xf32>
    %741 = vector.extract_strided_slice %738 {offsets = [0, 64], sizes = [2, 32], strides = [1, 1]} : vector<2x128xf32> to vector<2x32xf32>
    %742 = vector.extract_strided_slice %737 {offsets = [0, 96], sizes = [2, 32], strides = [1, 1]} : vector<2x128xf32> to vector<2x32xf32>
    %743 = arith.mulf %740, %703 : vector<2x32xf32>
    %744 = arith.mulf %739, %741 : vector<2x32xf32>
    %745 = arith.addf %743, %744 : vector<2x32xf32>
    %746 = math.tanh %745 : vector<2x32xf32>
    %747 = arith.mulf %742, %746 : vector<2x32xf32>
    %748 = vector.extract_strided_slice %435 {offsets = [0, 7, 0], sizes = [2, 1, 128], strides = [1, 1, 1]} : vector<2x8x128xf32> to vector<2x1x128xf32>
    %749 = vector.shape_cast %748 : vector<2x1x128xf32> to vector<2x128xf32>
    %750 = arith.truncf %726 : vector<2x32xf32> to vector<2x32xbf16>
    %751 = arith.truncf %447 : vector<32x128xf32> to vector<32x128xbf16>
    %cst_210 = arith.constant dense<0.000000e+00> : vector<2x128xf32>
    %752 = tpu.matmul %750, %751, %cst_210 {dimension_numbers = #tpu.dot_dimension_numbers<[1], [0], [0], [1], [0, 0, 1, 1], [], []>} : vector<2x32xbf16>, vector<32x128xbf16>, vector<2x128xf32> -> vector<2x128xf32>
    %753 = arith.addf %749, %752 : vector<2x128xf32>
    %754 = arith.negf %753 : vector<2x128xf32>
    %755 = math.exp %754 : vector<2x128xf32>
    %cst_211 = arith.constant 1.000000e+00 : f32
    %756 = vector.broadcast %cst_211 : f32 to vector<2x128xf32>
    %757 = arith.addf %756, %755 : vector<2x128xf32>
    %758 = arith.divf %756, %757 : vector<2x128xf32>
    %759 = math.tanh %753 : vector<2x128xf32>
    %760 = vector.extract_strided_slice %758 {offsets = [0, 0], sizes = [2, 32], strides = [1, 1]} : vector<2x128xf32> to vector<2x32xf32>
    %761 = vector.extract_strided_slice %758 {offsets = [0, 32], sizes = [2, 32], strides = [1, 1]} : vector<2x128xf32> to vector<2x32xf32>
    %762 = vector.extract_strided_slice %759 {offsets = [0, 64], sizes = [2, 32], strides = [1, 1]} : vector<2x128xf32> to vector<2x32xf32>
    %763 = vector.extract_strided_slice %758 {offsets = [0, 96], sizes = [2, 32], strides = [1, 1]} : vector<2x128xf32> to vector<2x32xf32>
    %764 = arith.mulf %761, %724 : vector<2x32xf32>
    %765 = arith.mulf %760, %762 : vector<2x32xf32>
    %766 = arith.addf %764, %765 : vector<2x32xf32>
    %767 = math.tanh %766 : vector<2x32xf32>
    %768 = arith.mulf %763, %767 : vector<2x32xf32>
    %769 = vector.extract_strided_slice %445 {offsets = [0, 0, 0], sizes = [2, 1, 128], strides = [1, 1, 1]} : vector<2x8x128xf32> to vector<2x1x128xf32>
    %770 = vector.shape_cast %769 : vector<2x1x128xf32> to vector<2x128xf32>
    %771 = arith.truncf %747 : vector<2x32xf32> to vector<2x32xbf16>
    %772 = arith.truncf %449 : vector<32x128xf32> to vector<32x128xbf16>
    %cst_212 = arith.constant dense<0.000000e+00> : vector<2x128xf32>
    %773 = tpu.matmul %771, %772, %cst_212 {dimension_numbers = #tpu.dot_dimension_numbers<[1], [0], [0], [1], [0, 0, 1, 1], [], []>} : vector<2x32xbf16>, vector<32x128xbf16>, vector<2x128xf32> -> vector<2x128xf32>
    %774 = arith.addf %770, %773 : vector<2x128xf32>
    %775 = arith.negf %774 : vector<2x128xf32>
    %776 = math.exp %775 : vector<2x128xf32>
    %cst_213 = arith.constant 1.000000e+00 : f32
    %777 = vector.broadcast %cst_213 : f32 to vector<2x128xf32>
    %778 = arith.addf %777, %776 : vector<2x128xf32>
    %779 = arith.divf %777, %778 : vector<2x128xf32>
    %780 = math.tanh %774 : vector<2x128xf32>
    %781 = vector.extract_strided_slice %779 {offsets = [0, 0], sizes = [2, 32], strides = [1, 1]} : vector<2x128xf32> to vector<2x32xf32>
    %782 = vector.extract_strided_slice %779 {offsets = [0, 32], sizes = [2, 32], strides = [1, 1]} : vector<2x128xf32> to vector<2x32xf32>
    %783 = vector.extract_strided_slice %780 {offsets = [0, 64], sizes = [2, 32], strides = [1, 1]} : vector<2x128xf32> to vector<2x32xf32>
    %784 = vector.extract_strided_slice %779 {offsets = [0, 96], sizes = [2, 32], strides = [1, 1]} : vector<2x128xf32> to vector<2x32xf32>
    %785 = arith.mulf %782, %745 : vector<2x32xf32>
    %786 = arith.mulf %781, %783 : vector<2x32xf32>
    %787 = arith.addf %785, %786 : vector<2x32xf32>
    %788 = math.tanh %787 : vector<2x32xf32>
    %789 = arith.mulf %784, %788 : vector<2x32xf32>
    %790 = tpu.concatenate %768, %789 in 1 : vector<2x32xf32>, vector<2x32xf32> -> vector<2x64xf32>
    %c0_214 = arith.constant 0 : index
    %c0_215 = arith.constant 0 : index
    %791 = vector.load %arg19[%c0_214, %c0_215] : memref<64x2xf32, #tpu.memory_space<vmem>>, vector<64x2xf32>
    %792 = arith.truncf %790 : vector<2x64xf32> to vector<2x64xbf16>
    %793 = arith.truncf %791 : vector<64x2xf32> to vector<64x2xbf16>
    %cst_216 = arith.constant dense<0.000000e+00> : vector<2x2xf32>
    %794 = tpu.matmul %792, %793, %cst_216 {dimension_numbers = #tpu.dot_dimension_numbers<[1], [0], [0], [1], [0, 0, 1, 1], [], []>} : vector<2x64xbf16>, vector<64x2xbf16>, vector<2x2xf32> -> vector<2x2xf32>
    %c0_217 = arith.constant 0 : index
    %c0_218 = arith.constant 0 : index
    %795 = vector.load %arg20[%c0_217, %c0_218] : memref<1x2xf32, #tpu.memory_space<vmem>>, vector<1x2xf32>
    %796 = vector.broadcast %795 : vector<1x2xf32> to vector<2x2xf32>
    %797 = arith.addf %794, %796 : vector<2x2xf32>
    %c0_219 = arith.constant 0 : index
    %c0_220 = arith.constant 0 : index
    %798 = vector.load %arg21[%c0_219, %c0_220] : memref<2x2xf32, #tpu.memory_space<vmem>>, vector<2x2xf32>
    tpu.vector_store %arg21[%c0_219, %c0_220], %797 {strides = array<i32>} : memref<2x2xf32, #tpu.memory_space<vmem>>, vector<2x2xf32>,
    return
  }
}

</mosaic_0001>

<bundles_post_ra>
// kernel: forward.1
= control target key start
LH: loop header
LB: loop body
LE: loop exit
PB: predicated region body
PF: predicated region fallthrough
CT: control target
= control target key end

     0   :  { %s5453_s0 = inlined_call_operand.vmem [shape: f32[16,32], index: 0, kind: input, shape index: {}]   ;;  %s5454_s1 = inlined_call_operand.vmem [shape: f32[2,8], index: 1, kind: input, shape index: {}]   ;;  %s5455_s2 = inlined_call_operand.vmem [shape: f32[1,32], index: 2, kind: input, shape index: {}]   ;;  %s5456_s3 = inlined_call_operand.vmem [shape: f32[1,32], index: 3, kind: input, shape index: {}]   ;;  %s5457_s4 = inlined_call_operand.vmem [shape: f32[2,32,96], index: 4, kind: input, shape index: {}]   ;;  %s5458_s5 = inlined_call_operand.vmem [shape: f32[2,1,96], index: 5, kind: input, shape index: {}]   ;;  %s5459_s6 = inlined_call_operand.vmem [shape: f32[2,32,32], index: 6, kind: input, shape index: {}]   ;;  %s5460_s7 = inlined_call_operand.vmem [shape: f32[2,1,32], index: 7, kind: input, shape index: {}]   ;;  %s5461_s8 = inlined_call_operand.vmem [shape: f32[2,1,32], index: 8, kind: input, shape index: {}]   ;;  %s5462_s9 = inlined_call_operand.vmem [shape: f32[2,1,32], index: 9, kind: input, shape index: {}]   ;;  %s5463_s10 = inlined_call_operand.vmem [shape: f32[2,32,64], index: 10, kind: input, shape index: {}]   ;;  %s5464_s11 = inlined_call_operand.vmem [shape: f32[2,1,64], index: 11, kind: input, shape index: {}]   ;;  %s5465_s12 = inlined_call_operand.vmem [shape: f32[2,64,32], index: 12, kind: input, shape index: {}]   ;;  %s5466_s13 = inlined_call_operand.vmem [shape: f32[2,1,32], index: 13, kind: input, shape index: {}]   ;;  %s5467_s14 = inlined_call_operand.vmem [shape: f32[2,1,32], index: 14, kind: input, shape index: {}]   ;;  %s5468_s15 = inlined_call_operand.vmem [shape: f32[2,1,32], index: 15, kind: input, shape index: {}]   ;;  %s5469_s16 = inlined_call_operand.vmem [shape: f32[2,32,128], index: 16, kind: input, shape index: {}]   ;;  %s5470_s17 = inlined_call_operand.vmem [shape: f32[2,32,128], index: 17, kind: input, shape index: {}]   ;;  %s5471_s18 = inlined_call_operand.vmem [shape: f32[2,1,128], index: 18, kind: input, shape index: {}]   ;;  %s5472_s19 = inlined_call_operand.vmem [shape: f32[64,2], index: 19, kind: input, shape index: {}]   ;;  %s5473_s20 = inlined_call_operand.vmem [shape: f32[1,2], index: 20, kind: input, shape index: {}]   ;;  %s5474_s21 = inlined_call_operand.hbm [shape: f32[2,2], index: 21, kind: output, shape index: {}]  }
   0x1   :  { %5495 = sst [smem:[#allocation5_spill]] %s5453_s0 }
   0x2   :  { %5496 = sst [smem:[#allocation6_spill]] %s5454_s1 }
   0x3   :  { %5497 = sst [smem:[#allocation7_spill]] %s5455_s2 }
   0x4   :  { %5498 = sst [smem:[#allocation8_spill]] %s5456_s3 }
   0x5   :  { %5499 = sst [smem:[#allocation9_spill]] %s5457_s4 }
   0x6   :  { %5500 = sst [smem:[#allocation10_spill]] %s5458_s5 }
   0x7   :  { %s5501_s26 = sld [smem:[#allocation5_spill]]  ;;  %vm74_vm0 = vcmask 261120  }
   0xd   :  { %v70_v0 = vld [vmem:[%s5501_s26] sm:$0xff]  ;;  %v71_v1 = vld [vmem:[%s5501_s26 + $0x8] sm:$0xff] }
   0xe   :  { %v75_v2 = vsel %vm74_vm0, %v70_v0, 0.0  ;;  %v78_v3 = vsel %vm74_vm0, %v71_v1, 0.0 }
   0xf   :  { %76 = vadd.xlane.f32.xlu0 %v75_v2 }
  0x10   :  { %26 = vsyncpa [#allocation3], 0  ;;  %v4354_v4 = vmov 32.0   ;;  %s5502_s0 = sld [smem:[#allocation9_spill]]  ;;  %s5482_s30 = smov 64   ;;  %vm168_vm8 = vcmask 64512  }
  0x11   :  { %3978 = vrcp.f32 %v4354_v4  ;;  %s5503_s25 = sld [smem:[#allocation7_spill]]  ;;  %s4356_s5 = smov 96   ;;  %vm732_vm9 = vcmask 130048   ;;  %vm735_vm10 = vcmask 195584  }
  0x12   :  { %s5504_s3 = sld [smem:[#allocation8_spill]]  ;;  %s4357_s22 = smov 88  }
  0x13   :  { %s5505_s4 = sld [smem:[#allocation10_spill]]  ;;  %s5493_s23 = smov 112  }
  0x14   :  { %s5490_s1 = smov 120   ;;  %s5484_s24 = smov 104  }
  0x15   :  { %s5487_s2 = smov 72   ;;  %s5478_s28 = smov 56  }
  0x16   :  { %v139_v21 = vld [vmem:[%s5502_s0 + $0x10] sm:$0xff]  ;;  %v140_v22 = vld [vmem:[%s5502_s0 + $0x18] sm:$0xff]  ;;  %v137_v24 = vld [vmem:[%s5502_s0] sm:$0xff]  ;;  %s5481_s29 = smov 48   ;;  %s5479_s26 = smov 40  }
  0x17   :  { %79 = vadd.xlane.f32.xlu0 %v78_v3  ;;  %v3979_v5 = vpop.eup %3978  ;;  %v143_v23 = vpack.c.bf16 %v140_v22, %v139_v21  ;;  %v138_v25 = vld [vmem:[%s5502_s0 + $0x8] sm:$0xff]  ;;  %v3957_v46 = vld [vmem:[%s5503_s25] ss:$0 sm:$0xff]  ;;  %s4362_s25 = smov 80   ;;  %s5486_s27 = smov 8  }
  0x18   :  { %v82_v6 = vmul.f32 32.0, %v3979_v5  ;;  %vm86_vm1 = vweird.f32 %v3979_v5  ;;  %v142_v27 = vpack.c.bf16 %v138_v25, %v137_v24  ;;  %v3958_v51 = vld [vmem:[%s5504_s3] ss:$0 sm:$0xff]  ;;  %s5506_s3 = sld [smem:[#allocation6_spill]] }
  0x19   :  { %157 = vmatpush.bf16.msra.mxu0 %v143_v23  ;;  %v3959_v56 = vld [vmem:[%s5505_s4] ss:$0 sm:$0xff] }
  0x1a   :  { %v83_v7 = vsub.f32 1.0, %v82_v6 }
  0x1c   :  { %v84_v8 = vmul.f32 %v3979_v5, %v83_v7 }
  0x1d   :  { %158 = vmatpush.bf16.msra.mxu0 %v142_v27 }
  0x1e   :  { %v85_v9 = vadd.f32 %v3979_v5, %v84_v8  ;;  %v136_v6 = vld [vmem:[%s5506_s3] sm:$0x3]  ;;  %s5489_s3 = smov 16  }
  0x1f   :  { %v4567_v7 = vperm.slane %v136_v6, 0  ;;  %v223_v24 = vrot.slane %v136_v6, 1 }
  0x20   :  { %v4490_v10 = vsel %vm86_vm1, %v3979_v5, %v85_v9 }
  0x21   :  { %v4584_v27 = vperm.slane %v223_v24, 0 }
  0x82   :  { %v77_v11 = vpop.xlane.xlu0 %76 }
  0x83   :  { %v88_v12 = vmul.f32 %v4490_v10, %v77_v11 }
  0x85   :  { %v90_v13 = vsub.f32 %v70_v0, %v88_v12 }
  0x87   :  { %v92_v14 = vmul.f32 %v90_v13, %v90_v13 }
  0x89   :  { %v94_v15 = vsel %vm74_vm0, %v92_v14, 0.0 }
  0x8a   :  { %95 = vadd.xlane.f32.xlu1 %v94_v15  ;;  %v80_v16 = vpop.xlane.xlu0 %79 }
  0x8b   :  { %v89_v17 = vmul.f32 %v4490_v10, %v80_v16 }
  0x8d   :  { %v91_v18 = vsub.f32 %v71_v1, %v89_v17 }
  0x8f   :  { %v93_v19 = vmul.f32 %v91_v18, %v91_v18 }
  0x91   :  { %v97_v20 = vsel %vm74_vm0, %v93_v19, 0.0 }
  0x92   :  { %98 = vadd.xlane.f32.xlu1 %v97_v20 }
  0xfd   :  { %v96_v26 = vpop.xlane.xlu1 %95 }
  0xfe   :  { %v100_v28 = vmul.f32 %v96_v26, %v4490_v10 }
 0x100   :  { %v102_v29 = vadd.f32 1e-05, %v100_v28 }
 0x102   :  { %3980 = vrsqrt.f32 %v102_v29  ;;  %vm110_vm3 = vweird.f32 %v102_v29 }
 0x105   :  { %v99_v30 = vpop.xlane.xlu1 %98 }
 0x106   :  { %v101_v31 = vmul.f32 %v99_v30, %v4490_v10 }
 0x108   :  { %v3981_v32 = vpop.eup %3980  ;;  %v103_v33 = vadd.f32 1e-05, %v101_v31 }
 0x109   :  { %v105_v34 = vmul.f32 %v3981_v32, %v102_v29  ;;  %vm111_vm2 = vweird.f32 %v3981_v32 }
 0x10a   :  { %3982 = vrsqrt.f32 %v103_v33  ;;  %vm112_vm4 = vmor %vm110_vm3, %vm111_vm2  ;;  %vm120_vm6 = vweird.f32 %v103_v33  ;;  %vm887_vm2 = vcmask 523264  }
 0x10b   :  { %v106_v35 = vmul.f32 %v3981_v32, %v105_v34 }
 0x10d   :  { %v107_v36 = vmul.f32 0.5, %v106_v35 }
 0x10f   :  { %v108_v37 = vsub.f32 1.5, %v107_v36 }
 0x110   :  { %v3983_v38 = vpop.eup %3982 }
 0x111   :  { %v109_v39 = vmul.f32 %v3981_v32, %v108_v37  ;;  %v115_v40 = vmul.f32 %v3983_v38, %v103_v33  ;;  %vm121_vm5 = vweird.f32 %v3983_v38 }
 0x112   :  { %vm122_vm7 = vmor %vm120_vm6, %vm121_vm5 }
 0x113   :  { %v116_v41 = vmul.f32 %v3983_v38, %v115_v40  ;;  %v113_v42 = vsel %vm112_vm4, %v3981_v32, %v109_v39 }
 0x114   :  { %v124_v45 = vmul.f32 %v113_v42, %v90_v13 }
 0x115   :  { %v117_v43 = vmul.f32 0.5, %v116_v41 }
 0x116   :  { %v129_v50 = vmul.f32 %v3957_v46, %v124_v45 }
 0x117   :  { %v118_v44 = vsub.f32 1.5, %v117_v43 }
 0x118   :  { %v4516_v53 = vadd.f32 %v3958_v51, %v129_v50 }
 0x119   :  { %v119_v47 = vmul.f32 %v3983_v38, %v118_v44 }
 0x11b   :  { %v123_v48 = vsel %vm122_vm7, %v3983_v38, %v119_v47 }
 0x11c   :  { %v125_v49 = vmul.f32 %v123_v48, %v91_v18 }
 0x11e   :  { %v130_v52 = vmul.f32 %v3957_v46, %v125_v49 }
 0x120   :  { %v4518_v54 = vadd.f32 %v3958_v51, %v130_v52 }
 0x122   :  { %v141_v55 = vpack.c.bf16 %v4518_v54, %v4516_v53 }
 0x124   :  { %3732 = vmatmul.msk.bf16.vlgmr.msra.gmra.mxu0 %vm74_vm0, %v141_v55 }
 0x1a1   :  { %v160_v57 = vpop.f32.mrf.mxu0 }
 0x1a2   :  { %v4526_v58 = vadd.f32 %v3959_v56, %v160_v57 }
 0x1a4   :  { %252 = vrot.lane.b32.xlu1 %v4526_v58, %s5482_s30  ;;  %166 = vrot.lane.b32.xlu2 %v4526_v58, %s4356_s5 }
 0x1a9   :  { %v162_v59 = vpop.f32.mrf.mxu0 }
 0x1aa   :  { %v4532_v60 = vadd.f32 %v3959_v56, %v162_v59 }
 0x1ac   :  { %194 = vrot.lane.b32.xlu0 %v4532_v60, %s4356_s5  ;;  %306 = vrot.lane.b32.xlu1 %v4526_v58, %s4357_s22 }
 0x1b4   :  { %334 = vrot.lane.b32.xlu0 %v4532_v60, %s4357_s22  ;;  %438 = vrot.lane.b32.xlu1 %v4526_v58, %s5493_s23 }
 0x1bc   :  { %332 = vrot.lane.b32.xlu0 %v4532_v60, %s5490_s1  ;;  %572 = vrot.lane.b32.xlu1 %v4526_v58, %s5484_s24 }
 0x1c4   :  { %304 = vrot.lane.b32.xlu0 %v4526_v58, %s5490_s1  ;;  %s5507_s1 = smov 112  }
 0x1cc   :  { %574 = vrot.lane.b32.xlu0 %v4526_v58, %s5487_s2 }
 0x1d4   :  { %468 = vrot.lane.b32.xlu0 %v4532_v60, %s4362_s25 }
 0x1dc   :  { %600 = vrot.lane.b32.xlu0 %v4532_v60, %s5484_s24  ;;  %s5509_s24 = smov 72  }
 0x1fe   :  { %v167_v61 = vpop.permute.xlu2 %166 }
 0x1ff   :  { %3733 = vmatpush.xpose.msk.msra.mxu1 %vm168_vm8, %v167_v61 }
 0x202   :  { %3734 = vmatmul.msk.f32.vlgmr.msra.gmra.mxu1 %vm168_vm8, %v4526_v58 }
 0x216   :  { %v253_v62 = vpop.permute.xlu1 %252 }
 0x21e   :  { %v195_v63 = vpop.permute.xlu0 %194  ;;  %v307_v0 = vpop.permute.xlu1 %306 }
 0x21f   :  { %3735 = vmatpush.xpose.msk.msra.mxu2 %vm168_vm8, %v195_v63  ;;  %3739 = vmatpush.xpose.msk.msrb.mxu1 %vm168_vm8, %v307_v0 }
 0x222   :  { %3736 = vmatmul.msk.f32.vlgmr.msra.gmra.mxu2 %vm168_vm8, %v4532_v60 }
 0x223   :  { %273 = vmatpush.msrb.mxu2 %v253_v62 }
 0x226   :  { %v335_v1 = vpop.permute.xlu0 %334  ;;  %v439_v30 = vpop.permute.xlu1 %438 }
 0x227   :  { %3741 = vmatpush.xpose.msk.msra.mxu2 %vm168_vm8, %v335_v1 }
 0x22e   :  { %v333_v2 = vpop.permute.xlu0 %332  ;;  %v573_v31 = vpop.permute.xlu1 %572 }
 0x236   :  { %v305_v3 = vpop.permute.xlu0 %304 }
 0x237   :  { %3740 = vmatmul.msk.f32.vlgmr.msrb.gmra.mxu1 %vm168_vm8, %v305_v3 }
 0x23e   :  { %v575_v4 = vpop.permute.xlu0 %574 }
 0x246   :  { %v469_v5 = vpop.permute.xlu0 %468 }
 0x247   :  { %3747 = vmatpush.xpose.msk.msrb.mxu0 %vm168_vm8, %v469_v5 }
 0x24e   :  { %v601_v36 = vpop.permute.xlu0 %600 }
 0x27f   :  { %v190_v8 = vpop.f32.mrf.mxu1 }
 0x280   :  { %v220_v9 = vmul.f32 0.35355338, %v190_v8 }
 0x282   :  { %v228_v11 = vadd.f32 %v4567_v7, %v220_v9  ;;  %v3892_v9 = vpack.i.bf16 %v4532_v60, %v4526_v58 }
 0x284   :  { %v230_v12 = vsel %vm168_vm8, %v228_v11, -inf }
 0x285   :  { %231 = vmax.xlane.f32.xlu2 %v230_v12 }
 0x29d   :  { %440 = vrot.lane.b32.xlu2 %v4526_v58, %s4362_s25 }
 0x2a5   :  { %602 = vrot.lane.b32.xlu2 %v4532_v60, %s5487_s2  ;;  %v217_v25 = vpop.f32.mrf.mxu2  ;;  %s5513_s2 = smov 40  }
 0x2a6   :  { %v221_v26 = vmul.f32 0.35355338, %v217_v25 }
 0x2a8   :  { %v229_v28 = vadd.f32 %v4584_v27, %v221_v26 }
 0x2aa   :  { %v233_v29 = vsel %vm168_vm8, %v229_v28, -inf }
 0x2b4   :  { %v329_v13 = vpop.f32.mrf.mxu1 }
 0x2b5   :  { %v360_v14 = vmul.f32 0.35355338, %v329_v13 }
 0x2b7   :  { %v4576_v15 = vadd.f32 %v360_v14, %v4567_v7 }
 0x2b9   :  { %v364_v16 = vsel %vm168_vm8, %v4576_v15, -inf }
 0x2ce   :  { %365 = vmax.xlane.f32.xlu2 %v364_v16 }
 0x2f8   :  { %v232_v17 = vpop.xlane.xlu2 %231 }
 0x2f9   :  { %v236_v18 = vsub.f32 %v228_v11, %v232_v17 }
 0x2fb   :  { %v238_v19 = vmul.f32 1.442695, %v236_v18 }
 0x2fd   :  { %3984 = vpow2.f32 %v238_v19 }
 0x300   :  { %v441_v20 = vpop.permute.xlu2 %440 }
 0x303   :  { %v3985_v21 = vpop.eup %3984 }
 0x304   :  { %v242_v22 = vsel %vm168_vm8, %v3985_v21, 0.0 }
 0x305   :  { %243 = vadd.xlane.f32.xlu1 %v242_v22 }
 0x308   :  { %v603_v23 = vpop.permute.xlu2 %602 }
 0x309   :  { %3753 = vmatpush.xpose.msk.msra.mxu0 %vm168_vm8, %v603_v23 }
 0x31e   :  { %466 = vrot.lane.b32.xlu1 %v4532_v60, %s5493_s23  ;;  %s5517_s23 = smov 24  }
 0x341   :  { %v366_v50 = vpop.xlane.xlu2 %365 }
 0x342   :  { %v370_v57 = vsub.f32 %v4576_v15, %v366_v50 }
 0x344   :  { %v372_v63 = vmul.f32 1.442695, %v370_v57 }
 0x348   :  { %234 = vmax.xlane.f32.xlu1 %v233_v29 }
 0x378   :  { %v244_v32 = vpop.xlane.xlu1 %243 }
 0x379   :  { %3986 = vrcp.f32 %v244_v32 }
 0x37f   :  { %v3987_v33 = vpop.eup %3986 }
 0x380   :  { %v250_v34 = vmul.f32 %v3987_v33, %v3985_v21 }
 0x382   :  { %3737 = vmatmul.msk.f32.vlgmr.msrb.gmra.mxu2 %vm168_vm8, %v250_v34 }
 0x383   :  { %3745 = vmatpush.xpose.msk.msrb.mxu2 %vm168_vm8, %v441_v20 }
 0x38a   :  { %3742 = vmatmul.msk.f32.vlgmr.msra.gmra.mxu2 %vm168_vm8, %v333_v2 }
 0x38b   :  { %3751 = vmatpush.xpose.msk.msra.mxu2 %vm168_vm8, %v575_v4 }
 0x390   :  { %v467_v35 = vpop.permute.xlu1 %466 }
 0x391   :  { %3748 = vmatmul.msk.f32.vlgmr.msrb.gmra.mxu0 %vm168_vm8, %v467_v35 }
 0x392   :  { %3746 = vmatmul.msk.f32.vlgmr.msrb.gmra.mxu2 %vm168_vm8, %v439_v30 }
 0x399   :  { %3754 = vmatmul.msk.f32.vlgmr.msra.gmra.mxu0 %vm168_vm8, %v601_v36 }
 0x39a   :  { %3752 = vmatmul.msk.f32.vlgmr.msra.gmra.mxu2 %vm168_vm8, %v573_v31 }
 0x3bb   :  { %v235_v38 = vpop.xlane.xlu1 %234 }
 0x3bc   :  { %v237_v39 = vsub.f32 %v229_v28, %v235_v38 }
 0x3be   :  { %v240_v41 = vmul.f32 1.442695, %v237_v39 }
 0x3c0   :  { %3988 = vpow2.f32 %v240_v41 }
 0x3c1   :  { %3990 = vpow2.f32 %v372_v63 }
 0x3c6   :  { %v3989_v55 = vpop.eup %3988 }
 0x3c7   :  { %v245_v62 = vsel %vm168_vm8, %v3989_v55, 0.0  ;;  %v3991_v6 = vpop.eup %3990 }
 0x3c8   :  { %v376_v8 = vsel %vm168_vm8, %v3991_v6, 0.0 }
 0x405   :  { %v4596_v37 = vpop.f32.mrf.mxu2 }
 0x40d   :  { %v357_v40 = vpop.f32.mrf.mxu2 }
 0x40e   :  { %v361_v42 = vmul.f32 0.35355338, %v357_v40  ;;  %v491_v43 = vpop.f32.mrf.mxu0 }
 0x40f   :  { %v495_v44 = vmul.f32 0.35355338, %v491_v43 }
 0x410   :  { %v363_v45 = vadd.f32 %v361_v42, %v4584_v27 }
 0x411   :  { %v497_v46 = vadd.f32 %v495_v44, %v4584_v27 }
 0x412   :  { %v367_v47 = vsel %vm168_vm8, %v363_v45, -inf }
 0x413   :  { %368 = vmax.xlane.f32.xlu0 %v367_v47  ;;  %v501_v48 = vsel %vm168_vm8, %v497_v46, -inf }
 0x414   :  { %502 = vmax.xlane.f32.xlu1 %v501_v48 }
 0x415   :  { %v463_v49 = vpop.f32.mrf.mxu2 }
 0x416   :  { %v494_v51 = vmul.f32 0.35355338, %v463_v49  ;;  %v625_v52 = vpop.f32.mrf.mxu0 }
 0x417   :  { %v629_v59 = vmul.f32 0.35355338, %v625_v52 }
 0x418   :  { %v496_v56 = vadd.f32 %v494_v51, %v4567_v7 }
 0x419   :  { %v631_v2 = vadd.f32 %v629_v59, %v4584_v27 }
 0x41a   :  { %v498_v61 = vsel %vm168_vm8, %v496_v56, -inf }
 0x41b   :  { %499 = vmax.xlane.f32.xlu2 %v498_v61  ;;  %v635_v5 = vsel %vm168_vm8, %v631_v2, -inf }
 0x41c   :  { %246 = vadd.xlane.f32.xlu1 %v245_v62 }
 0x41d   :  { %v597_v0 = vpop.f32.mrf.mxu2 }
 0x41e   :  { %v628_v1 = vmul.f32 0.35355338, %v597_v0 }
 0x420   :  { %v630_v3 = vadd.f32 %v628_v1, %v4567_v7 }
 0x422   :  { %v632_v4 = vsel %vm168_vm8, %v630_v3, -inf }
 0x423   :  { %633 = vmax.xlane.f32.xlu0 %v632_v4  ;;  %636 = vmax.xlane.f32.xlu2 %v635_v5 }
 0x42b   :  { %377 = vadd.xlane.f32.xlu0 %v376_v8 }
 0x435   :  { %3893 = vrot.lane.b32.xlu1 %v3892_v9, %s5478_s28  ;;  %s5492_s28 = smov 24  }
 0x43b   :  { %278 = vrot.lane.b32.xlu2 %v4532_v60, %s5482_s30 }
 0x443   :  { %3898 = vrot.lane.b32.xlu2 %v3892_v9, %s5481_s29  ;;  %s5514_s29 = smov 56  }
 0x44b   :  { %654 = vrot.lane.b32.xlu2 %v4526_v58, %s5479_s26 }
 0x486   :  { %v369_v11 = vpop.xlane.xlu0 %368 }
 0x487   :  { %v371_v12 = vsub.f32 %v363_v45, %v369_v11  ;;  %v503_v13 = vpop.xlane.xlu1 %502 }
 0x488   :  { %v505_v14 = vsub.f32 %v497_v46, %v503_v13 }
 0x489   :  { %v374_v15 = vmul.f32 1.442695, %v371_v12 }
 0x48a   :  { %v508_v16 = vmul.f32 1.442695, %v505_v14 }
 0x48b   :  { %3992 = vpow2.f32 %v374_v15 }
 0x48c   :  { %3994 = vpow2.f32 %v508_v16 }
 0x48e   :  { %v500_v17 = vpop.xlane.xlu2 %499 }
 0x48f   :  { %v504_v18 = vsub.f32 %v496_v56, %v500_v17  ;;  %v247_v22 = vpop.xlane.xlu1 %246 }
 0x491   :  { %v3993_v19 = vpop.eup %3992  ;;  %v506_v20 = vmul.f32 1.442695, %v504_v18  ;;  %v740_v18 = vld [vmem:[%s5459_s6 + $0x10] sm:$0xff] }
 0x492   :  { %v3995_v21 = vpop.eup %3994  ;;  %v379_v23 = vsel %vm168_vm8, %v3993_v19, 0.0 }
 0x493   :  { %3996 = vpow2.f32 %v506_v20  ;;  %380 = vadd.xlane.f32.xlu1 %v379_v23  ;;  %v513_v58 = vsel %vm168_vm8, %v3995_v21, 0.0 }
 0x494   :  { %514 = vadd.xlane.f32.xlu0 %v513_v58  ;;  %3998 = vrcp.f32 %v247_v22  ;;  %v739_v22 = vld [vmem:[%s5459_s6 + $0x8] sm:$0xff] }
 0x496   :  { %v634_v24 = vpop.xlane.xlu0 %633  ;;  %v637_v25 = vpop.xlane.xlu2 %636 }
 0x497   :  { %v638_v26 = vsub.f32 %v630_v3, %v634_v24  ;;  %v639_v32 = vsub.f32 %v631_v2, %v637_v25 }
 0x499   :  { %v3997_v28 = vpop.eup %3996  ;;  %v640_v29 = vmul.f32 1.442695, %v638_v26  ;;  %v642_v36 = vmul.f32 1.442695, %v639_v32 }
 0x49a   :  { %v510_v30 = vsel %vm168_vm8, %v3997_v28, 0.0  ;;  %v3999_v31 = vpop.eup %3998 }
 0x49b   :  { %4000 = vpow2.f32 %v640_v29  ;;  %v251_v35 = vmul.f32 %v3999_v31, %v3989_v55 }
 0x49c   :  { %511 = vadd.xlane.f32.xlu0 %v510_v30 }
 0x49e   :  { %v378_v33 = vpop.xlane.xlu0 %377  ;;  %v279_v34 = vpop.permute.xlu2 %278 }
 0x49f   :  { %299 = vmatpush.msra.mxu3 %v279_v34  ;;  %4002 = vrcp.f32 %v378_v33 }
 0x4a0   :  { %3738 = vmatmul.msk.f32.vlgmr.msra.gmra.mxu3 %vm168_vm8, %v251_v35  ;;  %4004 = vpow2.f32 %v642_v36 }
 0x4a1   :  { %v4001_v38 = vpop.eup %4000 }
 0x4a2   :  { %v644_v39 = vsel %vm168_vm8, %v4001_v38, 0.0 }
 0x4a4   :  { %645 = vadd.xlane.f32.xlu0 %v644_v39 }
 0x4a5   :  { %v4003_v40 = vpop.eup %4002 }
 0x4a6   :  { %v3899_v41 = vpop.permute.xlu2 %3898  ;;  %v4005_v45 = vpop.eup %4004  ;;  %v384_v47 = vmul.f32 %v4003_v40, %v3991_v6 }
 0x4a7   :  { %v3894_v42 = vpop.permute.xlu1 %3893  ;;  %v3901_v46 = vunpack.i.h.bf16 %v3899_v41  ;;  %v3900_v48 = vunpack.i.l.bf16 %v3899_v41  ;;  %v647_v49 = vsel %vm168_vm8, %v4005_v45, 0.0 }
 0x4a8   :  { %v3896_v43 = vunpack.i.h.bf16 %v3894_v42  ;;  %v3895_v44 = vunpack.i.l.bf16 %v3894_v42 }
 0x4aa   :  { %407 = vmatpush.msrb.mxu3 %v3895_v44  ;;  %433 = vmatpush.msra.mxu1 %v3896_v43 }
 0x4ab   :  { %3743 = vmatmul.msk.f32.vlgmr.msrb.gmra.mxu3 %vm168_vm8, %v384_v47 }
 0x4ac   :  { %567 = vmatpush.msrb.mxu1 %v3901_v46  ;;  %541 = vmatpush.msra.mxu3 %v3900_v48 }
 0x4ad   :  { %680 = vrot.lane.b32.xlu1 %v4532_v60, %s5479_s26  ;;  %648 = vadd.xlane.f32.xlu0 %v647_v49  ;;  %s5515_s26 = smov 8  }
 0x4ae   :  { %v655_v50 = vpop.permute.xlu2 %654 }
 0x4af   :  { %675 = vmatpush.msrb.mxu3 %v655_v50 }
 0x506   :  { %v381_v51 = vpop.xlane.xlu1 %380 }
 0x507   :  { %4006 = vrcp.f32 %v381_v51  ;;  %v515_v52 = vpop.xlane.xlu0 %514 }
 0x508   :  { %4008 = vrcp.f32 %v515_v52 }
 0x50d   :  { %v4007_v55 = vpop.eup %4006 }
 0x50e   :  { %v385_v56 = vmul.f32 %v4007_v55, %v3993_v19  ;;  %v4009_v59 = vpop.eup %4008  ;;  %v741_v19 = vld [vmem:[%s5459_s6 + $0x18] sm:$0xff] }
 0x50f   :  { %v512_v57 = vpop.xlane.xlu0 %511  ;;  %v519_v62 = vmul.f32 %v4009_v59, %v3995_v21  ;;  %v744_v20 = vpack.c.bf16 %v741_v19, %v740_v18  ;;  %v738_v21 = vld [vmem:[%s5459_s6] sm:$0xff] }
 0x510   :  { %4010 = vrcp.f32 %v512_v57  ;;  %3744 = vmatmul.msk.f32.vlgmr.msra.gmra.mxu1 %vm168_vm8, %v385_v56  ;;  %v743_v23 = vpack.c.bf16 %v739_v22, %v738_v21  ;;  %v3961_v22 = vld [vmem:[%s5461_s8] ss:$0 sm:$0xff] }
 0x511   :  { %758 = vmatpush.bf16.msrb.mxu2 %v744_v20 }
 0x515   :  { %759 = vmatpush.bf16.msrb.mxu2 %v743_v23 }
 0x516   :  { %v4011_v61 = vpop.eup %4010 }
 0x517   :  { %v518_v63 = vmul.f32 %v4011_v61, %v3997_v28  ;;  %v646_v60 = vpop.xlane.xlu0 %645 }
 0x518   :  { %4012 = vrcp.f32 %v646_v60  ;;  %3750 = vmatmul.msk.f32.vlgmr.msrb.gmra.mxu1 %vm168_vm8, %v519_v62  ;;  %v827_v62 = vld [vmem:[%s5463_s10 + $0x18] sm:$0xff] }
 0x519   :  { %3749 = vmatmul.msk.f32.vlgmr.msra.gmra.mxu3 %vm168_vm8, %v518_v63 }
 0x51e   :  { %v4013_v0 = vpop.eup %4012 }
 0x51f   :  { %v681_v1 = vpop.permute.xlu1 %680  ;;  %v652_v2 = vmul.f32 %v4013_v0, %v4001_v38 }
 0x520   :  { %701 = vmatpush.msra.mxu1 %v681_v1  ;;  %v649_v3 = vpop.xlane.xlu0 %648  ;;  %v824_v1 = vld [vmem:[%s5463_s10] sm:$0xff] }
 0x521   :  { %4014 = vrcp.f32 %v649_v3  ;;  %3755 = vmatmul.msk.f32.vlgmr.msrb.gmra.mxu3 %vm168_vm8, %v652_v2  ;;  %v825_v2 = vld [vmem:[%s5463_s10 + $0x8] sm:$0xff] }
 0x522   :  { %v829_v3 = vpack.c.bf16 %v825_v2, %v824_v1 }
 0x523   :  { %v301_v6 = vpop.f32.mrf.mxu3 }
 0x527   :  { %v4015_v4 = vpop.eup %4014 }
 0x528   :  { %v653_v5 = vmul.f32 %v4015_v4, %v4005_v45 }
 0x52a   :  { %3756 = vmatmul.msk.f32.vlgmr.msra.gmra.mxu1 %vm168_vm8, %v653_v5 }
 0x52e   :  { %v409_v8 = vpop.f32.mrf.mxu3 }
 0x58d   :  { %v435_v9 = vpop.f32.mrf.mxu1 }
 0x58e   :  { %v3902_v11 = vpack.i.bf16 %v435_v9, %v409_v8 }
 0x590   :  { %3903 = vrot.lane.b32.xlu0 %v3902_v11, %s5486_s27 }
 0x595   :  { %v569_v12 = vpop.f32.mrf.mxu1 }
 0x59c   :  { %v543_v13 = vpop.f32.mrf.mxu3 }
 0x59d   :  { %v3907_v14 = vpack.i.bf16 %v569_v12, %v543_v13 }
 0x59f   :  { %3908 = vrot.lane.b32.xlu2 %v3907_v14, %s5489_s3 }
 0x5a4   :  { %v677_v15 = vpop.f32.mrf.mxu3 }
 0x5a7   :  { %v703_v16 = vpop.f32.mrf.mxu1 }
 0x5a8   :  { %v3912_v17 = vpack.i.bf16 %v703_v16, %v677_v15 }
 0x5aa   :  { %3913 = vrot.lane.b32.xlu1 %v3912_v17, %s5492_s28 }
 0x5f9   :  { %v3909_v26 = vpop.permute.xlu2 %3908 }
 0x5fa   :  { %v3911_v30 = vunpack.i.h.bf16 %v3909_v26  ;;  %v3910_v31 = vunpack.i.l.bf16 %v3909_v26 }
 0x602   :  { %v3904_v58 = vpop.permute.xlu0 %3903 }
 0x603   :  { %v3906_v24 = vunpack.i.h.bf16 %v3904_v58  ;;  %v3905_v25 = vunpack.i.l.bf16 %v3904_v58 }
 0x605   :  { %v731_v28 = vsel %vm168_vm8, %v301_v6, %v3906_v24  ;;  %v730_v29 = vsel %vm168_vm8, %v4596_v37, %v3905_v25  ;;  %v3960_v37 = vld [vmem:[%s5460_s7] ss:$0 sm:$0xff] }
 0x606   :  { %v733_v35 = vsel %vm732_vm9, %v730_v29, %v3910_v31  ;;  %v734_v36 = vsel %vm732_vm9, %v731_v28, %v3911_v30  ;;  %v3962_v28 = vld [vmem:[%s5462_s9] ss:$0 sm:$0xff] }
 0x61c   :  { %v3914_v32 = vpop.permute.xlu1 %3913 }
 0x61d   :  { %v3916_v33 = vunpack.i.h.bf16 %v3914_v32  ;;  %v3915_v34 = vunpack.i.l.bf16 %v3914_v32 }
 0x61f   :  { %v737_v38 = vsel %vm735_vm10, %v734_v36, %v3916_v33  ;;  %v736_v39 = vsel %vm735_vm10, %v733_v35, %v3915_v34  ;;  %v876_v33 = vld [vmem:[%s5465_s12 + $0x30] sm:$0xff]  ;;  %v877_v34 = vld [vmem:[%s5465_s12 + $0x38] sm:$0xff]  ;;  %v874_v36 = vld [vmem:[%s5465_s12 + $0x20] sm:$0xff] }
 0x620   :  { %v742_v40 = vpack.c.bf16 %v737_v38, %v736_v39  ;;  %v882_v35 = vpack.c.bf16 %v877_v34, %v876_v33  ;;  %v875_v38 = vld [vmem:[%s5465_s12 + $0x28] sm:$0xff] }
 0x621   :  { %v881_v39 = vpack.c.bf16 %v875_v38, %v874_v36  ;;  %v3761_v33 = vld [vmem:[%s5502_s0 + $0x28] sm:$0xff] }
 0x622   :  { %3757 = vmatmul.msk.bf16.vlgmr.msrb.gmra.mxu2 %vm74_vm0, %v742_v40  ;;  %895 = vmatpush.bf16.msra.mxu3 %v882_v35  ;;  %v872_v40 = vld [vmem:[%s5465_s12 + $0x10] sm:$0xff] }
 0x626   :  { %896 = vmatpush.bf16.msra.mxu3 %v881_v39 }
 0x6a5   :  { %v761_v41 = vpop.f32.mrf.mxu2 }
 0x6a6   :  { %v762_v42 = vadd.f32 %v3960_v37, %v761_v41 }
 0x6a8   :  { %v766_v43 = vadd.f32 %v762_v42, %v4516_v53  ;;  %v870_v42 = vld [vmem:[%s5465_s12] sm:$0xff] }
 0x6aa   :  { %v770_v44 = vsel %vm74_vm0, %v766_v43, 0.0 }
 0x6ab   :  { %771 = vadd.xlane.f32.xlu2 %v770_v44  ;;  %v3963_v44 = vld [vmem:[%s5464_s11] ss:$0 sm:$0xff] }
 0x6ad   :  { %v763_v45 = vpop.f32.mrf.mxu2 }
 0x6ae   :  { %v764_v46 = vadd.f32 %v3960_v37, %v763_v45  ;;  %v873_v37 = vld [vmem:[%s5465_s12 + $0x18] sm:$0xff] }
 0x6af   :  { %v880_v41 = vpack.c.bf16 %v873_v37, %v872_v40 }
 0x6b0   :  { %v767_v47 = vadd.f32 %v764_v46, %v4518_v54  ;;  %v826_v54 = vld [vmem:[%s5463_s10 + $0x10] sm:$0xff] }
 0x6b1   :  { %v830_v63 = vpack.c.bf16 %v827_v62, %v826_v54  ;;  %897 = vmatpush.bf16.msra.mxu3 %v880_v41 }
 0x6b2   :  { %v773_v48 = vsel %vm74_vm0, %v767_v47, 0.0 }
 0x6b3   :  { %774 = vadd.xlane.f32.xlu1 %v773_v48  ;;  %844 = vmatpush.bf16.msrb.mxu0 %v830_v63 }
 0x6b7   :  { %845 = vmatpush.bf16.msrb.mxu0 %v829_v3 }
 0x71e   :  { %v772_v49 = vpop.xlane.xlu2 %771 }
 0x71f   :  { %v776_v50 = vmul.f32 %v772_v49, %v4490_v10 }
 0x721   :  { %v778_v51 = vsub.f32 %v766_v43, %v776_v50  ;;  %v871_v43 = vld [vmem:[%s5465_s12 + $0x8] sm:$0xff] }
 0x722   :  { %v879_v45 = vpack.c.bf16 %v871_v43, %v870_v42 }
 0x723   :  { %v780_v52 = vmul.f32 %v778_v51, %v778_v51 }
 0x724   :  { %898 = vmatpush.bf16.msra.mxu3 %v879_v45 }
 0x725   :  { %v782_v55 = vsel %vm74_vm0, %v780_v52, 0.0 }
 0x726   :  { %v775_v56 = vpop.xlane.xlu1 %774  ;;  %783 = vadd.xlane.f32.xlu0 %v782_v55 }
 0x727   :  { %v777_v53 = vmul.f32 %v775_v56, %v4490_v10 }
 0x729   :  { %v779_v57 = vsub.f32 %v767_v47, %v777_v53 }
 0x72b   :  { %v781_v59 = vmul.f32 %v779_v57, %v779_v57 }
 0x72d   :  { %v785_v61 = vsel %vm74_vm0, %v781_v59, 0.0 }
 0x72e   :  { %786 = vadd.xlane.f32.xlu2 %v785_v61 }
 0x799   :  { %v784_v60 = vpop.xlane.xlu0 %783 }
 0x79a   :  { %v788_v0 = vmul.f32 %v784_v60, %v4490_v10 }
 0x79c   :  { %v790_v4 = vadd.f32 1e-05, %v788_v0 }
 0x79e   :  { %4016 = vrsqrt.f32 %v790_v4  ;;  %vm798_vm12 = vweird.f32 %v790_v4 }
 0x7a1   :  { %v787_v5 = vpop.xlane.xlu2 %786 }
 0x7a2   :  { %v789_v6 = vmul.f32 %v787_v5, %v4490_v10 }
 0x7a4   :  { %v4017_v8 = vpop.eup %4016  ;;  %v791_v9 = vadd.f32 1e-05, %v789_v6  ;;  %v3964_v6 = vld [vmem:[%s5466_s13] ss:$0 sm:$0xff] }
 0x7a5   :  { %v793_v11 = vmul.f32 %v4017_v8, %v790_v4  ;;  %vm799_vm11 = vweird.f32 %v4017_v8 }
 0x7a6   :  { %4018 = vrsqrt.f32 %v791_v9  ;;  %vm800_vm13 = vmor %vm798_vm12, %vm799_vm11  ;;  %vm808_vm15 = vweird.f32 %v791_v9 }
 0x7a7   :  { %v794_v12 = vmul.f32 %v4017_v8, %v793_v11 }
 0x7a9   :  { %v795_v13 = vmul.f32 0.5, %v794_v12 }
 0x7ab   :  { %v796_v14 = vsub.f32 1.5, %v795_v13 }
 0x7ac   :  { %v4019_v15 = vpop.eup %4018 }
 0x7ad   :  { %v797_v16 = vmul.f32 %v4017_v8, %v796_v14  ;;  %v803_v17 = vmul.f32 %v4019_v15, %v791_v9  ;;  %vm809_vm14 = vweird.f32 %v4019_v15 }
 0x7ae   :  { %vm810_vm1 = vmor %vm808_vm15, %vm809_vm14 }
 0x7af   :  { %v804_v18 = vmul.f32 %v4019_v15, %v803_v17  ;;  %v801_v19 = vsel %vm800_vm13, %v4017_v8, %v797_v16 }
 0x7b0   :  { %v812_v23 = vmul.f32 %v801_v19, %v778_v51 }
 0x7b1   :  { %v805_v20 = vmul.f32 0.5, %v804_v18 }
 0x7b2   :  { %v817_v25 = vmul.f32 %v3961_v22, %v812_v23 }
 0x7b3   :  { %v806_v21 = vsub.f32 1.5, %v805_v20 }
 0x7b4   :  { %v822_v30 = vadd.f32 %v3962_v28, %v817_v25 }
 0x7b5   :  { %v807_v58 = vmul.f32 %v4019_v15, %v806_v21 }
 0x7b7   :  { %v811_v24 = vsel %vm810_vm1, %v4019_v15, %v807_v58 }
 0x7b8   :  { %v813_v26 = vmul.f32 %v811_v24, %v779_v57 }
 0x7ba   :  { %v818_v29 = vmul.f32 %v3961_v22, %v813_v26  ;;  %v3762_v26 = vld [vmem:[%s5502_s0 + $0x30] sm:$0xff] }
 0x7bc   :  { %v823_v31 = vadd.f32 %v3962_v28, %v818_v29  ;;  %v3763_v28 = vld [vmem:[%s5502_s0 + $0x38] sm:$0xff] }
 0x7bd   :  { %v970_v29 = vpack.c.bf16 %v3763_v28, %v3762_v26 }
 0x7be   :  { %v828_v32 = vpack.c.bf16 %v823_v31, %v822_v30 }
 0x7bf   :  { %985 = vmatpush.bf16.msrb.mxu1 %v970_v29 }
 0x7c0   :  { %3758 = vmatmul.msk.bf16.vlgmr.msrb.gmra.mxu0 %vm74_vm0, %v828_v32  ;;  %v3760_v32 = vld [vmem:[%s5502_s0 + $0x20] sm:$0xff]  ;;  %s5516_s0 = smov 16  }
 0x7c1   :  { %v969_v34 = vpack.c.bf16 %v3761_v33, %v3760_v32 }
 0x7c3   :  { %986 = vmatpush.bf16.msrb.mxu1 %v969_v34 }
 0x83d   :  { %v847_v46 = vpop.f32.mrf.mxu0 }
 0x83e   :  { %v848_v47 = vadd.f32 %v3963_v44, %v847_v46 }
 0x840   :  { %v854_v48 = vmul.f32 0.044715, %v848_v47  ;;  %v852_v0 = vmul.f32 0.5, %v848_v47 }
 0x842   :  { %v856_v49 = vmul.f32 %v854_v48, %v848_v47 }
 0x844   :  { %v858_v50 = vmul.f32 %v856_v49, %v848_v47 }
 0x845   :  { %v849_v51 = vpop.f32.mrf.mxu0 }
 0x846   :  { %v860_v52 = vadd.f32 %v858_v50, %v848_v47  ;;  %v850_v55 = vadd.f32 %v3963_v44, %v849_v51  ;;  %v3965_v51 = vld [vmem:[%s5467_s14] ss:$0 sm:$0xff] }
 0x848   :  { %v855_v56 = vmul.f32 0.044715, %v850_v55  ;;  %v862_v53 = vmul.f32 0.7978846, %v860_v52  ;;  %v853_v1 = vmul.f32 0.5, %v850_v55 }
 0x84a   :  { %v857_v57 = vmul.f32 %v855_v56, %v850_v55  ;;  %4020 = vtanh.f32 %v862_v53 }
 0x84c   :  { %v859_v59 = vmul.f32 %v857_v57, %v850_v55 }
 0x84e   :  { %v861_v61 = vadd.f32 %v859_v59, %v850_v55  ;;  %v3966_v59 = vld [vmem:[%s5468_s15] ss:$0 sm:$0xff] }
 0x850   :  { %v863_v54 = vmul.f32 0.7978846, %v861_v61  ;;  %v4021_v62 = vpop.eup %4020 }
 0x851   :  { %v866_v63 = vadd.f32 1.0, %v4021_v62 }
 0x852   :  { %4022 = vtanh.f32 %v863_v54 }
 0x853   :  { %v868_v3 = vmul.f32 %v866_v63, %v852_v0 }
 0x858   :  { %v4023_v60 = vpop.eup %4022 }
 0x859   :  { %v867_v2 = vadd.f32 1.0, %v4023_v60  ;;  %v3967_v60 = vld [vmem:[%s5505_s4 + $0x1] ss:$0 sm:$0xff]  ;;  %s5508_s4 = smov 120  }
 0x85b   :  { %v869_v4 = vmul.f32 %v867_v2, %v853_v1 }
 0x85d   :  { %v878_v5 = vpack.c.bf16 %v869_v4, %v868_v3 }
 0x85f   :  { %3759 = vmatmul.msk.bf16.vlgmr.msra.gmra.mxu3 %vm887_vm2, %v878_v5 }
 0x8e2   :  { %v900_v8 = vpop.f32.mrf.mxu3 }
 0x8e3   :  { %v901_v9 = vadd.f32 %v3964_v6, %v900_v8 }
 0x8e5   :  { %v905_v11 = vadd.f32 %v901_v9, %v822_v30 }
 0x8e7   :  { %v909_v12 = vsel %vm74_vm0, %v905_v11, 0.0 }
 0x8e8   :  { %910 = vadd.xlane.f32.xlu1 %v909_v12 }
 0x8ea   :  { %v902_v13 = vpop.f32.mrf.mxu3 }
 0x8eb   :  { %v903_v14 = vadd.f32 %v3964_v6, %v902_v13 }
 0x8ed   :  { %v906_v15 = vadd.f32 %v903_v14, %v823_v31 }
 0x8ef   :  { %v912_v16 = vsel %vm74_vm0, %v906_v15, 0.0 }
 0x8f0   :  { %913 = vadd.xlane.f32.xlu2 %v912_v16 }
 0x95b   :  { %v911_v17 = vpop.xlane.xlu1 %910 }
 0x95c   :  { %v915_v18 = vmul.f32 %v911_v17, %v4490_v10 }
 0x95e   :  { %v917_v19 = vsub.f32 %v905_v11, %v915_v18 }
 0x960   :  { %v919_v20 = vmul.f32 %v917_v19, %v917_v19 }
 0x962   :  { %v921_v21 = vsel %vm74_vm0, %v919_v20, 0.0 }
 0x963   :  { %v914_v22 = vpop.xlane.xlu2 %913  ;;  %922 = vadd.xlane.f32.xlu0 %v921_v21 }
 0x964   :  { %v916_v23 = vmul.f32 %v914_v22, %v4490_v10 }
 0x966   :  { %v918_v58 = vsub.f32 %v906_v15, %v916_v23 }
 0x968   :  { %v920_v24 = vmul.f32 %v918_v58, %v918_v58 }
 0x96a   :  { %v924_v25 = vsel %vm74_vm0, %v920_v24, 0.0 }
 0x96b   :  { %925 = vadd.xlane.f32.xlu1 %v924_v25 }
 0x9d6   :  { %v923_v30 = vpop.xlane.xlu0 %922 }
 0x9d7   :  { %v927_v31 = vmul.f32 %v923_v30, %v4490_v10 }
 0x9d9   :  { %v929_v35 = vadd.f32 1e-05, %v927_v31 }
 0x9db   :  { %4024 = vrsqrt.f32 %v929_v35  ;;  %vm937_vm4 = vweird.f32 %v929_v35 }
 0x9de   :  { %v926_v36 = vpop.xlane.xlu1 %925 }
 0x9df   :  { %v928_v38 = vmul.f32 %v926_v36, %v4490_v10 }
 0x9e1   :  { %v4025_v39 = vpop.eup %4024  ;;  %v930_v40 = vadd.f32 1e-05, %v928_v38 }
 0x9e2   :  { %v932_v37 = vmul.f32 %v4025_v39, %v929_v35  ;;  %vm938_vm3 = vweird.f32 %v4025_v39 }
 0x9e3   :  { %4026 = vrsqrt.f32 %v930_v40  ;;  %vm939_vm5 = vmor %vm937_vm4, %vm938_vm3  ;;  %vm947_vm7 = vweird.f32 %v930_v40 }
 0x9e4   :  { %v933_v41 = vmul.f32 %v4025_v39, %v932_v37 }
 0x9e6   :  { %v934_v42 = vmul.f32 0.5, %v933_v41 }
 0x9e8   :  { %v935_v43 = vsub.f32 1.5, %v934_v42 }
 0x9e9   :  { %v4027_v44 = vpop.eup %4026 }
 0x9ea   :  { %v936_v45 = vmul.f32 %v4025_v39, %v935_v43  ;;  %v942_v46 = vmul.f32 %v4027_v44, %v930_v40  ;;  %vm948_vm6 = vweird.f32 %v4027_v44 }
 0x9eb   :  { %vm949_vm11 = vmor %vm947_vm7, %vm948_vm6 }
 0x9ec   :  { %v943_v47 = vmul.f32 %v4027_v44, %v942_v46  ;;  %v940_v48 = vsel %vm939_vm5, %v4025_v39, %v936_v45 }
 0x9ed   :  { %v951_v52 = vmul.f32 %v940_v48, %v917_v19 }
 0x9ee   :  { %v944_v49 = vmul.f32 0.5, %v943_v47 }
 0x9ef   :  { %v956_v53 = vmul.f32 %v3965_v51, %v951_v52 }
 0x9f0   :  { %v945_v50 = vsub.f32 1.5, %v944_v49 }
 0x9f1   :  { %v4745_v54 = vadd.f32 %v3966_v59, %v956_v53 }
 0x9f2   :  { %v946_v55 = vmul.f32 %v4027_v44, %v945_v50 }
 0x9f4   :  { %v950_v56 = vsel %vm949_vm11, %v4027_v44, %v946_v55 }
 0x9f5   :  { %v952_v57 = vmul.f32 %v950_v56, %v918_v58 }
 0x9f7   :  { %v957_v61 = vmul.f32 %v3965_v51, %v952_v57 }
 0x9f9   :  { %v4747_v62 = vadd.f32 %v3966_v59, %v957_v61 }
 0x9fb   :  { %v968_v63 = vpack.c.bf16 %v4747_v62, %v4745_v54 }
 0x9fd   :  { %3765 = vmatmul.msk.bf16.vlgmr.msrb.gmra.mxu1 %vm74_vm0, %v968_v63 }
 0xa7a   :  { %v988_v0 = vpop.f32.mrf.mxu1 }
 0xa7b   :  { %v4755_v1 = vadd.f32 %v3967_v60, %v988_v0 }
 0xa7d   :  { %994 = vrot.lane.b32.xlu2 %v4755_v1, %s4356_s5 }
 0xa82   :  { %v990_v2 = vpop.f32.mrf.mxu1 }
 0xa83   :  { %v4759_v3 = vadd.f32 %v3967_v60, %v990_v2 }
 0xa85   :  { %1155 = vrot.lane.b32.xlu1 %v4759_v3, %s4357_s22  ;;  %1021 = vrot.lane.b32.xlu0 %v4759_v3, %s4356_s5  ;;  %s5510_s5 = smov 104   ;;  %v3917_v52 = vpack.i.bf16 %v4755_v1, %v4759_v3 }
 0xa86   :  { %1289 = vrot.lane.b32.xlu2 %v4759_v3, %s4362_s25 }
 0xa8d   :  { %1287 = vrot.lane.b32.xlu1 %v4759_v3, %s5507_s1  ;;  %1153 = vrot.lane.b32.xlu0 %v4759_v3, %s5508_s4 }
 0xa8e   :  { %1125 = vrot.lane.b32.xlu2 %v4755_v1, %s5508_s4 }
 0xa95   :  { %1423 = vrot.lane.b32.xlu1 %v4759_v3, %s5509_s24  ;;  %1127 = vrot.lane.b32.xlu0 %v4755_v1, %s4357_s22  ;;  %s5511_s22 = smov 64  }
 0xa96   :  { %1261 = vrot.lane.b32.xlu2 %v4755_v1, %s4362_s25  ;;  %s5512_s25 = smov 48  }
 0xa9d   :  { %1259 = vrot.lane.b32.xlu1 %v4755_v1, %s5507_s1  ;;  %1421 = vrot.lane.b32.xlu0 %v4759_v3, %s5510_s5 }
 0xa9e   :  { %1393 = vrot.lane.b32.xlu2 %v4755_v1, %s5510_s5 }
 0xaa5   :  { %1395 = vrot.lane.b32.xlu0 %v4755_v1, %s5509_s24 }
 0xad7   :  { %v995_v4 = vpop.permute.xlu2 %994 }
 0xad8   :  { %3766 = vmatpush.xpose.msk.msra.mxu2 %vm168_vm8, %v995_v4 }
 0xadb   :  { %3767 = vmatmul.msk.f32.vlgmr.msra.gmra.mxu2 %vm168_vm8, %v4755_v1 }
 0xae0   :  { %v1290_v5 = vpop.permute.xlu2 %1289 }
 0xae8   :  { %v1126_v9 = vpop.permute.xlu2 %1125 }
 0xaf0   :  { %v1262_v15 = vpop.permute.xlu2 %1261 }
 0xaf7   :  { %v1156_v6 = vpop.permute.xlu1 %1155  ;;  %v1022_v8 = vpop.permute.xlu0 %1021 }
 0xaf8   :  { %3768 = vmatpush.xpose.msk.msra.mxu0 %vm168_vm8, %v1022_v8  ;;  %3774 = vmatpush.xpose.msk.msrb.mxu3 %vm168_vm8, %v1156_v6  ;;  %v1394_v19 = vpop.permute.xlu2 %1393 }
 0xafb   :  { %3769 = vmatmul.msk.f32.vlgmr.msra.gmra.mxu0 %vm168_vm8, %v4759_v3 }
 0xafc   :  { %3780 = vmatpush.xpose.msk.msra.mxu3 %vm168_vm8, %v1290_v5 }
 0xaff   :  { %v1288_v11 = vpop.permute.xlu1 %1287  ;;  %v1154_v12 = vpop.permute.xlu0 %1153 }
 0xb00   :  { %3775 = vmatmul.msk.f32.vlgmr.msrb.gmra.mxu3 %vm168_vm8, %v1154_v12 }
 0xb07   :  { %v1424_v13 = vpop.permute.xlu1 %1423  ;;  %v1128_v14 = vpop.permute.xlu0 %1127 }
 0xb08   :  { %3772 = vmatpush.xpose.msk.msrb.mxu0 %vm168_vm8, %v1128_v14  ;;  %3781 = vmatmul.msk.f32.vlgmr.msra.gmra.mxu3 %vm168_vm8, %v1288_v11 }
 0xb09   :  { %3786 = vmatpush.xpose.msk.msrb.mxu3 %vm168_vm8, %v1424_v13 }
 0xb0b   :  { %3773 = vmatmul.msk.f32.vlgmr.msrb.gmra.mxu0 %vm168_vm8, %v1126_v9 }
 0xb0c   :  { %3778 = vmatpush.xpose.msk.msra.mxu0 %vm168_vm8, %v1262_v15 }
 0xb0f   :  { %v1422_v16 = vpop.permute.xlu0 %1421  ;;  %v1260_v17 = vpop.permute.xlu1 %1259 }
 0xb10   :  { %3787 = vmatmul.msk.f32.vlgmr.msrb.gmra.mxu3 %vm168_vm8, %v1422_v16 }
 0xb13   :  { %3779 = vmatmul.msk.f32.vlgmr.msra.gmra.mxu0 %vm168_vm8, %v1260_v17 }
 0xb17   :  { %v1396_v18 = vpop.permute.xlu0 %1395 }
 0xb18   :  { %3784 = vmatpush.xpose.msk.msrb.mxu0 %vm168_vm8, %v1396_v18 }
 0xb1b   :  { %3785 = vmatmul.msk.f32.vlgmr.msrb.gmra.mxu0 %vm168_vm8, %v1394_v19 }
 0xb5e   :  { %v1017_v20 = vpop.f32.mrf.mxu2 }
 0xb5f   :  { %v1047_v21 = vmul.f32 0.35355338, %v1017_v20 }
 0xb61   :  { %v1049_v22 = vadd.f32 %v1047_v21, %v4567_v7 }
 0xb63   :  { %v1051_v23 = vsel %vm168_vm8, %v1049_v22, -inf }
 0xb64   :  { %1052 = vmax.xlane.f32.xlu0 %v1051_v23 }
 0xb78   :  { %v1044_v58 = vpop.f32.mrf.mxu0 }
 0xb79   :  { %v1048_v24 = vmul.f32 0.35355338, %v1044_v58 }
 0xb7b   :  { %v1050_v25 = vadd.f32 %v1048_v24, %v4584_v27 }
 0xb7d   :  { %v1054_v26 = vsel %vm168_vm8, %v1050_v25, -inf }
 0xb7e   :  { %1055 = vmax.xlane.f32.xlu1 %v1054_v26 }
 0xb83   :  { %v1178_v28 = vpop.f32.mrf.mxu3 }
 0xb84   :  { %v1182_v29 = vmul.f32 0.35355338, %v1178_v28 }
 0xb86   :  { %v1184_v30 = vadd.f32 %v1182_v29, %v4584_v27 }
 0xb88   :  { %v1150_v31 = vpop.f32.mrf.mxu0  ;;  %v1188_v32 = vsel %vm168_vm8, %v1184_v30, -inf }
 0xb89   :  { %v1181_v33 = vmul.f32 0.35355338, %v1150_v31  ;;  %1189 = vmax.xlane.f32.xlu2 %v1188_v32 }
 0xb8b   :  { %v1312_v34 = vpop.f32.mrf.mxu3  ;;  %v1183_v35 = vadd.f32 %v1181_v33, %v4567_v7 }
 0xb8c   :  { %v1316_v36 = vmul.f32 0.35355338, %v1312_v34 }
 0xb8d   :  { %v1185_v38 = vsel %vm168_vm8, %v1183_v35, -inf }
 0xb8e   :  { %1186 = vmax.xlane.f32.xlu1 %v1185_v38  ;;  %v1318_v39 = vadd.f32 %v1316_v36, %v4584_v27 }
 0xb90   :  { %v1284_v40 = vpop.f32.mrf.mxu0  ;;  %v1322_v37 = vsel %vm168_vm8, %v1318_v39, -inf }
 0xb91   :  { %v1315_v41 = vmul.f32 0.35355338, %v1284_v40  ;;  %1323 = vmax.xlane.f32.xlu0 %v1322_v37 }
 0xb93   :  { %v1446_v42 = vpop.f32.mrf.mxu3  ;;  %v1317_v43 = vadd.f32 %v1315_v41, %v4567_v7 }
 0xb94   :  { %v1450_v44 = vmul.f32 0.35355338, %v1446_v42 }
 0xb95   :  { %v1319_v45 = vsel %vm168_vm8, %v1317_v43, -inf }
 0xb96   :  { %1320 = vmax.xlane.f32.xlu2 %v1319_v45  ;;  %v1452_v46 = vadd.f32 %v1450_v44, %v4584_v27 }
 0xb98   :  { %v1418_v47 = vpop.f32.mrf.mxu0  ;;  %v1456_v48 = vsel %vm168_vm8, %v1452_v46, -inf }
 0xb99   :  { %v1449_v49 = vmul.f32 0.35355338, %v1418_v47  ;;  %1457 = vmax.xlane.f32.xlu1 %v1456_v48 }
 0xb9b   :  { %v1451_v50 = vadd.f32 %v1449_v49, %v4567_v7 }
 0xb9d   :  { %v1453_v51 = vsel %vm168_vm8, %v1451_v50, -inf }
 0xb9e   :  { %1454 = vmax.xlane.f32.xlu0 %v1453_v51 }
 0xbae   :  { %3918 = vrot.lane.b32.xlu2 %v3917_v52, %s5511_s22 }
 0xbd7   :  { %v1053_v55 = vpop.xlane.xlu0 %1052 }
 0xbd8   :  { %v1057_v56 = vsub.f32 %v1049_v22, %v1053_v55 }
 0xbda   :  { %v1059_v53 = vmul.f32 1.442695, %v1057_v56 }
 0xbdc   :  { %4028 = vpow2.f32 %v1059_v53 }
 0xbe2   :  { %v4824_v27 = vpop.eup %4028 }
 0xbe3   :  { %v1063_v57 = vsel %vm168_vm8, %v4824_v27, 0.0 }
 0xbe4   :  { %1064 = vadd.xlane.f32.xlu1 %v1063_v57 }
 0xbf1   :  { %v1056_v59 = vpop.xlane.xlu1 %1055 }
 0xbf2   :  { %v1058_v7 = vsub.f32 %v1050_v25, %v1056_v59 }
 0xbf4   :  { %v1061_v61 = vmul.f32 1.442695, %v1058_v7 }
 0xbf6   :  { %4030 = vpow2.f32 %v1061_v61 }
 0xbfc   :  { %v4031_v63 = vpop.eup %4030  ;;  %v1190_v60 = vpop.xlane.xlu2 %1189 }
 0xbfd   :  { %v1192_v0 = vsub.f32 %v1184_v30, %v1190_v60  ;;  %v1066_v2 = vsel %vm168_vm8, %v4031_v63, 0.0 }
 0xbfe   :  { %1067 = vadd.xlane.f32.xlu2 %v1066_v2 }
 0xbff   :  { %v1195_v4 = vmul.f32 1.442695, %v1192_v0 }
 0xc01   :  { %4032 = vpow2.f32 %v1195_v4  ;;  %v1187_v5 = vpop.xlane.xlu1 %1186 }
 0xc02   :  { %v1191_v6 = vsub.f32 %v1183_v35, %v1187_v5 }
 0xc04   :  { %v1193_v8 = vmul.f32 1.442695, %v1191_v6  ;;  %v1324_v9 = vpop.xlane.xlu0 %1323 }
 0xc05   :  { %v1326_v11 = vsub.f32 %v1318_v39, %v1324_v9 }
 0xc06   :  { %4034 = vpow2.f32 %v1193_v8 }
 0xc07   :  { %v4829_v12 = vpop.eup %4032  ;;  %v1329_v13 = vmul.f32 1.442695, %v1326_v11 }
 0xc08   :  { %v1200_v14 = vsel %vm168_vm8, %v4829_v12, 0.0 }
 0xc09   :  { %4036 = vpow2.f32 %v1329_v13  ;;  %1201 = vadd.xlane.f32.xlu0 %v1200_v14  ;;  %v1321_v15 = vpop.xlane.xlu2 %1320 }
 0xc0a   :  { %v1325_v16 = vsub.f32 %v1317_v43, %v1321_v15 }
 0xc0c   :  { %v4035_v17 = vpop.eup %4034  ;;  %v1327_v18 = vmul.f32 1.442695, %v1325_v16  ;;  %v1458_v19 = vpop.xlane.xlu1 %1457 }
 0xc0d   :  { %v1197_v20 = vsel %vm168_vm8, %v4035_v17, 0.0  ;;  %v1460_v22 = vsub.f32 %v1452_v46, %v1458_v19  ;;  %v3792_v19 = vld [vmem:[%s5459_s6 + $0x30] sm:$0xff] }
 0xc0e   :  { %1198 = vadd.xlane.f32.xlu1 %v1197_v20  ;;  %4038 = vpow2.f32 %v1327_v18  ;;  %v3793_v20 = vld [vmem:[%s5459_s6 + $0x38] sm:$0xff] }
 0xc0f   :  { %v4834_v21 = vpop.eup %4036  ;;  %v1463_v26 = vmul.f32 1.442695, %v1460_v22  ;;  %v3790_v22 = vld [vmem:[%s5459_s6 + $0x20] sm:$0xff] }
 0xc10   :  { %v1334_v23 = vsel %vm168_vm8, %v4834_v21, 0.0 }
 0xc11   :  { %1335 = vadd.xlane.f32.xlu0 %v1334_v23  ;;  %v3919_v58 = vpop.permute.xlu2 %3918  ;;  %v1455_v28 = vpop.xlane.xlu0 %1454  ;;  %4040 = vpow2.f32 %v1463_v26  ;;  %v3791_v23 = vld [vmem:[%s5459_s6 + $0x28] sm:$0xff] }
 0xc12   :  { %v3921_v24 = vunpack.i.h.bf16 %v3919_v58  ;;  %v3920_v25 = vunpack.i.l.bf16 %v3919_v58  ;;  %v1459_v30 = vsub.f32 %v1451_v50, %v1455_v28  ;;  %v1563_v58 = vpack.c.bf16 %v3791_v23, %v3790_v22 }
 0xc14   :  { %1094 = vmatpush.msra.mxu1 %v3921_v24  ;;  %1120 = vmatpush.msrb.mxu2 %v3920_v25  ;;  %v4039_v29 = vpop.eup %4038  ;;  %v1461_v32 = vmul.f32 1.442695, %v1459_v30 }
 0xc15   :  { %v1331_v31 = vsel %vm168_vm8, %v4039_v29, 0.0 }
 0xc16   :  { %3928 = vrot.lane.b32.xlu2 %v3917_v52, %s5512_s25  ;;  %4042 = vpow2.f32 %v1461_v32 }
 0xc17   :  { %v4041_v33 = vpop.eup %4040 }
 0xc18   :  { %v1468_v34 = vsel %vm168_vm8, %v4041_v33, 0.0 }
 0xc19   :  { %1332 = vadd.xlane.f32.xlu0 %v1331_v31 }
 0xc1c   :  { %v4043_v35 = vpop.eup %4042 }
 0xc1d   :  { %v1465_v36 = vsel %vm168_vm8, %v4043_v35, 0.0 }
 0xc1e   :  { %1501 = vrot.lane.b32.xlu2 %v4759_v3, %s5513_s2 }
 0xc21   :  { %1469 = vadd.xlane.f32.xlu0 %v1468_v34 }
 0xc27   :  { %3923 = vrot.lane.b32.xlu1 %v3917_v52, %s5514_s29 }
 0xc29   :  { %1466 = vadd.xlane.f32.xlu0 %v1465_v36 }
 0xc3d   :  { %1475 = vrot.lane.b32.xlu0 %v4755_v1, %s5513_s2  ;;  %s3723_s2 = sshll.u32 %s5474_s21, 4  ;;  %s3724_s2 = int_to_ptr.hbm [resolvable:$true] %s3723_s2 }
 0xc57   :  { %v1065_v38 = vpop.xlane.xlu1 %1064 }
 0xc58   :  { %4044 = vrcp.f32 %v1065_v38 }
 0xc5e   :  { %v4045_v39 = vpop.eup %4044 }
 0xc5f   :  { %v1071_v40 = vmul.f32 %v4045_v39, %v4824_v27 }
 0xc61   :  { %3770 = vmatmul.msk.f32.vlgmr.msra.gmra.mxu1 %vm168_vm8, %v1071_v40 }
 0xc71   :  { %v1068_v3 = vpop.xlane.xlu2 %1067 }
 0xc72   :  { %4046 = vrcp.f32 %v1068_v3 }
 0xc78   :  { %v4047_v37 = vpop.eup %4046 }
 0xc79   :  { %v1072_v41 = vmul.f32 %v4047_v37, %v4031_v63  ;;  %v3929_v1 = vpop.permute.xlu2 %3928  ;;  %v3968_v37 = vld [vmem:[%s5460_s7 + $0x1] ss:$0 sm:$0xff] }
 0xc7a   :  { %v3931_v56 = vunpack.i.h.bf16 %v3929_v1  ;;  %v3930_v53 = vunpack.i.l.bf16 %v3929_v1 }
 0xc7b   :  { %3771 = vmatmul.msk.f32.vlgmr.msrb.gmra.mxu2 %vm168_vm8, %v1072_v41 }
 0xc7c   :  { %v1202_v42 = vpop.xlane.xlu0 %1201 }
 0xc7d   :  { %4048 = vrcp.f32 %v1202_v42 }
 0xc81   :  { %v1199_v44 = vpop.xlane.xlu1 %1198  ;;  %v1502_v27 = vpop.permute.xlu2 %1501 }
 0xc82   :  { %4050 = vrcp.f32 %v1199_v44 }
 0xc83   :  { %v4049_v46 = vpop.eup %4048 }
 0xc84   :  { %v1336_v43 = vpop.xlane.xlu0 %1335  ;;  %v1206_v52 = vmul.f32 %v4049_v46, %v4829_v12 }
 0xc85   :  { %4052 = vrcp.f32 %v1336_v43 }
 0xc88   :  { %v4051_v47 = vpop.eup %4050 }
 0xc89   :  { %v1205_v55 = vmul.f32 %v4051_v47, %v4035_v17 }
 0xc8b   :  { %v4053_v57 = vpop.eup %4052 }
 0xc8c   :  { %v1333_v45 = vpop.xlane.xlu0 %1332  ;;  %v1340_v7 = vmul.f32 %v4053_v57, %v4834_v21  ;;  %v1564_v21 = vpack.c.bf16 %v3793_v20, %v3792_v19  ;;  %v3801_v57 = vld [vmem:[%s5463_s10 + $0x38] sm:$0xff] }
 0xc8d   :  { %4054 = vrcp.f32 %v1333_v45 }
 0xc8e   :  { %1579 = vmatpush.bf16.msra.mxu0 %v1564_v21  ;;  %v3969_v21 = vld [vmem:[%s5461_s8 + $0x1] ss:$0 sm:$0xff] }
 0xc92   :  { %1580 = vmatpush.bf16.msra.mxu0 %v1563_v58 }
 0xc93   :  { %v4055_v59 = vpop.eup %4054 }
 0xc94   :  { %v1470_v48 = vpop.xlane.xlu0 %1469  ;;  %v1339_v61 = vmul.f32 %v4055_v59, %v4039_v29 }
 0xc95   :  { %4056 = vrcp.f32 %v1470_v48 }
 0xc99   :  { %v3924_v49 = vpop.permute.xlu1 %3923 }
 0xc9a   :  { %v3926_v50 = vunpack.i.h.bf16 %v3924_v49  ;;  %v3925_v51 = vunpack.i.l.bf16 %v3924_v49 }
 0xc9b   :  { %v4057_v60 = vpop.eup %4056 }
 0xc9c   :  { %1228 = vmatpush.msrb.mxu1 %v3926_v50  ;;  %1254 = vmatpush.msra.mxu2 %v3925_v51  ;;  %v1467_v63 = vpop.xlane.xlu0 %1466  ;;  %v1474_v0 = vmul.f32 %v4057_v60, %v4041_v33  ;;  %v3799_v60 = vld [vmem:[%s5463_s10 + $0x28] sm:$0xff] }
 0xc9d   :  { %3776 = vmatmul.msk.f32.vlgmr.msrb.gmra.mxu1 %vm168_vm8, %v1205_v55  ;;  %3777 = vmatmul.msk.f32.vlgmr.msra.gmra.mxu2 %vm168_vm8, %v1206_v52  ;;  %4058 = vrcp.f32 %v1467_v63  ;;  %v3798_v63 = vld [vmem:[%s5463_s10 + $0x20] sm:$0xff] }
 0xc9e   :  { %1362 = vmatpush.msra.mxu1 %v3931_v56  ;;  %1388 = vmatpush.msrb.mxu2 %v3930_v53 }
 0xca0   :  { %1522 = vmatpush.msra.mxu2 %v1502_v27 }
 0xca3   :  { %v4059_v2 = vpop.eup %4058 }
 0xca4   :  { %v1473_v4 = vmul.f32 %v4059_v2, %v4043_v35  ;;  %v1653_v2 = vpack.c.bf16 %v3799_v60, %v3798_v63 }
 0xca5   :  { %3782 = vmatmul.msk.f32.vlgmr.msra.gmra.mxu1 %vm168_vm8, %v1339_v61  ;;  %3783 = vmatmul.msk.f32.vlgmr.msrb.gmra.mxu2 %vm168_vm8, %v1340_v7 }
 0xcad   :  { %3789 = vmatmul.msk.f32.vlgmr.msra.gmra.mxu2 %vm168_vm8, %v1474_v0 }
 0xcaf   :  { %v1476_v5 = vpop.permute.xlu0 %1475 }
 0xcb0   :  { %1496 = vmatpush.msrb.mxu1 %v1476_v5 }
 0xcb1   :  { %3788 = vmatmul.msk.f32.vlgmr.msrb.gmra.mxu1 %vm168_vm8, %v1473_v4 }
 0xcde   :  { %v1096_v6 = vpop.f32.mrf.mxu1 }
 0xcfe   :  { %v1122_v8 = vpop.f32.mrf.mxu2 }
 0xd1a   :  { %v1230_v9 = vpop.f32.mrf.mxu1 }
 0xd20   :  { %v1256_v11 = vpop.f32.mrf.mxu2 }
 0xd21   :  { %v3932_v12 = vpack.i.bf16 %v1256_v11, %v1230_v9 }
 0xd22   :  { %v1364_v13 = vpop.f32.mrf.mxu1 }
 0xd23   :  { %3933 = vrot.lane.b32.xlu1 %v3932_v12, %s5515_s26 }
 0xd28   :  { %v1390_v14 = vpop.f32.mrf.mxu2 }
 0xd29   :  { %v3937_v15 = vpack.i.bf16 %v1390_v14, %v1364_v13 }
 0xd2b   :  { %3938 = vrot.lane.b32.xlu2 %v3937_v15, %s5516_s0 }
 0xd2e   :  { %v1498_v16 = vpop.f32.mrf.mxu1 }
 0xd30   :  { %v1524_v17 = vpop.f32.mrf.mxu2 }
 0xd31   :  { %v3942_v18 = vpack.i.bf16 %v1524_v17, %v1498_v16 }
 0xd33   :  { %3943 = vrot.lane.b32.xlu1 %v3942_v18, %s5517_s23 }
 0xd85   :  { %v3939_v28 = vpop.permute.xlu2 %3938 }
 0xd86   :  { %v3941_v31 = vunpack.i.h.bf16 %v3939_v28  ;;  %v3940_v32 = vunpack.i.l.bf16 %v3939_v28 }
 0xd95   :  { %v3934_v24 = vpop.permute.xlu1 %3933 }
 0xd96   :  { %v3936_v25 = vunpack.i.h.bf16 %v3934_v24  ;;  %v3935_v26 = vunpack.i.l.bf16 %v3934_v24  ;;  %v3970_v24 = vld [vmem:[%s5462_s9 + $0x1] ss:$0 sm:$0xff]  ;;  %s4371_s9 = smov [#allocation2]  }
 0xd97   :  { %s3721_s25 = sshll.u32 %s4371_s9, 4  ;;  %s3722_s25 = int_to_ptr.vmem [resolvable:$true] %s3721_s25 }
 0xd98   :  { %v1552_v29 = vsel %vm168_vm8, %v1122_v8, %v3936_v25  ;;  %v1551_v30 = vsel %vm168_vm8, %v1096_v6, %v3935_v26 }
 0xd99   :  { %v1553_v36 = vsel %vm732_vm9, %v1551_v30, %v3940_v32  ;;  %v1554_v38 = vsel %vm732_vm9, %v1552_v29, %v3941_v31  ;;  %v3810_v32 = vld [vmem:[%s5465_s12 + $0x70] sm:$0xff] }
 0xda5   :  { %v3944_v33 = vpop.permute.xlu1 %3943 }
 0xda6   :  { %v3946_v34 = vunpack.i.h.bf16 %v3944_v33  ;;  %v3945_v35 = vunpack.i.l.bf16 %v3944_v33  ;;  %v3811_v33 = vld [vmem:[%s5465_s12 + $0x78] sm:$0xff] }
 0xda8   :  { %v1556_v39 = vsel %vm735_vm10, %v1554_v38, %v3946_v34  ;;  %v1555_v40 = vsel %vm735_vm10, %v1553_v36, %v3945_v35  ;;  %v1708_v34 = vpack.c.bf16 %v3811_v33, %v3810_v32  ;;  %v3808_v35 = vld [vmem:[%s5465_s12 + $0x60] sm:$0xff]  ;;  %v3809_v36 = vld [vmem:[%s5465_s12 + $0x68] sm:$0xff]  ;;  %v3819_v32 = vld [vmem:[%s5469_s16 + $0x30] sm:$0xff] }
 0xda9   :  { %v1562_v3 = vpack.c.bf16 %v1556_v39, %v1555_v40  ;;  %v1707_v38 = vpack.c.bf16 %v3809_v36, %v3808_v35  ;;  %v3806_v39 = vld [vmem:[%s5465_s12 + $0x50] sm:$0xff]  ;;  %v3807_v40 = vld [vmem:[%s5465_s12 + $0x58] sm:$0xff] }
 0xdaa   :  { %1721 = vmatpush.bf16.msra.mxu1 %v1708_v34  ;;  %v3820_v34 = vld [vmem:[%s5469_s16 + $0x38] sm:$0xff] }
 0xdab   :  { %3795 = vmatmul.msk.bf16.vlgmr.msra.gmra.mxu0 %vm74_vm0, %v1562_v3  ;;  %v1706_v3 = vpack.c.bf16 %v3807_v40, %v3806_v39  ;;  %v1825_v36 = vpack.c.bf16 %v3820_v34, %v3819_v32  ;;  %v1791_v39 = vld [vmem:[%s5469_s16] sm:$0xff]  ;;  %v1792_v40 = vld [vmem:[%s5469_s16 + $0x8] sm:$0xff] }
 0xdad   :  { %1837 = vmatpush.bf16.msrb.mxu0 %v1825_v36 }
 0xdae   :  { %1722 = vmatpush.bf16.msra.mxu1 %v1707_v38 }
 0xdb2   :  { %1723 = vmatpush.bf16.msra.mxu1 %v1706_v3  ;;  %v3817_v3 = vld [vmem:[%s5469_s16 + $0x20] sm:$0xff] }
 0xe28   :  { %v1582_v41 = vpop.f32.mrf.mxu0 }
 0xe29   :  { %v1583_v42 = vadd.f32 %v3968_v37, %v1582_v41  ;;  %v3805_v41 = vld [vmem:[%s5465_s12 + $0x48] sm:$0xff] }
 0xe2b   :  { %v1587_v43 = vadd.f32 %v1583_v42, %v4745_v54  ;;  %v3971_v42 = vld [vmem:[%s5464_s11 + $0x1] ss:$0 sm:$0xff] }
 0xe2d   :  { %v1593_v44 = vsel %vm74_vm0, %v1587_v43, 0.0 }
 0xe2e   :  { %1594 = vadd.xlane.f32.xlu2 %v1593_v44 }
 0xe30   :  { %v1584_v45 = vpop.f32.mrf.mxu0 }
 0xe31   :  { %v1585_v1 = vadd.f32 %v3968_v37, %v1584_v45  ;;  %v3804_v37 = vld [vmem:[%s5465_s12 + $0x40] sm:$0xff] }
 0xe33   :  { %v1588_v46 = vadd.f32 %v1585_v1, %v4747_v62  ;;  %v3800_v62 = vld [vmem:[%s5463_s10 + $0x30] sm:$0xff] }
 0xe34   :  { %v1654_v59 = vpack.c.bf16 %v3801_v57, %v3800_v62 }
 0xe35   :  { %v1596_v47 = vsel %vm74_vm0, %v1588_v46, 0.0 }
 0xe36   :  { %1597 = vadd.xlane.f32.xlu1 %v1596_v47  ;;  %1669 = vmatpush.bf16.msra.mxu3 %v1654_v59 }
 0xe3a   :  { %1670 = vmatpush.bf16.msra.mxu3 %v1653_v2  ;;  %v3972_v2 = vld [vmem:[%s5466_s13 + $0x1] ss:$0 sm:$0xff] }
 0xea1   :  { %v1595_v48 = vpop.xlane.xlu2 %1594 }
 0xea2   :  { %v1599_v49 = vmul.f32 %v1595_v48, %v4490_v10 }
 0xea4   :  { %v1601_v50 = vsub.f32 %v1587_v43, %v1599_v49  ;;  %v1705_v43 = vpack.c.bf16 %v3805_v41, %v3804_v37  ;;  %v4369_v37 = vmov 0  }
 0xea6   :  { %v1603_v51 = vmul.f32 %v1601_v50, %v1601_v50  ;;  %1724 = vmatpush.bf16.msra.mxu1 %v1705_v43  ;;  %v3818_v43 = vld [vmem:[%s5469_s16 + $0x28] sm:$0xff] }
 0xea8   :  { %v1605_v52 = vsel %vm74_vm0, %v1603_v51, 0.0 }
 0xea9   :  { %v1598_v55 = vpop.xlane.xlu1 %1597  ;;  %1606 = vadd.xlane.f32.xlu0 %v1605_v52 }
 0xeaa   :  { %v1600_v54 = vmul.f32 %v1598_v55, %v4490_v10 }
 0xeac   :  { %v1602_v56 = vsub.f32 %v1588_v46, %v1600_v54 }
 0xeae   :  { %v1604_v53 = vmul.f32 %v1602_v56, %v1602_v56 }
 0xeb0   :  { %v1608_v27 = vsel %vm74_vm0, %v1604_v53, 0.0 }
 0xeb1   :  { %1609 = vadd.xlane.f32.xlu2 %v1608_v27 }
 0xf1c   :  { %v1607_v7 = vpop.xlane.xlu0 %1606 }
 0xf1d   :  { %v1611_v61 = vmul.f32 %v1607_v7, %v4490_v10 }
 0xf1f   :  { %v1613_v0 = vadd.f32 1e-05, %v1611_v61 }
 0xf21   :  { %4060 = vrsqrt.f32 %v1613_v0  ;;  %vm1621_vm9 = vweird.f32 %v1613_v0 }
 0xf24   :  { %v1610_v4 = vpop.xlane.xlu2 %1609 }
 0xf25   :  { %v1612_v5 = vmul.f32 %v1610_v4, %v4490_v10 }
 0xf27   :  { %v4061_v6 = vpop.eup %4060  ;;  %v1614_v8 = vadd.f32 1e-05, %v1612_v5 }
 0xf28   :  { %v1616_v9 = vmul.f32 %v4061_v6, %v1613_v0  ;;  %vm1622_vm8 = vweird.f32 %v4061_v6 }
 0xf29   :  { %4062 = vrsqrt.f32 %v1614_v8  ;;  %vm1623_vm10 = vmor %vm1621_vm9, %vm1622_vm8  ;;  %vm1631_vm13 = vweird.f32 %v1614_v8 }
 0xf2a   :  { %v1617_v11 = vmul.f32 %v4061_v6, %v1616_v9 }
 0xf2c   :  { %v1618_v12 = vmul.f32 0.5, %v1617_v11 }
 0xf2e   :  { %v1619_v13 = vsub.f32 1.5, %v1618_v12 }
 0xf2f   :  { %v4063_v14 = vpop.eup %4062 }
 0xf30   :  { %v1620_v15 = vmul.f32 %v4061_v6, %v1619_v13  ;;  %v1626_v16 = vmul.f32 %v4063_v14, %v1614_v8  ;;  %vm1632_vm12 = vweird.f32 %v4063_v14 }
 0xf31   :  { %vm1633_vm14 = vmor %vm1631_vm13, %vm1632_vm12 }
 0xf32   :  { %v1627_v17 = vmul.f32 %v4063_v14, %v1626_v16  ;;  %v1624_v18 = vsel %vm1623_vm10, %v4061_v6, %v1620_v15 }
 0xf33   :  { %v1635_v22 = vmul.f32 %v1624_v18, %v1601_v50 }
 0xf34   :  { %v1628_v19 = vmul.f32 0.5, %v1627_v17 }
 0xf35   :  { %v1640_v25 = vmul.f32 %v3969_v21, %v1635_v22 }
 0xf36   :  { %v1629_v20 = vsub.f32 1.5, %v1628_v19 }
 0xf37   :  { %v1645_v29 = vadd.f32 %v3970_v24, %v1640_v25 }
 0xf38   :  { %v1630_v23 = vmul.f32 %v4063_v14, %v1629_v20 }
 0xf3a   :  { %v1634_v58 = vsel %vm1633_vm14, %v4063_v14, %v1630_v23 }
 0xf3b   :  { %v1636_v26 = vmul.f32 %v1634_v58, %v1602_v56  ;;  %v1847_v58 = vld [vmem:[%s5470_s17 + $0x10] sm:$0xff] }
 0xf3d   :  { %v1641_v28 = vmul.f32 %v3969_v21, %v1636_v26  ;;  %v1845_v26 = vld [vmem:[%s5470_s17] sm:$0xff] }
 0xf3f   :  { %v1646_v30 = vadd.f32 %v3970_v24, %v1641_v28  ;;  %v1848_v24 = vld [vmem:[%s5470_s17 + $0x18] sm:$0xff]  ;;  %v1846_v28 = vld [vmem:[%s5470_s17 + $0x8] sm:$0xff] }
 0xf40   :  { %v4963_v25 = vpack.c.bf16 %v1848_v24, %v1847_v58 }
 0xf41   :  { %v1652_v31 = vpack.c.bf16 %v1646_v30, %v1645_v29 }
 0xf42   :  { %1865 = vmatpush.bf16.msrb.mxu3 %v4963_v25  ;;  %2069 = vmatpush.bf16.msrb.mxu1 %v4963_v25 }
 0xf43   :  { %3803 = vmatmul.msk.bf16.vlgmr.msra.gmra.mxu3 %vm74_vm0, %v1652_v31  ;;  %v1794_v31 = vld [vmem:[%s5469_s16 + $0x18] sm:$0xff] }
 0xfc6   :  { %v1672_v44 = vpop.f32.mrf.mxu3 }
 0xfc7   :  { %v1673_v45 = vadd.f32 %v3971_v42, %v1672_v44  ;;  %v1824_v44 = vpack.c.bf16 %v3818_v43, %v3817_v3 }
 0xfc9   :  { %v1679_v1 = vmul.f32 0.044715, %v1673_v45  ;;  %v1677_v59 = vmul.f32 0.5, %v1673_v45  ;;  %1838 = vmatpush.bf16.msrb.mxu0 %v1824_v44 }
 0xfcb   :  { %v1681_v46 = vmul.f32 %v1679_v1, %v1673_v45  ;;  %v3826_v1 = vld [vmem:[%s5470_s17 + $0x38] sm:$0xff] }
 0xfcd   :  { %v1683_v47 = vmul.f32 %v1681_v46, %v1673_v45  ;;  %v3823_v46 = vld [vmem:[%s5470_s17 + $0x20] sm:$0xff] }
 0xfce   :  { %v1674_v48 = vpop.f32.mrf.mxu3 }
 0xfcf   :  { %v1685_v49 = vadd.f32 %v1683_v47, %v1673_v45  ;;  %v1675_v50 = vadd.f32 %v3971_v42, %v1674_v48  ;;  %v1796_v42 = vpack.c.bf16 %v1792_v40, %v1791_v39  ;;  %v3825_v45 = vld [vmem:[%s5470_s17 + $0x30] sm:$0xff] }
 0xfd0   :  { %v5016_v48 = vpack.c.bf16 %v3826_v1, %v3825_v45 }
 0xfd1   :  { %v1680_v51 = vmul.f32 0.044715, %v1675_v50  ;;  %v1687_v52 = vmul.f32 0.7978846, %v1685_v49  ;;  %v1678_v7 = vmul.f32 0.5, %v1675_v50  ;;  %v3824_v49 = vld [vmem:[%s5470_s17 + $0x28] sm:$0xff] }
 0xfd2   :  { %2183 = vmatpush.bf16.msra.mxu0 %v5016_v48 }
 0xfd3   :  { %v1682_v55 = vmul.f32 %v1680_v51, %v1675_v50  ;;  %4064 = vtanh.f32 %v1687_v52  ;;  %v5024_v51 = vpack.c.bf16 %v3824_v49, %v3823_v46 }
 0xfd5   :  { %v1684_v54 = vmul.f32 %v1682_v55, %v1675_v50 }
 0xfd6   :  { %2184 = vmatpush.bf16.msra.mxu0 %v5024_v51 }
 0xfd7   :  { %v1686_v56 = vadd.f32 %v1684_v54, %v1675_v50 }
 0xfd9   :  { %v1688_v53 = vmul.f32 0.7978846, %v1686_v56  ;;  %v4065_v27 = vpop.eup %4064 }
 0xfda   :  { %v1691_v62 = vadd.f32 1.0, %v4065_v27 }
 0xfdb   :  { %4066 = vtanh.f32 %v1688_v53 }
 0xfdc   :  { %v1693_v63 = vmul.f32 %v1691_v62, %v1677_v59 }
 0xfe1   :  { %v4067_v57 = vpop.eup %4066 }
 0xfe2   :  { %v1692_v61 = vadd.f32 1.0, %v4067_v57 }
 0xfe4   :  { %v1694_v60 = vmul.f32 %v1692_v61, %v1678_v7 }
 0xfe6   :  { %v1704_v0 = vpack.c.bf16 %v1694_v60, %v1693_v63  ;;  %v3973_v60 = vld [vmem:[%s5467_s14 + $0x1] ss:$0 sm:$0xff] }
 0xfe8   :  { %3813 = vmatmul.msk.bf16.vlgmr.msra.gmra.mxu1 %vm887_vm2, %v1704_v0 }
0x1065   :  { %v1726_v4 = vpop.f32.mrf.mxu1 }
0x1066   :  { %v1727_v5 = vadd.f32 %v3972_v2, %v1726_v4 }
0x1068   :  { %v1731_v6 = vadd.f32 %v1727_v5, %v1645_v29  ;;  %v4973_v29 = vpack.c.bf16 %v1846_v28, %v1845_v26  ;;  %v3974_v5 = vld [vmem:[%s5468_s15 + $0x1] ss:$0 sm:$0xff] }
0x1069   :  { %v3975_v26 = vld [vmem:[%s5471_s18 + $0x1] ss:$0 sm:$0xff] }
0x106a   :  { %v1737_v8 = vsel %vm74_vm0, %v1731_v6, 0.0  ;;  %1866 = vmatpush.bf16.msrb.mxu3 %v4973_v29  ;;  %2070 = vmatpush.bf16.msrb.mxu1 %v4973_v29 }
0x106b   :  { %1738 = vadd.xlane.f32.xlu1 %v1737_v8 }
0x106d   :  { %v1728_v9 = vpop.f32.mrf.mxu1  ;;  %1867 = vmatmul.bf16.vlgmr.msrb.gmra.mxu3 %v4369_v37 }
0x106e   :  { %v1729_v11 = vadd.f32 %v3972_v2, %v1728_v9  ;;  %2297 = vmatpush.bf16.msra.mxu3 %v4963_v25  ;;  %2527 = vmatpush.bf16.msra.mxu1 %v4963_v25 }
0x1070   :  { %v1732_v12 = vadd.f32 %v1729_v11, %v1646_v30  ;;  %v1793_v30 = vld [vmem:[%s5469_s16 + $0x10] sm:$0xff] }
0x1071   :  { %v1797_v33 = vpack.c.bf16 %v1794_v31, %v1793_v30 }
0x1072   :  { %v1740_v13 = vsel %vm74_vm0, %v1732_v12, 0.0  ;;  %2298 = vmatpush.bf16.msra.mxu3 %v4973_v29  ;;  %2528 = vmatpush.bf16.msra.mxu1 %v4973_v29 }
0x1073   :  { %1741 = vadd.xlane.f32.xlu2 %v1740_v13  ;;  %1811 = vmatpush.bf16.msrb.mxu2 %v1797_v33 }
0x1076   :  { %2757 = vmatpush.bf16.msrb.mxu3 %v4963_v25 }
0x1077   :  { %1812 = vmatpush.bf16.msrb.mxu2 %v1796_v42 }
0x107a   :  { %2758 = vmatpush.bf16.msrb.mxu3 %v4973_v29 }
0x107b   :  { %1960 = vmatpush.bf16.msra.mxu2 %v5016_v48 }
0x107f   :  { %1961 = vmatpush.bf16.msra.mxu2 %v5024_v51 }
0x10de   :  { %v1739_v14 = vpop.xlane.xlu1 %1738 }
0x10df   :  { %v1743_v15 = vmul.f32 %v1739_v14, %v4490_v10 }
0x10e1   :  { %v4946_v16 = vsub.f32 %v1731_v6, %v1743_v15 }
0x10e3   :  { %v1747_v17 = vmul.f32 %v4946_v16, %v4946_v16 }
0x10e5   :  { %v1749_v18 = vsel %vm74_vm0, %v1747_v17, 0.0 }
0x10e6   :  { %v1742_v19 = vpop.xlane.xlu2 %1741  ;;  %1750 = vadd.xlane.f32.xlu0 %v1749_v18 }
0x10e7   :  { %v1744_v20 = vmul.f32 %v1742_v19, %v4490_v10 }
0x10e9   :  { %v4952_v21 = vsub.f32 %v1732_v12, %v1744_v20 }
0x10eb   :  { %v1748_v22 = vmul.f32 %v4952_v21, %v4952_v21 }
0x10ed   :  { %v1752_v23 = vsel %vm74_vm0, %v1748_v22, 0.0 }
0x10ee   :  { %1753 = vadd.xlane.f32.xlu1 %v1752_v23 }
0x10f0   :  { %v1868_v14 = vpop.f32.mrf.mxu3 }
0x10f1   :  { %v1873_v22 = vrot.slane %v1868_v14, 1 }
0x10f8   :  { %v1870_v15 = vpop.f32.mrf.mxu3 }
0x1159   :  { %v1751_v35 = vpop.xlane.xlu0 %1750 }
0x115a   :  { %v1755_v38 = vmul.f32 %v1751_v35, %v4490_v10 }
0x115c   :  { %v1757_v41 = vadd.f32 1e-05, %v1755_v38 }
0x115e   :  { %4068 = vrsqrt.f32 %v1757_v41  ;;  %vm1765_vm1 = vweird.f32 %v1757_v41 }
0x1161   :  { %v1754_v47 = vpop.xlane.xlu1 %1753 }
0x1162   :  { %v1756_v50 = vmul.f32 %v1754_v47, %v4490_v10 }
0x1164   :  { %v4069_v52 = vpop.eup %4068  ;;  %v1758_v55 = vadd.f32 1e-05, %v1756_v50 }
0x1165   :  { %v1760_v54 = vmul.f32 %v4069_v52, %v1757_v41  ;;  %vm1766_vm15 = vweird.f32 %v4069_v52 }
0x1166   :  { %4070 = vrsqrt.f32 %v1758_v55  ;;  %vm1767_vm3 = vmor %vm1765_vm1, %vm1766_vm15  ;;  %vm1775_vm5 = vweird.f32 %v1758_v55 }
0x1167   :  { %v1761_v56 = vmul.f32 %v4069_v52, %v1760_v54 }
0x1169   :  { %v1762_v53 = vmul.f32 0.5, %v1761_v56 }
0x116b   :  { %v1763_v27 = vsub.f32 1.5, %v1762_v53 }
0x116c   :  { %v4071_v10 = vpop.eup %4070 }
0x116d   :  { %v1764_v62 = vmul.f32 %v4069_v52, %v1763_v27  ;;  %v1770_v57 = vmul.f32 %v4071_v10, %v1758_v55  ;;  %vm1776_vm4 = vweird.f32 %v4071_v10 }
0x116e   :  { %vm1777_vm6 = vmor %vm1775_vm5, %vm1776_vm4 }
0x116f   :  { %v1771_v59 = vmul.f32 %v4071_v10, %v1770_v57  ;;  %v1768_v7 = vsel %vm1767_vm3, %v4069_v52, %v1764_v62 }
0x1170   :  { %v1779_v0 = vmul.f32 %v1768_v7, %v4946_v16  ;;  %v3976_v16 = vld [vmem:[%s5471_s18] ss:$0 sm:$0xff]  ;;  %s4370_s18 = smov 32  }
0x1171   :  { %v1772_v61 = vmul.f32 0.5, %v1771_v59 }
0x1172   :  { %v1784_v6 = vmul.f32 %v3973_v60, %v1779_v0 }
0x1173   :  { %v1773_v63 = vsub.f32 1.5, %v1772_v61 }
0x1174   :  { %v1789_v11 = vadd.f32 %v3974_v5, %v1784_v6 }
0x1175   :  { %v1774_v2 = vmul.f32 %v4071_v10, %v1773_v63 }
0x1177   :  { %v1778_v4 = vsel %vm1777_vm6, %v4071_v10, %v1774_v2 }
0x1178   :  { %v1780_v8 = vmul.f32 %v1778_v4, %v4952_v21 }
0x117a   :  { %v1785_v9 = vmul.f32 %v3973_v60, %v1780_v8 }
0x117c   :  { %v1790_v12 = vadd.f32 %v3974_v5, %v1785_v9 }
0x117e   :  { %v1795_v13 = vpack.c.bf16 %v1790_v12, %v1789_v11 }
0x1180   :  { %3816 = vmatmul.msk.bf16.vlgmr.msrb.gmra.mxu2 %vm74_vm0, %v1795_v13  ;;  %3822 = vmatmul.msk.bf16.vlgmr.msrb.gmra.mxu0 %vm74_vm0, %v1795_v13 }
0x1181   :  { %2412 = vmatpush.bf16.msrb.mxu2 %v5016_v48  ;;  %2642 = vmatpush.bf16.msrb.mxu0 %v5016_v48 }
0x1185   :  { %2413 = vmatpush.bf16.msrb.mxu2 %v5024_v51  ;;  %2643 = vmatpush.bf16.msrb.mxu0 %v5024_v51 }
0x1190   :  { %1962 = vmatmul.bf16.vlgmr.msra.gmra.mxu2 %v4369_v37 }
0x1191   :  { %2872 = vmatpush.bf16.msra.mxu2 %v5016_v48 }
0x1195   :  { %2873 = vmatpush.bf16.msra.mxu2 %v5024_v51 }
0x11fd   :  { %v1840_v20 = vpop.f32.mrf.mxu0 }
0x11fe   :  { %v5058_v31 = vadd.f32 %v3975_v26, %v1840_v20 }
0x1203   :  { %v1814_v17 = vpop.f32.mrf.mxu2 }
0x1204   :  { %v5048_v18 = vadd.f32 %v3976_v16, %v1814_v17 }
0x1205   :  { %v1842_v28 = vpop.f32.mrf.mxu0 }
0x1206   :  { %v1876_v19 = vadd.f32 %v1868_v14, %v5048_v18  ;;  %v5060_v32 = vadd.f32 %v3975_v26, %v1842_v28 }
0x1208   :  { %4072 = vtanh.f32 %v1876_v19  ;;  %v3827_v43 = vmul.f32 -1.442695, %v1876_v19 }
0x120b   :  { %v1816_v21 = vpop.f32.mrf.mxu2 }
0x120c   :  { %v5051_v23 = vadd.f32 %v3976_v16, %v1816_v21 }
0x120e   :  { %v4073_v58 = vpop.eup %4072  ;;  %v1877_v24 = vadd.f32 %v1873_v22, %v5051_v23 }
0x120f   :  { %1922 = vrot.lane.b32.xlu0 %v4073_v58, %s5511_s22 }
0x1210   :  { %4074 = vtanh.f32 %v1877_v24  ;;  %v3828_v37 = vmul.f32 -1.442695, %v1877_v24 }
0x1213   :  { %v1963_v30 = vpop.f32.mrf.mxu2 }
0x1214   :  { %v1968_v33 = vrot.slane %v1963_v30, 1  ;;  %v1969_v34 = vrot.slane %v1963_v30, 2 }
0x1216   :  { %v4075_v35 = vpop.eup %4074  ;;  %v1972_v36 = vadd.f32 %v1968_v33, %v5058_v31  ;;  %v1973_v38 = vadd.f32 %v1969_v34, %v5060_v32 }
0x1217   :  { %1924 = vrot.lane.b32.xlu2 %v4075_v35, %s5511_s22 }
0x1218   :  { %4076 = vtanh.f32 %v1972_v36  ;;  %v3829_v49 = vmul.f32 -1.442695, %v1972_v36  ;;  %v3830_v50 = vmul.f32 -1.442695, %v1973_v38 }
0x1219   :  { %4078 = vtanh.f32 %v1973_v38 }
0x121a   :  { %4080 = vpow2.f32 %v3828_v37 }
0x121b   :  { %v1965_v39 = vpop.f32.mrf.mxu2 }
0x121e   :  { %v4077_v40 = vpop.eup %4076 }
0x121f   :  { %v4079_v3 = vpop.eup %4078  ;;  %2018 = vrot.lane.b32.xlu1 %v4077_v40, %s5511_s22 }
0x1220   :  { %2020 = vrot.lane.b32.xlu0 %v4079_v3, %s5511_s22  ;;  %v4081_v41 = vpop.eup %4080 }
0x1221   :  { %v1885_v42 = vadd.f32 1.0, %v4081_v41 }
0x1223   :  { %4082 = vrcp.f32 %v1885_v42  ;;  %v1912_v56 = vand.u32 2147483648, %v1885_v42  ;;  %vm1906_vm11 = vweird.f32 %v1885_v42  ;;  %v1910_v53 = vand.u32 2147483647, %v1885_v42 }
0x1224   :  { %4084 = vpow2.f32 %v3827_v43 }
0x1225   :  { %v1913_v59 = vor.u32 1.1754944e-38, %v1912_v56  ;;  %vm1911_vm9 = vcmp.eq.f32.partialorder %v1910_v53, 8.507059e+37 }
0x1229   :  { %v4083_v44 = vpop.eup %4082 }
0x122a   :  { %v4085_v45 = vpop.eup %4084  ;;  %v1902_v1 = vmul.f32 %v4083_v44, %v1885_v42  ;;  %vm1907_vm7 = vweird.f32 %v4083_v44 }
0x122b   :  { %v1884_v46 = vadd.f32 1.0, %v4085_v45  ;;  %vm1908_vm8 = vmor %vm1906_vm11, %vm1907_vm7 }
0x122c   :  { %v1903_v47 = vsub.f32 1.0, %v1902_v1 }
0x122d   :  { %4086 = vrcp.f32 %v1884_v46  ;;  %v1897_v8 = vand.u32 2147483648, %v1884_v46  ;;  %vm1891_vm12 = vweird.f32 %v1884_v46  ;;  %v1895_v11 = vand.u32 2147483647, %v1884_v46 }
0x122e   :  { %v1904_v52 = vmul.f32 %v4083_v44, %v1903_v47  ;;  %4088 = vpow2.f32 %v3829_v49 }
0x122f   :  { %4090 = vpow2.f32 %v3830_v50  ;;  %v1898_v14 = vor.u32 1.1754944e-38, %v1897_v8  ;;  %vm1896_vm14 = vcmp.eq.f32.partialorder %v1895_v11, 8.507059e+37 }
0x1230   :  { %v1905_v55 = vadd.f32 %v4083_v44, %v1904_v52 }
0x1232   :  { %v1909_v10 = vsel %vm1908_vm8, %v4083_v44, %v1905_v55  ;;  %vm2055_vm8 = vcmask 1041409  }
0x1233   :  { %v4087_v54 = vpop.eup %4086  ;;  %v5067_v63 = vsel %vm1911_vm9, %v1913_v59, %v1909_v10 }
0x1234   :  { %v4089_v27 = vpop.eup %4088  ;;  %v1887_v62 = vmul.f32 %v4087_v54, %v1884_v46  ;;  %vm1892_vm10 = vweird.f32 %v4087_v54  ;;  %v1919_v44 = vmul.f32 0.0, %v5067_v63 }
0x1235   :  { %v4091_v57 = vpop.eup %4090  ;;  %v1980_v7 = vadd.f32 1.0, %v4089_v27  ;;  %vm1893_vm13 = vmor %vm1891_vm12, %vm1892_vm10 }
0x1236   :  { %v1981_v60 = vadd.f32 1.0, %v4091_v57  ;;  %v1888_v2 = vsub.f32 1.0, %v1887_v62 }
0x1237   :  { %4092 = vrcp.f32 %v1980_v7  ;;  %v1993_v26 = vand.u32 2147483648, %v1980_v7  ;;  %vm1987_vm3 = vweird.f32 %v1980_v7  ;;  %v1991_v30 = vand.u32 2147483647, %v1980_v7 }
0x1238   :  { %4094 = vrcp.f32 %v1981_v60  ;;  %v1889_v4 = vmul.f32 %v4087_v54, %v1888_v2  ;;  %v2008_v33 = vand.u32 2147483648, %v1981_v60  ;;  %vm2002_vm5 = vweird.f32 %v1981_v60 }
0x1239   :  { %v2006_v34 = vand.u32 2147483647, %v1981_v60  ;;  %v1994_v36 = vor.u32 1.1754944e-38, %v1993_v26  ;;  %vm1992_vm7 = vcmp.eq.f32.partialorder %v1991_v30, 8.507059e+37 }
0x123a   :  { %v1890_v5 = vadd.f32 %v4087_v54, %v1889_v4  ;;  %v2009_v39 = vor.u32 1.1754944e-38, %v2008_v33 }
0x123b   :  { %vm2007_vm11 = vcmp.eq.f32.partialorder %v2006_v34, 8.507059e+37 }
0x123c   :  { %v1894_v12 = vsel %vm1893_vm13, %v4087_v54, %v1890_v5 }
0x123d   :  { %v4093_v6 = vpop.eup %4092  ;;  %v5071_v17 = vsel %vm1896_vm14, %v1898_v14, %v1894_v12 }
0x123e   :  { %v4095_v9 = vpop.eup %4094  ;;  %v1983_v13 = vmul.f32 %v4093_v6, %v1980_v7  ;;  %vm1988_vm15 = vweird.f32 %v4093_v6  ;;  %v1918_v52 = vmul.f32 0.0, %v5071_v17 }
0x123f   :  { %v1998_v15 = vmul.f32 %v4095_v9, %v1981_v60  ;;  %vm2003_vm1 = vweird.f32 %v4095_v9  ;;  %vm1989_vm4 = vmor %vm1987_vm3, %vm1988_vm15 }
0x1240   :  { %v1984_v20 = vsub.f32 1.0, %v1983_v13  ;;  %vm2004_vm6 = vmor %vm2002_vm5, %vm2003_vm1 }
0x1241   :  { %v1999_v21 = vsub.f32 1.0, %v1998_v15 }
0x1242   :  { %v1985_v22 = vmul.f32 %v4093_v6, %v1984_v20 }
0x1243   :  { %v2000_v58 = vmul.f32 %v4095_v9, %v1999_v21 }
0x1244   :  { %v1986_v24 = vadd.f32 %v4093_v6, %v1985_v22 }
0x1245   :  { %v2001_v28 = vadd.f32 %v4095_v9, %v2000_v58 }
0x1246   :  { %v1990_v35 = vsel %vm1989_vm4, %v4093_v6, %v1986_v24 }
0x1247   :  { %v2005_v38 = vsel %vm2004_vm6, %v4095_v9, %v2001_v28  ;;  %v1995_v3 = vsel %vm1992_vm7, %v1994_v36, %v1990_v35 }
0x1248   :  { %v2010_v41 = vsel %vm2007_vm11, %v2009_v39, %v2005_v38  ;;  %v2014_v27 = vmul.f32 0.0, %v1995_v3 }
0x1249   :  { %v2015_v47 = vmul.f32 0.0, %v2010_v41 }
0x1271   :  { %v1925_v61 = vpop.permute.xlu2 %1924 }
0x1272   :  { %v1929_v0 = vmul.f32 %v1925_v61, %v5067_v63 }
0x1274   :  { %1934 = vrot.lane.b32.xlu2 %v1929_v0, %s4370_s18 }
0x1281   :  { %v1923_v16 = vpop.permute.xlu0 %1922 }
0x1282   :  { %v1928_v19 = vmul.f32 %v1923_v16, %v5071_v17 }
0x1284   :  { %1932 = vrot.lane.b32.xlu0 %v1928_v19, %s4370_s18 }
0x1291   :  { %v2019_v40 = vpop.permute.xlu1 %2018 }
0x1292   :  { %v2024_v37 = vmul.f32 %v2019_v40, %v1995_v3  ;;  %v2021_v42 = vpop.permute.xlu0 %2020 }
0x1293   :  { %v2025_v43 = vmul.f32 %v2021_v42, %v2010_v41 }
0x1294   :  { %2028 = vrot.lane.b32.xlu1 %v2024_v37, %s4370_s18 }
0x1295   :  { %2030 = vrot.lane.b32.xlu2 %v2025_v43, %s4370_s18 }
0x12ce   :  { %v1935_v45 = vpop.permute.xlu2 %1934 }
0x12cf   :  { %v5078_v1 = vadd.f32 %v1935_v45, %v1919_v44 }
0x12d1   :  { %4096 = vtanh.f32 %v5078_v1 }
0x12d7   :  { %v4097_v46 = vpop.eup %4096 }
0x12d8   :  { %1946 = vrot.lane.b32.xlu0 %v4097_v46, %s5511_s22 }
0x12ef   :  { %v2031_v49 = vpop.permute.xlu2 %2030 }
0x12f0   :  { %v5082_v50 = vadd.f32 %v2031_v49, %v2015_v47 }
0x12f2   :  { %4098 = vtanh.f32 %v5082_v50 }
0x12f6   :  { %v1933_v55 = vpop.permute.xlu0 %1932 }
0x12f7   :  { %v5086_v54 = vadd.f32 %v1933_v55, %v1918_v52 }
0x12f8   :  { %v4099_v56 = vpop.eup %4098 }
0x12f9   :  { %4100 = vtanh.f32 %v5086_v54  ;;  %2042 = vrot.lane.b32.xlu0 %v4099_v56, %s5511_s22 }
0x12ff   :  { %v4101_v53 = vpop.eup %4100 }
0x1300   :  { %1944 = vrot.lane.b32.xlu1 %v4101_v53, %s5511_s22 }
0x1306   :  { %v2029_v10 = vpop.permute.xlu1 %2028 }
0x1307   :  { %v5091_v62 = vadd.f32 %v2029_v10, %v2014_v27 }
0x1309   :  { %4102 = vtanh.f32 %v5091_v62 }
0x130f   :  { %v4103_v57 = vpop.eup %4102 }
0x1310   :  { %2040 = vrot.lane.b32.xlu2 %v4103_v57, %s5511_s22 }
0x134a   :  { %v1947_v59 = vpop.permute.xlu0 %1946 }
0x134b   :  { %v1951_v61 = vmul.f32 %v1947_v59, %v5067_v63 }
0x134d   :  { %v2049_v6 = vpack.c.bf16 %v1951_v61, %v1951_v61 }
0x134f   :  { %v2053_v14 = vunpack.c.l.b16 %v2049_v6 }
0x1351   :  { %v2054_v63 = vrot.slane %v2053_v14, 7 }
0x136a   :  { %v2041_v7 = vpop.permute.xlu2 %2040 }
0x136b   :  { %v2046_v60 = vmul.f32 %v2041_v7, %v1995_v3  ;;  %v2043_v0 = vpop.permute.xlu0 %2042 }
0x136c   :  { %v2047_v2 = vmul.f32 %v2043_v0, %v2010_v41 }
0x136d   :  { %v2162_v4 = vpack.c.bf16 %v2046_v60, %v2046_v60 }
0x136e   :  { %v2163_v5 = vpack.c.bf16 %v2047_v2, %v2047_v2 }
0x136f   :  { %v2166_v8 = vunpack.c.l.b16 %v2162_v4 }
0x1370   :  { %v2167_v9 = vunpack.c.l.b16 %v2163_v5 }
0x1371   :  { %v2168_v11 = vrot.slane %v2166_v8, 7 }
0x1372   :  { %v2169_v12 = vrot.slane %v2167_v9, 6  ;;  %v1945_v13 = vpop.permute.xlu1 %1944 }
0x1373   :  { %v1950_v15 = vmul.f32 %v1945_v13, %v5071_v17 }
0x1374   :  { %v2170_v16 = vsel %vm2055_vm8, %v2169_v12, %v2168_v11 }
0x1375   :  { %v2048_v19 = vpack.c.bf16 %v1950_v15, %v1950_v15  ;;  %v2171_v20 = vpack.c.b16 %v2170_v16, %v2170_v16 }
0x1377   :  { %v2052_v21 = vunpack.c.l.b16 %v2048_v19  ;;  %2172 = vrot.lane.b32.xlu2 %v2171_v20, %s4370_s18 }
0x1379   :  { %v2056_v22 = vsel %vm2055_vm8, %v2054_v63, %v2052_v21 }
0x137a   :  { %v2057_v58 = vpack.c.b16 %v2056_v22, %v2056_v22 }
0x137c   :  { %2058 = vrot.lane.b32.xlu1 %v2057_v58, %s4370_s18 }
0x13d1   :  { %v2173_v24 = vpop.permute.xlu2 %2172 }
0x13d2   :  { %3834 = vmatmul.msk.bf16.vlgmr.msra.gmra.mxu0 %vm74_vm0, %v2173_v24 }
0x13d3   :  { %3102 = vmatpush.bf16.msra.mxu0 %v5016_v48 }
0x13d7   :  { %3103 = vmatpush.bf16.msra.mxu0 %v5024_v51 }
0x13ee   :  { %v2059_v17 = vpop.permute.xlu1 %2058 }
0x13ef   :  { %3831 = vmatmul.msk.bf16.vlgmr.msrb.gmra.mxu1 %vm74_vm0, %v2059_v17 }
0x13f0   :  { %2987 = vmatpush.bf16.msrb.mxu1 %v4963_v25 }
0x13f4   :  { %2988 = vmatpush.bf16.msrb.mxu1 %v4973_v29 }
0x144f   :  { %v2186_v26 = vpop.f32.mrf.mxu0 }
0x1450   :  { %v2191_v28 = vrot.slane %v2186_v26, 2  ;;  %v2192_v40 = vrot.slane %v2186_v26, 3 }
0x1452   :  { %v2195_v30 = vadd.f32 %v2191_v28, %v5058_v31  ;;  %v2196_v41 = vadd.f32 %v2192_v40, %v5060_v32 }
0x1454   :  { %4104 = vtanh.f32 %v2195_v30  ;;  %v3835_v44 = vmul.f32 -1.442695, %v2195_v30  ;;  %v3836_v4 = vmul.f32 -1.442695, %v2196_v41 }
0x1457   :  { %v2188_v33 = vpop.f32.mrf.mxu0 }
0x145a   :  { %v4105_v34 = vpop.eup %4104 }
0x145b   :  { %2247 = vrot.lane.b32.xlu2 %v4105_v34, %s5511_s22 }
0x146c   :  { %v2072_v35 = vpop.f32.mrf.mxu1 }
0x146d   :  { %v2077_v36 = vrot.slane %v2072_v35, 7  ;;  %v2081_v38 = vadd.f32 %v2072_v35, %v5051_v23 }
0x146f   :  { %v2080_v39 = vadd.f32 %v2077_v36, %v5048_v18  ;;  %4106 = vtanh.f32 %v2081_v38  ;;  %v3833_v60 = vmul.f32 -1.442695, %v2081_v38 }
0x1471   :  { %4108 = vtanh.f32 %v2080_v39  ;;  %v3832_v0 = vmul.f32 -1.442695, %v2080_v39 }
0x1472   :  { %4110 = vtanh.f32 %v2196_v41 }
0x1473   :  { %4112 = vpow2.f32 %v3835_v44 }
0x1474   :  { %v2074_v3 = vpop.f32.mrf.mxu1 }
0x1475   :  { %v4107_v37 = vpop.eup %4106 }
0x1476   :  { %2134 = vrot.lane.b32.xlu1 %v4107_v37, %s5511_s22 }
0x1477   :  { %v4109_v42 = vpop.eup %4108 }
0x1478   :  { %2132 = vrot.lane.b32.xlu0 %v4109_v42, %s5511_s22  ;;  %v4111_v43 = vpop.eup %4110 }
0x1479   :  { %v4113_v45 = vpop.eup %4112 }
0x147a   :  { %v2203_v46 = vadd.f32 1.0, %v4113_v45 }
0x147c   :  { %4114 = vrcp.f32 %v2203_v46  ;;  %v2216_v53 = vand.u32 2147483648, %v2203_v46  ;;  %vm2210_vm10 = vweird.f32 %v2203_v46  ;;  %v2214_v27 = vand.u32 2147483647, %v2203_v46 }
0x147d   :  { %4116 = vpow2.f32 %v3833_v60 }
0x147e   :  { %v2217_v57 = vor.u32 1.1754944e-38, %v2216_v53  ;;  %vm2215_vm13 = vcmp.eq.f32.partialorder %v2214_v27, 8.507059e+37  ;;  %4118 = vpow2.f32 %v3832_v0  ;;  %v2239_v53 = vrot.slane %v5091_v62, 1 }
0x147f   :  { %4120 = vpow2.f32 %v3836_v4  ;;  %v2124_v62 = vrot.slane %v5086_v54, 7 }
0x1480   :  { %2249 = vrot.lane.b32.xlu0 %v4111_v43, %s5511_s22 }
0x1482   :  { %v4115_v47 = vpop.eup %4114 }
0x1483   :  { %v2206_v49 = vmul.f32 %v4115_v47, %v2203_v46  ;;  %vm2211_vm9 = vweird.f32 %v4115_v47  ;;  %v4117_v2 = vpop.eup %4116 }
0x1484   :  { %vm2212_vm12 = vmor %vm2210_vm10, %vm2211_vm9  ;;  %v4119_v5 = vpop.eup %4118  ;;  %v2089_v6 = vadd.f32 1.0, %v4117_v2 }
0x1485   :  { %v2207_v52 = vsub.f32 1.0, %v2206_v49  ;;  %v2088_v8 = vadd.f32 1.0, %v4119_v5  ;;  %v4121_v9 = vpop.eup %4120 }
0x1486   :  { %4122 = vrcp.f32 %v2089_v6  ;;  %v2204_v12 = vadd.f32 1.0, %v4121_v9  ;;  %v2116_v24 = vand.u32 2147483648, %v2089_v6  ;;  %vm2110_vm15 = vweird.f32 %v2089_v6 }
0x1487   :  { %v2208_v55 = vmul.f32 %v4115_v47, %v2207_v52  ;;  %4124 = vrcp.f32 %v2088_v8  ;;  %v2114_v17 = vand.u32 2147483647, %v2089_v6  ;;  %v2101_v33 = vand.u32 2147483648, %v2088_v8 }
0x1488   :  { %4126 = vrcp.f32 %v2204_v12  ;;  %v2117_v34 = vor.u32 1.1754944e-38, %v2116_v24  ;;  %vm2095_vm4 = vweird.f32 %v2088_v8  ;;  %v2099_v35 = vand.u32 2147483647, %v2088_v8 }
0x1489   :  { %v2209_v56 = vadd.f32 %v4115_v47, %v2208_v55  ;;  %vm2115_vm5 = vcmp.eq.f32.partialorder %v2114_v17, 8.507059e+37  ;;  %v2102_v37 = vor.u32 1.1754944e-38, %v2101_v33  ;;  %v2231_v45 = vand.u32 2147483648, %v2204_v12 }
0x148a   :  { %vm2100_vm7 = vcmp.eq.f32.partialorder %v2099_v35, 8.507059e+37  ;;  %vm2225_vm9 = vweird.f32 %v2204_v12  ;;  %v2229_v46 = vand.u32 2147483647, %v2204_v12  ;;  %v2240_v9 = vrot.slane %v5082_v50, 1 }
0x148b   :  { %v2213_v10 = vsel %vm2212_vm12, %v4115_v47, %v2209_v56  ;;  %v2232_v49 = vor.u32 1.1754944e-38, %v2231_v45 }
0x148c   :  { %v5115_v7 = vsel %vm2215_vm13, %v2217_v57, %v2213_v10  ;;  %v4123_v11 = vpop.eup %4122  ;;  %vm2230_vm12 = vcmp.eq.f32.partialorder %v2229_v46, 8.507059e+37 }
0x148d   :  { %v4125_v13 = vpop.eup %4124  ;;  %v2106_v14 = vmul.f32 %v4123_v11, %v2089_v6  ;;  %vm2111_vm14 = vweird.f32 %v4123_v11  ;;  %v2243_v27 = vmul.f32 %v2239_v53, %v5115_v7 }
0x148e   :  { %v2091_v15 = vmul.f32 %v4125_v13, %v2088_v8  ;;  %v4127_v20 = vpop.eup %4126  ;;  %vm2112_vm1 = vmor %vm2110_vm15, %vm2111_vm14  ;;  %vm2096_vm3 = vweird.f32 %v4125_v13 }
0x148f   :  { %v2107_v16 = vsub.f32 1.0, %v2106_v14  ;;  %v2221_v22 = vmul.f32 %v4127_v20, %v2204_v12  ;;  %vm2097_vm6 = vmor %vm2095_vm4, %vm2096_vm3  ;;  %vm2226_vm11 = vweird.f32 %v4127_v20 }
0x1490   :  { %v2092_v19 = vsub.f32 1.0, %v2091_v15  ;;  %vm2227_vm10 = vmor %vm2225_vm9, %vm2226_vm11 }
0x1491   :  { %v2108_v63 = vmul.f32 %v4123_v11, %v2107_v16  ;;  %v2222_v28 = vsub.f32 1.0, %v2221_v22 }
0x1492   :  { %v2093_v21 = vmul.f32 %v4125_v13, %v2092_v19 }
0x1493   :  { %v2109_v58 = vadd.f32 %v4123_v11, %v2108_v63  ;;  %v2223_v40 = vmul.f32 %v4127_v20, %v2222_v28 }
0x1494   :  { %v2094_v26 = vadd.f32 %v4125_v13, %v2093_v21 }
0x1495   :  { %v2113_v30 = vsel %vm2112_vm1, %v4123_v11, %v2109_v58  ;;  %v2224_v44 = vadd.f32 %v4127_v20, %v2223_v40 }
0x1496   :  { %v2118_v38 = vsel %vm2115_vm5, %v2117_v34, %v2113_v30  ;;  %v2098_v39 = vsel %vm2097_vm6, %v4125_v13, %v2094_v26 }
0x1497   :  { %v2103_v42 = vsel %vm2100_vm7, %v2102_v37, %v2098_v39  ;;  %v2228_v47 = vsel %vm2227_vm10, %v4127_v20, %v2224_v44 }
0x1498   :  { %v2233_v52 = vsel %vm2230_vm12, %v2232_v49, %v2228_v47  ;;  %v2128_v5 = vmul.f32 %v2124_v62, %v2103_v42 }
0x14b5   :  { %v2248_v59 = vpop.permute.xlu2 %2247 }
0x14b6   :  { %v2253_v61 = vmul.f32 %v2248_v59, %v5115_v7 }
0x14b8   :  { %2257 = vrot.lane.b32.xlu0 %v2253_v61, %s4370_s18  ;;  %v2125_v61 = vrot.slane %v5078_v1, 7  ;;  %v2244_v1 = vmul.f32 %v2240_v9, %v2233_v52 }
0x14ba   :  { %v2129_v60 = vmul.f32 %v2125_v61, %v2118_v38 }
0x14e8   :  { %v2135_v36 = vpop.permute.xlu1 %2134 }
0x14e9   :  { %v2139_v3 = vmul.f32 %v2135_v36, %v2118_v38 }
0x14ea   :  { %v2133_v41 = vpop.permute.xlu0 %2132 }
0x14eb   :  { %2144 = vrot.lane.b32.xlu2 %v2139_v3, %s4370_s18  ;;  %v2138_v43 = vmul.f32 %v2133_v41, %v2103_v42 }
0x14ed   :  { %2142 = vrot.lane.b32.xlu1 %v2138_v43, %s4370_s18 }
0x14f2   :  { %v2250_v55 = vpop.permute.xlu0 %2249 }
0x14f3   :  { %v2254_v56 = vmul.f32 %v2250_v55, %v2233_v52 }
0x14f5   :  { %2259 = vrot.lane.b32.xlu1 %v2254_v56, %s4370_s18 }
0x152a   :  { %v2258_v10 = vpop.permute.xlu0 %2257 }
0x152b   :  { %v5124_v57 = vadd.f32 %v2258_v10, %v2243_v27 }
0x152d   :  { %4128 = vtanh.f32 %v5124_v57 }
0x1533   :  { %v4129_v59 = vpop.eup %4128 }
0x1534   :  { %2269 = vrot.lane.b32.xlu1 %v4129_v59, %s5511_s22 }
0x1545   :  { %v2145_v0 = vpop.permute.xlu2 %2144 }
0x1546   :  { %v5129_v2 = vadd.f32 %v2145_v0, %v2129_v60 }
0x1548   :  { %4130 = vtanh.f32 %v5129_v2 }
0x154e   :  { %v4131_v4 = vpop.eup %4130 }
0x154f   :  { %2156 = vrot.lane.b32.xlu0 %v4131_v4, %s5511_s22 }
0x155f   :  { %v2143_v6 = vpop.permute.xlu1 %2142 }
0x1560   :  { %v5134_v8 = vadd.f32 %v2143_v6, %v2128_v5 }
0x1562   :  { %4132 = vtanh.f32 %v5134_v8 }
0x1567   :  { %v2260_v11 = vpop.permute.xlu1 %2259 }
0x1568   :  { %v4133_v12 = vpop.eup %4132  ;;  %v5138_v13 = vadd.f32 %v2260_v11, %v2244_v1 }
0x1569   :  { %2154 = vrot.lane.b32.xlu2 %v4133_v12, %s5511_s22 }
0x156a   :  { %4134 = vtanh.f32 %v5138_v13 }
0x1570   :  { %v4135_v14 = vpop.eup %4134 }
0x1571   :  { %2271 = vrot.lane.b32.xlu2 %v4135_v14, %s5511_s22 }
0x15a6   :  { %v2270_v16 = vpop.permute.xlu1 %2269 }
0x15a7   :  { %v2275_v63 = vmul.f32 %v2270_v16, %v5115_v7 }
0x15a9   :  { %v2391_v58 = vpack.c.bf16 %v2275_v63, %v2275_v63 }
0x15ab   :  { %v2395_v34 = vunpack.c.l.b16 %v2391_v58 }
0x15c1   :  { %v2157_v54 = vpop.permute.xlu0 %2156 }
0x15c2   :  { %v2161_v15 = vmul.f32 %v2157_v54, %v2118_v38  ;;  %v2397_v38 = vrot.slane %v2395_v34, 6 }
0x15c3   :  { %v2155_v19 = vpop.permute.xlu2 %2154 }
0x15c4   :  { %v2160_v20 = vmul.f32 %v2155_v19, %v2103_v42  ;;  %v2278_v50 = vpack.c.bf16 %v2161_v15, %v2161_v15 }
0x15c6   :  { %v2277_v21 = vpack.c.bf16 %v2160_v20, %v2160_v20  ;;  %v2282_v24 = vunpack.c.l.b16 %v2278_v50 }
0x15c8   :  { %v2281_v22 = vunpack.c.l.b16 %v2277_v21 }
0x15ca   :  { %v2283_v17 = vrot.slane %v2281_v22, 1 }
0x15cb   :  { %v2272_v26 = vpop.permute.xlu2 %2271 }
0x15cc   :  { %v2276_v28 = vmul.f32 %v2272_v26, %v2233_v52  ;;  %v2284_v30 = vsel %vm2055_vm8, %v2282_v24, %v2283_v17 }
0x15cd   :  { %v2285_v33 = vpack.c.b16 %v2284_v30, %v2284_v30 }
0x15ce   :  { %v2392_v35 = vpack.c.bf16 %v2276_v28, %v2276_v28 }
0x15cf   :  { %2286 = vrot.lane.b32.xlu0 %v2285_v33, %s4370_s18 }
0x15d0   :  { %v2396_v36 = vunpack.c.l.b16 %v2392_v35 }
0x15d2   :  { %v2398_v39 = vrot.slane %v2396_v36, 5 }
0x15d4   :  { %v2399_v7 = vsel %vm2055_vm8, %v2398_v39, %v2397_v38 }
0x15d5   :  { %v2400_v40 = vpack.c.b16 %v2399_v7, %v2399_v7 }
0x15d7   :  { %2401 = vrot.lane.b32.xlu1 %v2400_v40, %s4370_s18 }
0x1641   :  { %v2287_v3 = vpop.permute.xlu0 %2286 }
0x1642   :  { %3837 = vmatmul.msk.bf16.vlgmr.msra.gmra.mxu3 %vm74_vm0, %v2287_v3 }
0x1643   :  { %3217 = vmatpush.bf16.msra.mxu3 %v4963_v25 }
0x1647   :  { %3218 = vmatpush.bf16.msra.mxu3 %v4973_v29 }
0x1649   :  { %v2402_v37 = vpop.permute.xlu1 %2401 }
0x164a   :  { %3840 = vmatmul.msk.bf16.vlgmr.msrb.gmra.mxu2 %vm74_vm0, %v2402_v37 }
0x164b   :  { %3332 = vmatpush.bf16.msrb.mxu2 %v5016_v48 }
0x164f   :  { %3333 = vmatpush.bf16.msrb.mxu2 %v5024_v51 }
0x16c5   :  { %v2300_v41 = vpop.f32.mrf.mxu3 }
0x16c6   :  { %v2305_v42 = vrot.slane %v2300_v41, 6  ;;  %v2306_v43 = vrot.slane %v2300_v41, 7 }
0x16c8   :  { %v2309_v44 = vadd.f32 %v2305_v42, %v5048_v18  ;;  %v2310_v45 = vadd.f32 %v2306_v43, %v5051_v23 }
0x16ca   :  { %4136 = vtanh.f32 %v2309_v44  ;;  %v3838_v60 = vmul.f32 -1.442695, %v2309_v44  ;;  %v3839_v1 = vmul.f32 -1.442695, %v2310_v45 }
0x16cb   :  { %4138 = vtanh.f32 %v2310_v45 }
0x16cd   :  { %v2302_v46 = vpop.f32.mrf.mxu3  ;;  %v2415_v47 = vpop.f32.mrf.mxu2 }
0x16ce   :  { %v2420_v49 = vrot.slane %v2415_v47, 3  ;;  %v2421_v52 = vrot.slane %v2415_v47, 4 }
0x16d0   :  { %v4137_v55 = vpop.eup %4136  ;;  %v2424_v56 = vadd.f32 %v2420_v49, %v5058_v31  ;;  %v2425_v53 = vadd.f32 %v2421_v52, %v5060_v32 }
0x16d1   :  { %v4139_v27 = vpop.eup %4138  ;;  %2361 = vrot.lane.b32.xlu2 %v4137_v55, %s5511_s22 }
0x16d2   :  { %4140 = vtanh.f32 %v2424_v56  ;;  %2363 = vrot.lane.b32.xlu0 %v4139_v27, %s5511_s22  ;;  %v3842_v0 = vmul.f32 -1.442695, %v2425_v53  ;;  %v3841_v54 = vmul.f32 -1.442695, %v2424_v56 }
0x16d3   :  { %4142 = vtanh.f32 %v2425_v53 }
0x16d4   :  { %4144 = vpow2.f32 %v3838_v60 }
0x16d5   :  { %v2417_v10 = vpop.f32.mrf.mxu2  ;;  %4146 = vpow2.f32 %v3842_v0 }
0x16d8   :  { %v4141_v59 = vpop.eup %4140 }
0x16d9   :  { %v4143_v61 = vpop.eup %4142  ;;  %2476 = vrot.lane.b32.xlu1 %v4141_v59, %s5511_s22 }
0x16da   :  { %2478 = vrot.lane.b32.xlu2 %v4143_v61, %s5511_s22  ;;  %v4145_v4 = vpop.eup %4144 }
0x16db   :  { %v2317_v62 = vadd.f32 1.0, %v4145_v4  ;;  %v4147_v5 = vpop.eup %4146 }
0x16dc   :  { %v2433_v6 = vadd.f32 1.0, %v4147_v5 }
0x16dd   :  { %4148 = vrcp.f32 %v2317_v62  ;;  %v2330_v50 = vand.u32 2147483648, %v2317_v62  ;;  %vm2324_vm14 = vweird.f32 %v2317_v62  ;;  %v2328_v22 = vand.u32 2147483647, %v2317_v62 }
0x16de   :  { %4150 = vrcp.f32 %v2433_v6  ;;  %v2460_v38 = vand.u32 2147483648, %v2433_v6  ;;  %vm2454_vm4 = vweird.f32 %v2433_v6  ;;  %v2458_v39 = vand.u32 2147483647, %v2433_v6 }
0x16df   :  { %4152 = vpow2.f32 %v3839_v1  ;;  %v2331_v17 = vor.u32 1.1754944e-38, %v2330_v50  ;;  %vm2329_vm1 = vcmp.eq.f32.partialorder %v2328_v22, 8.507059e+37 }
0x16e0   :  { %4154 = vpow2.f32 %v3841_v54  ;;  %v2461_v3 = vor.u32 1.1754944e-38, %v2460_v38  ;;  %vm2459_vm6 = vcmp.eq.f32.partialorder %v2458_v39, 8.507059e+37 }
0x16e3   :  { %v4149_v9 = vpop.eup %4148 }
0x16e4   :  { %v2320_v11 = vmul.f32 %v4149_v9, %v2317_v62  ;;  %v4151_v14 = vpop.eup %4150  ;;  %vm2325_vm13 = vweird.f32 %v4149_v9 }
0x16e5   :  { %v4153_v16 = vpop.eup %4152  ;;  %v2450_v19 = vmul.f32 %v4151_v14, %v2433_v6  ;;  %vm2326_vm15 = vmor %vm2324_vm14, %vm2325_vm13  ;;  %vm2455_vm3 = vweird.f32 %v4151_v14 }
0x16e6   :  { %v2321_v12 = vsub.f32 1.0, %v2320_v11  ;;  %v2318_v20 = vadd.f32 1.0, %v4153_v16  ;;  %v4155_v58 = vpop.eup %4154  ;;  %vm2456_vm5 = vmor %vm2454_vm4, %vm2455_vm3  ;;  %v2353_v11 = vrot.slane %v5134_v8, 7  ;;  %v2469_v16 = vrot.slane %v5138_v13, 1 }
0x16e7   :  { %v2451_v21 = vsub.f32 1.0, %v2450_v19  ;;  %v2432_v28 = vadd.f32 1.0, %v4155_v58  ;;  %v2354_v13 = vrot.slane %v5129_v2, 7 }
0x16e8   :  { %v2322_v15 = vmul.f32 %v4149_v9, %v2321_v12  ;;  %4156 = vrcp.f32 %v2318_v20  ;;  %v2345_v52 = vand.u32 2147483648, %v2318_v20  ;;  %vm2339_vm11 = vweird.f32 %v2318_v20 }
0x16e9   :  { %v2452_v26 = vmul.f32 %v4151_v14, %v2451_v21  ;;  %4158 = vrcp.f32 %v2432_v28  ;;  %v2343_v55 = vand.u32 2147483647, %v2318_v20  ;;  %v2445_v0 = vand.u32 2147483648, %v2432_v28 }
0x16ea   :  { %v2323_v63 = vadd.f32 %v4149_v9, %v2322_v15  ;;  %v2346_v27 = vor.u32 1.1754944e-38, %v2345_v52  ;;  %vm2439_vm13 = vweird.f32 %v2432_v28  ;;  %v2443_v4 = vand.u32 2147483647, %v2432_v28 }
0x16eb   :  { %v2453_v35 = vadd.f32 %v4151_v14, %v2452_v26  ;;  %vm2344_vm10 = vcmp.eq.f32.partialorder %v2343_v55, 8.507059e+37  ;;  %v2446_v5 = vor.u32 1.1754944e-38, %v2445_v0  ;;  %v2468_v15 = vrot.slane %v5124_v57, 1 }
0x16ec   :  { %v2327_v24 = vsel %vm2326_vm15, %v4149_v9, %v2323_v63  ;;  %vm2444_vm15 = vcmp.eq.f32.partialorder %v2443_v4, 8.507059e+37 }
0x16ed   :  { %v5162_v30 = vsel %vm2329_vm1, %v2331_v17, %v2327_v24  ;;  %v2457_v7 = vsel %vm2456_vm5, %v4151_v14, %v2453_v35 }
0x16ee   :  { %v4157_v36 = vpop.eup %4156  ;;  %v5166_v37 = vsel %vm2459_vm6, %v2461_v3, %v2457_v7  ;;  %v2357_v12 = vmul.f32 %v2353_v11, %v5162_v30 }
0x16ef   :  { %v2335_v40 = vmul.f32 %v4157_v36, %v2318_v20  ;;  %v4159_v42 = vpop.eup %4158  ;;  %vm2340_vm7 = vweird.f32 %v4157_v36  ;;  %v2473_v20 = vmul.f32 %v2469_v16, %v5166_v37 }
0x16f0   :  { %v2435_v45 = vmul.f32 %v4159_v42, %v2432_v28  ;;  %vm2341_vm9 = vmor %vm2339_vm11, %vm2340_vm7  ;;  %vm2440_vm12 = vweird.f32 %v4159_v42 }
0x16f1   :  { %v2336_v44 = vsub.f32 1.0, %v2335_v40  ;;  %vm2441_vm14 = vmor %vm2439_vm13, %vm2440_vm12 }
0x16f2   :  { %v2436_v47 = vsub.f32 1.0, %v2435_v45 }
0x16f3   :  { %v2337_v46 = vmul.f32 %v4157_v36, %v2336_v44 }
0x16f4   :  { %v2437_v56 = vmul.f32 %v4159_v42, %v2436_v47 }
0x16f5   :  { %v2338_v49 = vadd.f32 %v4157_v36, %v2337_v46 }
0x16f6   :  { %v2438_v61 = vadd.f32 %v4159_v42, %v2437_v56 }
0x16f7   :  { %v2342_v53 = vsel %vm2341_vm9, %v4157_v36, %v2338_v49 }
0x16f8   :  { %v2347_v59 = vsel %vm2344_vm10, %v2346_v27, %v2342_v53  ;;  %v2442_v62 = vsel %vm2441_vm14, %v4159_v42, %v2438_v61 }
0x16f9   :  { %v2447_v9 = vsel %vm2444_vm15, %v2446_v5, %v2442_v62  ;;  %v2358_v24 = vmul.f32 %v2354_v13, %v2347_v59 }
0x16fa   :  { %v2472_v19 = vmul.f32 %v2468_v15, %v2447_v9 }
0x172b   :  { %v2362_v33 = vpop.permute.xlu2 %2361 }
0x172c   :  { %v2367_v34 = vmul.f32 %v2362_v33, %v5162_v30 }
0x172e   :  { %2371 = vrot.lane.b32.xlu0 %v2367_v34, %s4370_s18 }
0x1734   :  { %v2479_v41 = vpop.permute.xlu2 %2478 }
0x1735   :  { %v2483_v43 = vmul.f32 %v2479_v41, %v5166_v37 }
0x1737   :  { %2488 = vrot.lane.b32.xlu0 %v2483_v43, %s4370_s18 }
0x1744   :  { %v2364_v10 = vpop.permute.xlu0 %2363 }
0x1745   :  { %v2368_v60 = vmul.f32 %v2364_v10, %v2347_v59 }
0x1747   :  { %2373 = vrot.lane.b32.xlu1 %v2368_v60, %s4370_s18 }
0x174b   :  { %v2477_v6 = vpop.permute.xlu1 %2476 }
0x174c   :  { %v2482_v1 = vmul.f32 %v2477_v6, %v2447_v9 }
0x174e   :  { %2486 = vrot.lane.b32.xlu2 %v2482_v1, %s4370_s18 }
0x17a0   :  { %v2372_v14 = vpop.permute.xlu0 %2371 }
0x17a1   :  { %v5174_v54 = vadd.f32 %v2372_v14, %v2357_v12 }
0x17a3   :  { %4160 = vtanh.f32 %v5174_v54 }
0x17a8   :  { %v2487_v63 = vpop.permute.xlu2 %2486 }
0x17a9   :  { %v4161_v50 = vpop.eup %4160  ;;  %v2489_v21 = vpop.permute.xlu0 %2488  ;;  %v5180_v22 = vadd.f32 %v2487_v63, %v2472_v19 }
0x17aa   :  { %v5182_v8 = vadd.f32 %v2489_v21, %v2473_v20  ;;  %2383 = vrot.lane.b32.xlu1 %v4161_v50, %s5511_s22 }
0x17ab   :  { %4162 = vtanh.f32 %v5180_v22 }
0x17ac   :  { %4164 = vtanh.f32 %v5182_v8 }
0x17b1   :  { %v4163_v58 = vpop.eup %4162 }
0x17b2   :  { %v4165_v57 = vpop.eup %4164  ;;  %2498 = vrot.lane.b32.xlu0 %v4163_v58, %s5511_s22 }
0x17b3   :  { %2500 = vrot.lane.b32.xlu1 %v4165_v57, %s5511_s22 }
0x17b9   :  { %v2374_v17 = vpop.permute.xlu1 %2373 }
0x17ba   :  { %v5190_v26 = vadd.f32 %v2374_v17, %v2358_v24 }
0x17bc   :  { %4166 = vtanh.f32 %v5190_v26 }
0x17c2   :  { %v4167_v28 = vpop.eup %4166 }
0x17c3   :  { %2385 = vrot.lane.b32.xlu2 %v4167_v28, %s5511_s22 }
0x181c   :  { %v2384_v33 = vpop.permute.xlu1 %2383 }
0x181d   :  { %v2389_v34 = vmul.f32 %v2384_v33, %v5162_v30  ;;  %v2386_v35 = vpop.permute.xlu2 %2385 }
0x181e   :  { %v2390_v36 = vmul.f32 %v2386_v35, %v2347_v59 }
0x181f   :  { %v2506_v38 = vpack.c.bf16 %v2389_v34, %v2389_v34 }
0x1820   :  { %v2507_v39 = vpack.c.bf16 %v2390_v36, %v2390_v36 }
0x1821   :  { %v2510_v7 = vunpack.c.l.b16 %v2506_v38 }
0x1822   :  { %v2511_v40 = vunpack.c.l.b16 %v2507_v39 }
0x1823   :  { %v2512_v3 = vrot.slane %v2510_v7, 2 }
0x1824   :  { %v2513_v2 = vrot.slane %v2511_v40, 1  ;;  %v2499_v41 = vpop.permute.xlu0 %2498 }
0x1825   :  { %v2501_v42 = vpop.permute.xlu1 %2500  ;;  %v2504_v43 = vmul.f32 %v2499_v41, %v2447_v9 }
0x1826   :  { %v2505_v44 = vmul.f32 %v2501_v42, %v5166_v37  ;;  %v2514_v45 = vsel %vm2055_vm8, %v2513_v2, %v2512_v3 }
0x1827   :  { %v2621_v46 = vpack.c.bf16 %v2504_v43, %v2504_v43  ;;  %v2515_v47 = vpack.c.b16 %v2514_v45, %v2514_v45 }
0x1828   :  { %v2622_v49 = vpack.c.bf16 %v2505_v44, %v2505_v44 }
0x1829   :  { %v2625_v52 = vunpack.c.l.b16 %v2621_v46  ;;  %2516 = vrot.lane.b32.xlu2 %v2515_v47, %s4370_s18 }
0x182a   :  { %v2626_v30 = vunpack.c.l.b16 %v2622_v49 }
0x182b   :  { %v2627_v55 = vrot.slane %v2625_v52, 5 }
0x182c   :  { %v2628_v56 = vrot.slane %v2626_v30, 4 }
0x182e   :  { %v2629_v53 = vsel %vm2055_vm8, %v2628_v56, %v2627_v55 }
0x182f   :  { %v2630_v27 = vpack.c.b16 %v2629_v53, %v2629_v53 }
0x1831   :  { %2631 = vrot.lane.b32.xlu0 %v2630_v27, %s4370_s18 }
0x1883   :  { %v2517_v10 = vpop.permute.xlu2 %2516 }
0x1884   :  { %3843 = vmatmul.msk.bf16.vlgmr.msra.gmra.mxu1 %vm74_vm0, %v2517_v10 }
0x1885   :  { %3446 = vmatpush.bf16.msra.mxu1 %v4963_v25 }
0x1889   :  { %3447 = vmatpush.bf16.msra.mxu1 %v4973_v29 }
0x18a3   :  { %v2632_v37 = vpop.permute.xlu0 %2631 }
0x18a4   :  { %3846 = vmatmul.msk.bf16.vlgmr.msrb.gmra.mxu0 %vm74_vm0, %v2632_v37 }
0x18a5   :  { %3560 = vmatpush.bf16.msrb.mxu0 %v5016_v48 }
0x18a9   :  { %3561 = vmatpush.bf16.msrb.mxu0 %v5024_v51 }
0x1901   :  { %v2530_v59 = vpop.f32.mrf.mxu1 }
0x1902   :  { %v2535_v61 = vrot.slane %v2530_v59, 5  ;;  %v2536_v60 = vrot.slane %v2530_v59, 6 }
0x1904   :  { %v2539_v0 = vadd.f32 %v2535_v61, %v5048_v18  ;;  %v2540_v4 = vadd.f32 %v2536_v60, %v5051_v23 }
0x1906   :  { %4168 = vtanh.f32 %v2539_v0  ;;  %v3845_v14 = vmul.f32 -1.442695, %v2540_v4  ;;  %v3844_v20 = vmul.f32 -1.442695, %v2539_v0 }
0x1907   :  { %4170 = vtanh.f32 %v2540_v4 }
0x1909   :  { %v2532_v62 = vpop.f32.mrf.mxu1 }
0x190c   :  { %v4169_v25 = vpop.eup %4168 }
0x190d   :  { %v4171_v5 = vpop.eup %4170  ;;  %2591 = vrot.lane.b32.xlu1 %v4169_v25, %s5511_s22 }
0x190e   :  { %2593 = vrot.lane.b32.xlu2 %v4171_v5, %s5511_s22 }
0x1921   :  { %v2645_v29 = vpop.f32.mrf.mxu0 }
0x1922   :  { %v2650_v48 = vrot.slane %v2645_v29, 4  ;;  %v2651_v6 = vrot.slane %v2645_v29, 5 }
0x1924   :  { %v2654_v51 = vadd.f32 %v2650_v48, %v5058_v31  ;;  %v2655_v9 = vadd.f32 %v2651_v6, %v5060_v32 }
0x1926   :  { %4172 = vtanh.f32 %v2654_v51  ;;  %v3847_v40 = vmul.f32 -1.442695, %v2654_v51  ;;  %v3848_v3 = vmul.f32 -1.442695, %v2655_v9 }
0x1927   :  { %4174 = vtanh.f32 %v2655_v9 }
0x1928   :  { %4176 = vpow2.f32 %v3845_v14 }
0x1929   :  { %v2647_v1 = vpop.f32.mrf.mxu0 }
0x192c   :  { %v4173_v11 = vpop.eup %4172 }
0x192d   :  { %v4175_v12 = vpop.eup %4174  ;;  %2706 = vrot.lane.b32.xlu0 %v4173_v11, %s5511_s22 }
0x192e   :  { %2708 = vrot.lane.b32.xlu1 %v4175_v12, %s5511_s22  ;;  %v4177_v15 = vpop.eup %4176 }
0x192f   :  { %v2548_v16 = vadd.f32 1.0, %v4177_v15 }
0x1931   :  { %4178 = vrcp.f32 %v2548_v16  ;;  %v2575_v24 = vand.u32 2147483648, %v2548_v16  ;;  %vm2569_vm3 = vweird.f32 %v2548_v16  ;;  %v2573_v17 = vand.u32 2147483647, %v2548_v16 }
0x1932   :  { %4180 = vpow2.f32 %v3844_v20  ;;  %v2583_v20 = vrot.slane %v5174_v54, 7  ;;  %v2699_v54 = vrot.slane %v5182_v8, 1 }
0x1933   :  { %v2576_v33 = vor.u32 1.1754944e-38, %v2575_v24  ;;  %vm2574_vm5 = vcmp.eq.f32.partialorder %v2573_v17, 8.507059e+37 }
0x1937   :  { %v4179_v19 = vpop.eup %4178 }
0x1938   :  { %v2565_v63 = vmul.f32 %v4179_v19, %v2548_v16  ;;  %v4181_v21 = vpop.eup %4180  ;;  %vm2570_vm1 = vweird.f32 %v4179_v19 }
0x1939   :  { %v2547_v57 = vadd.f32 1.0, %v4181_v21  ;;  %vm2571_vm4 = vmor %vm2569_vm3, %vm2570_vm1 }
0x193a   :  { %v2566_v50 = vsub.f32 1.0, %v2565_v63  ;;  %v2584_v63 = vrot.slane %v5190_v26, 7 }
0x193b   :  { %4182 = vrcp.f32 %v2547_v57  ;;  %v2560_v42 = vand.u32 2147483648, %v2547_v57  ;;  %vm2554_vm7 = vweird.f32 %v2547_v57  ;;  %v2558_v43 = vand.u32 2147483647, %v2547_v57 }
0x193c   :  { %v2567_v58 = vmul.f32 %v4179_v19, %v2566_v50  ;;  %4184 = vpow2.f32 %v3847_v40 }
0x193d   :  { %4186 = vpow2.f32 %v3848_v3  ;;  %v2561_v47 = vor.u32 1.1754944e-38, %v2560_v42  ;;  %vm2559_vm9 = vcmp.eq.f32.partialorder %v2558_v43, 8.507059e+37 }
0x193e   :  { %v2568_v13 = vadd.f32 %v4179_v19, %v2567_v58 }
0x1940   :  { %v2572_v28 = vsel %vm2571_vm4, %v4179_v19, %v2568_v13 }
0x1941   :  { %v5214_v35 = vsel %vm2574_vm5, %v2576_v33, %v2572_v28  ;;  %v4183_v36 = vpop.eup %4182 }
0x1942   :  { %v2550_v39 = vmul.f32 %v4183_v36, %v2547_v57  ;;  %vm2555_vm6 = vweird.f32 %v4183_v36  ;;  %v4185_v44 = vpop.eup %4184  ;;  %v2588_v21 = vmul.f32 %v2584_v63, %v5214_v35 }
0x1943   :  { %vm2556_vm11 = vmor %vm2554_vm7, %vm2555_vm6  ;;  %v4187_v46 = vpop.eup %4186  ;;  %v2662_v49 = vadd.f32 1.0, %v4185_v44 }
0x1944   :  { %v2551_v7 = vsub.f32 1.0, %v2550_v39  ;;  %v2663_v55 = vadd.f32 1.0, %v4187_v46 }
0x1945   :  { %4188 = vrcp.f32 %v2662_v49  ;;  %v2675_v62 = vand.u32 2147483648, %v2662_v49  ;;  %vm2669_vm13 = vweird.f32 %v2662_v49  ;;  %v2673_v5 = vand.u32 2147483647, %v2662_v49 }
0x1946   :  { %v2552_v2 = vmul.f32 %v4183_v36, %v2551_v7  ;;  %4190 = vrcp.f32 %v2663_v55  ;;  %v2690_v29 = vand.u32 2147483648, %v2663_v55  ;;  %vm2684_vm15 = vweird.f32 %v2663_v55 }
0x1947   :  { %v2688_v48 = vand.u32 2147483647, %v2663_v55  ;;  %v2676_v51 = vor.u32 1.1754944e-38, %v2675_v62  ;;  %vm2674_vm3 = vcmp.eq.f32.partialorder %v2673_v5, 8.507059e+37 }
0x1948   :  { %v2553_v41 = vadd.f32 %v4183_v36, %v2552_v2  ;;  %v2691_v1 = vor.u32 1.1754944e-38, %v2690_v29 }
0x1949   :  { %vm2689_vm4 = vcmp.eq.f32.partialorder %v2688_v48, 8.507059e+37 }
0x194a   :  { %v2557_v45 = vsel %vm2556_vm11, %v4183_v36, %v2553_v41 }
0x194b   :  { %v5218_v30 = vsel %vm2559_vm9, %v2561_v47, %v2557_v45  ;;  %v4189_v53 = vpop.eup %4188 }
0x194c   :  { %v4191_v27 = vpop.eup %4190  ;;  %v2665_v10 = vmul.f32 %v4189_v53, %v2662_v49  ;;  %vm2670_vm10 = vweird.f32 %v4189_v53  ;;  %v2587_v50 = vmul.f32 %v2583_v20, %v5218_v30 }
0x194d   :  { %v2680_v37 = vmul.f32 %v4191_v27, %v2663_v55  ;;  %vm2685_vm12 = vweird.f32 %v4191_v27  ;;  %vm2671_vm14 = vmor %vm2669_vm13, %vm2670_vm10 }
0x194e   :  { %v2666_v59 = vsub.f32 1.0, %v2665_v10  ;;  %vm2686_vm1 = vmor %vm2684_vm15, %vm2685_vm12 }
0x194f   :  { %v2681_v61 = vsub.f32 1.0, %v2680_v37 }
0x1950   :  { %v2667_v60 = vmul.f32 %v4189_v53, %v2666_v59 }
0x1951   :  { %v2682_v0 = vmul.f32 %v4191_v27, %v2681_v61 }
0x1952   :  { %v2668_v4 = vadd.f32 %v4189_v53, %v2667_v60 }
0x1953   :  { %v2683_v25 = vadd.f32 %v4191_v27, %v2682_v0 }
0x1954   :  { %v2672_v6 = vsel %vm2671_vm14, %v4189_v53, %v2668_v4 }
0x1955   :  { %v2687_v9 = vsel %vm2686_vm1, %v4191_v27, %v2683_v25  ;;  %v2677_v12 = vsel %vm2674_vm3, %v2676_v51, %v2672_v6 }
0x1956   :  { %v2692_v15 = vsel %vm2689_vm4, %v2691_v1, %v2687_v9 }
0x1957   :  { %v2703_v26 = vmul.f32 %v2699_v54, %v2692_v15 }
0x1968   :  { %v2594_v34 = vpop.permute.xlu2 %2593 }
0x1969   :  { %v2598_v38 = vmul.f32 %v2594_v34, %v5214_v35 }
0x196b   :  { %2603 = vrot.lane.b32.xlu0 %v2598_v38, %s4370_s18  ;;  %v2698_v38 = vrot.slane %v5180_v22, 1 }
0x196d   :  { %v2702_v39 = vmul.f32 %v2698_v38, %v2677_v12 }
0x197f   :  { %v2592_v52 = vpop.permute.xlu1 %2591 }
0x1980   :  { %v2597_v56 = vmul.f32 %v2592_v52, %v5218_v30 }
0x1982   :  { %2601 = vrot.lane.b32.xlu2 %v2597_v56, %s4370_s18 }
0x199f   :  { %v2707_v11 = vpop.permute.xlu0 %2706 }
0x19a0   :  { %v2712_v14 = vmul.f32 %v2707_v11, %v2677_v12  ;;  %v2709_v16 = vpop.permute.xlu1 %2708 }
0x19a1   :  { %v2713_v19 = vmul.f32 %v2709_v16, %v2692_v15 }
0x19a2   :  { %2716 = vrot.lane.b32.xlu1 %v2712_v14, %s4370_s18 }
0x19a3   :  { %2718 = vrot.lane.b32.xlu2 %v2713_v19, %s4370_s18 }
0x19dc   :  { %v2602_v58 = vpop.permute.xlu2 %2601 }
0x19dd   :  { %v2604_v57 = vpop.permute.xlu0 %2603  ;;  %v5228_v13 = vadd.f32 %v2602_v58, %v2587_v50 }
0x19de   :  { %v5230_v24 = vadd.f32 %v2604_v57, %v2588_v21 }
0x19df   :  { %4192 = vtanh.f32 %v5228_v13 }
0x19e0   :  { %4194 = vtanh.f32 %v5230_v24 }
0x19e5   :  { %v4193_v17 = vpop.eup %4192 }
0x19e6   :  { %v4195_v28 = vpop.eup %4194  ;;  %2613 = vrot.lane.b32.xlu0 %v4193_v17, %s5511_s22 }
0x19e7   :  { %2615 = vrot.lane.b32.xlu1 %v4195_v28, %s5511_s22 }
0x19fd   :  { %v2719_v33 = vpop.permute.xlu2 %2718 }
0x19fe   :  { %v5237_v34 = vadd.f32 %v2719_v33, %v2703_v26 }
0x1a00   :  { %4196 = vtanh.f32 %v5237_v34 }
0x1a06   :  { %v4197_v36 = vpop.eup %4196 }
0x1a07   :  { %2730 = vrot.lane.b32.xlu0 %v4197_v36, %s5511_s22 }
0x1a14   :  { %v2717_v7 = vpop.permute.xlu1 %2716 }
0x1a15   :  { %v5242_v40 = vadd.f32 %v2717_v7, %v2702_v39 }
0x1a17   :  { %4198 = vtanh.f32 %v5242_v40 }
0x1a1d   :  { %v4199_v3 = vpop.eup %4198 }
0x1a1e   :  { %2728 = vrot.lane.b32.xlu2 %v4199_v3, %s5511_s22 }
0x1a58   :  { %v2614_v8 = vpop.permute.xlu0 %2613 }
0x1a59   :  { %v2616_v2 = vpop.permute.xlu1 %2615  ;;  %v2619_v41 = vmul.f32 %v2614_v8, %v5218_v30 }
0x1a5a   :  { %v2620_v42 = vmul.f32 %v2616_v2, %v5214_v35 }
0x1a5b   :  { %v2736_v43 = vpack.c.bf16 %v2619_v41, %v2619_v41 }
0x1a5c   :  { %v2737_v44 = vpack.c.bf16 %v2620_v42, %v2620_v42 }
0x1a5d   :  { %v2740_v45 = vunpack.c.l.b16 %v2736_v43 }
0x1a5e   :  { %v2741_v46 = vunpack.c.l.b16 %v2737_v44 }
0x1a5f   :  { %v2742_v22 = vrot.slane %v2740_v45, 3 }
0x1a60   :  { %v2743_v47 = vrot.slane %v2741_v46, 2 }
0x1a62   :  { %v2744_v49 = vsel %vm2055_vm8, %v2743_v47, %v2742_v22 }
0x1a63   :  { %v2745_v52 = vpack.c.b16 %v2744_v49, %v2744_v49 }
0x1a65   :  { %2746 = vrot.lane.b32.xlu1 %v2745_v52, %s4370_s18 }
0x1a78   :  { %v2729_v55 = vpop.permute.xlu2 %2728 }
0x1a79   :  { %v2734_v56 = vmul.f32 %v2729_v55, %v2677_v12  ;;  %v2731_v53 = vpop.permute.xlu0 %2730 }
0x1a7a   :  { %v2735_v27 = vmul.f32 %v2731_v53, %v2692_v15 }
0x1a7b   :  { %v2851_v10 = vpack.c.bf16 %v2734_v56, %v2734_v56 }
0x1a7c   :  { %v2852_v37 = vpack.c.bf16 %v2735_v27, %v2735_v27 }
0x1a7d   :  { %v2855_v30 = vunpack.c.l.b16 %v2851_v10 }
0x1a7e   :  { %v2856_v59 = vunpack.c.l.b16 %v2852_v37 }
0x1a7f   :  { %v2857_v35 = vrot.slane %v2855_v30, 4 }
0x1a80   :  { %v2858_v61 = vrot.slane %v2856_v59, 3 }
0x1a82   :  { %v2859_v60 = vsel %vm2055_vm8, %v2858_v61, %v2857_v35 }
0x1a83   :  { %v2860_v0 = vpack.c.b16 %v2859_v60, %v2859_v60 }
0x1a85   :  { %2861 = vrot.lane.b32.xlu2 %v2860_v0, %s4370_s18 }
0x1ad7   :  { %v2747_v4 = vpop.permute.xlu1 %2746 }
0x1ad8   :  { %3849 = vmatmul.msk.bf16.vlgmr.msrb.gmra.mxu3 %vm74_vm0, %v2747_v4 }
0x1adf   :  { %v2862_v62 = vpop.permute.xlu2 %2861 }
0x1ae0   :  { %3852 = vmatmul.msk.bf16.vlgmr.msra.gmra.mxu2 %vm74_vm0, %v2862_v62 }
0x1b5b   :  { %v2760_v25 = vpop.f32.mrf.mxu3 }
0x1b5c   :  { %v2765_v5 = vrot.slane %v2760_v25, 4  ;;  %v2766_v29 = vrot.slane %v2760_v25, 5 }
0x1b5e   :  { %v2769_v48 = vadd.f32 %v2765_v5, %v5048_v18  ;;  %v2770_v6 = vadd.f32 %v2766_v29, %v5051_v23 }
0x1b60   :  { %4200 = vtanh.f32 %v2769_v48  ;;  %v3850_v57 = vmul.f32 -1.442695, %v2769_v48  ;;  %v3851_v17 = vmul.f32 -1.442695, %v2770_v6 }
0x1b61   :  { %4202 = vtanh.f32 %v2770_v6 }
0x1b63   :  { %v2762_v51 = vpop.f32.mrf.mxu3  ;;  %v2875_v9 = vpop.f32.mrf.mxu2 }
0x1b64   :  { %v2880_v1 = vrot.slane %v2875_v9, 5  ;;  %v2881_v11 = vrot.slane %v2875_v9, 6 }
0x1b66   :  { %v4201_v12 = vpop.eup %4200  ;;  %v2884_v14 = vadd.f32 %v2880_v1, %v5058_v31  ;;  %v2885_v15 = vadd.f32 %v2881_v11, %v5060_v32 }
0x1b67   :  { %v4203_v16 = vpop.eup %4202  ;;  %2821 = vrot.lane.b32.xlu0 %v4201_v12, %s5511_s22 }
0x1b68   :  { %4204 = vtanh.f32 %v2884_v14  ;;  %2823 = vrot.lane.b32.xlu1 %v4203_v16, %s5511_s22  ;;  %v3853_v50 = vmul.f32 -1.442695, %v2884_v14  ;;  %v3854_v54 = vmul.f32 -1.442695, %v2885_v15 }
0x1b69   :  { %4206 = vtanh.f32 %v2885_v15 }
0x1b6a   :  { %4208 = vpow2.f32 %v3853_v50 }
0x1b6b   :  { %v2877_v19 = vpop.f32.mrf.mxu2 }
0x1b6e   :  { %v4205_v20 = vpop.eup %4204 }
0x1b6f   :  { %v4207_v63 = vpop.eup %4206  ;;  %2936 = vrot.lane.b32.xlu2 %v4205_v20, %s5511_s22 }
0x1b70   :  { %2938 = vrot.lane.b32.xlu0 %v4207_v63, %s5511_s22  ;;  %v4209_v21 = vpop.eup %4208 }
0x1b71   :  { %v2892_v58 = vadd.f32 1.0, %v4209_v21 }
0x1b73   :  { %4210 = vrcp.f32 %v2892_v58  ;;  %v2905_v43 = vand.u32 2147483648, %v2892_v58  ;;  %vm2899_vm6 = vweird.f32 %v2892_v58  ;;  %v2903_v45 = vand.u32 2147483647, %v2892_v58 }
0x1b74   :  { %4212 = vpow2.f32 %v3850_v57 }
0x1b75   :  { %4214 = vpow2.f32 %v3851_v17  ;;  %v2906_v47 = vor.u32 1.1754944e-38, %v2905_v43  ;;  %vm2904_vm11 = vcmp.eq.f32.partialorder %v2903_v45, 8.507059e+37  ;;  %v2814_v17 = vrot.slane %v5230_v24, 7 }
0x1b76   :  { %4216 = vpow2.f32 %v3854_v54  ;;  %v2813_v24 = vrot.slane %v5228_v13, 7 }
0x1b79   :  { %v4211_v28 = vpop.eup %4210 }
0x1b7a   :  { %v4213_v26 = vpop.eup %4212  ;;  %v2895_v33 = vmul.f32 %v4211_v28, %v2892_v58  ;;  %vm2900_vm5 = vweird.f32 %v4211_v28 }
0x1b7b   :  { %v4215_v36 = vpop.eup %4214  ;;  %v2777_v38 = vadd.f32 1.0, %v4213_v26  ;;  %vm2901_vm7 = vmor %vm2899_vm6, %vm2900_vm5 }
0x1b7c   :  { %v2778_v39 = vadd.f32 1.0, %v4215_v36  ;;  %v2896_v7 = vsub.f32 1.0, %v2895_v33  ;;  %v4217_v8 = vpop.eup %4216  ;;  %v2928_v33 = vrot.slane %v5242_v40, 1  ;;  %v2929_v40 = vrot.slane %v5237_v34, 1 }
0x1b7d   :  { %4218 = vrcp.f32 %v2777_v38  ;;  %v2893_v2 = vadd.f32 1.0, %v4217_v8  ;;  %v2790_v60 = vand.u32 2147483648, %v2777_v38  ;;  %vm2784_vm12 = vweird.f32 %v2777_v38 }
0x1b7e   :  { %4220 = vrcp.f32 %v2778_v39  ;;  %v2897_v3 = vmul.f32 %v4211_v28, %v2896_v7  ;;  %v2805_v4 = vand.u32 2147483648, %v2778_v39  ;;  %v2788_v62 = vand.u32 2147483647, %v2777_v38 }
0x1b7f   :  { %4222 = vrcp.f32 %v2893_v2  ;;  %vm2799_vm13 = vweird.f32 %v2778_v39  ;;  %v2803_v25 = vand.u32 2147483647, %v2778_v39  ;;  %v2791_v48 = vor.u32 1.1754944e-38, %v2790_v60 }
0x1b80   :  { %v2898_v41 = vadd.f32 %v4211_v28, %v2897_v3  ;;  %v2806_v51 = vor.u32 1.1754944e-38, %v2805_v4  ;;  %vm2789_vm1 = vcmp.eq.f32.partialorder %v2788_v62, 8.507059e+37  ;;  %v2920_v19 = vand.u32 2147483648, %v2893_v2 }
0x1b81   :  { %vm2804_vm3 = vcmp.eq.f32.partialorder %v2803_v25, 8.507059e+37  ;;  %vm2914_vm5 = vweird.f32 %v2893_v2  ;;  %v2918_v20 = vand.u32 2147483647, %v2893_v2 }
0x1b82   :  { %v2902_v46 = vsel %vm2901_vm7, %v4211_v28, %v2898_v41  ;;  %v2921_v50 = vor.u32 1.1754944e-38, %v2920_v19 }
0x1b83   :  { %v4219_v42 = vpop.eup %4218  ;;  %v5262_v55 = vsel %vm2904_vm11, %v2906_v47, %v2902_v46  ;;  %vm2919_vm7 = vcmp.eq.f32.partialorder %v2918_v20, 8.507059e+37 }
0x1b84   :  { %v4221_v44 = vpop.eup %4220  ;;  %v2780_v22 = vmul.f32 %v4219_v42, %v2777_v38  ;;  %vm2785_vm9 = vweird.f32 %v4219_v42  ;;  %v2932_v36 = vmul.f32 %v2928_v33, %v5262_v55 }
0x1b85   :  { %v2795_v49 = vmul.f32 %v4221_v44, %v2778_v39  ;;  %v4223_v10 = vpop.eup %4222  ;;  %vm2800_vm10 = vweird.f32 %v4221_v44  ;;  %vm2786_vm14 = vmor %vm2784_vm12, %vm2785_vm9 }
0x1b86   :  { %v2781_v53 = vsub.f32 1.0, %v2780_v22  ;;  %v2910_v59 = vmul.f32 %v4223_v10, %v2893_v2  ;;  %vm2801_vm15 = vmor %vm2799_vm13, %vm2800_vm10  ;;  %vm2915_vm4 = vweird.f32 %v4223_v10 }
0x1b87   :  { %v2796_v27 = vsub.f32 1.0, %v2795_v49  ;;  %vm2916_vm6 = vmor %vm2914_vm5, %vm2915_vm4 }
0x1b88   :  { %v2782_v37 = vmul.f32 %v4219_v42, %v2781_v53  ;;  %v2911_v0 = vsub.f32 1.0, %v2910_v59 }
0x1b89   :  { %v2797_v30 = vmul.f32 %v4221_v44, %v2796_v27 }
0x1b8a   :  { %v2783_v35 = vadd.f32 %v4219_v42, %v2782_v37  ;;  %v2912_v6 = vmul.f32 %v4223_v10, %v2911_v0 }
0x1b8b   :  { %v2798_v61 = vadd.f32 %v4221_v44, %v2797_v30 }
0x1b8c   :  { %v2787_v5 = vsel %vm2786_vm14, %v4219_v42, %v2783_v35  ;;  %v2913_v16 = vadd.f32 %v4223_v10, %v2912_v6 }
0x1b8d   :  { %v2802_v29 = vsel %vm2801_vm15, %v4221_v44, %v2798_v61  ;;  %v2792_v9 = vsel %vm2789_vm1, %v2791_v48, %v2787_v5 }
0x1b8e   :  { %v2807_v12 = vsel %vm2804_vm3, %v2806_v51, %v2802_v29  ;;  %v2917_v63 = vsel %vm2916_vm6, %v4223_v10, %v2913_v16  ;;  %v2817_v8 = vmul.f32 %v2813_v24, %v2792_v9 }
0x1b8f   :  { %v2922_v21 = vsel %vm2919_vm7, %v2921_v50, %v2917_v63  ;;  %v2818_v28 = vmul.f32 %v2814_v17, %v2807_v12 }
0x1b90   :  { %v2933_v42 = vmul.f32 %v2929_v40, %v2922_v21 }
0x1bc9   :  { %v2937_v52 = vpop.permute.xlu2 %2936 }
0x1bca   :  { %v2942_v56 = vmul.f32 %v2937_v52, %v5262_v55 }
0x1bcc   :  { %2946 = vrot.lane.b32.xlu0 %v2942_v56, %s4370_s18 }
0x1bd9   :  { %v2822_v1 = vpop.permute.xlu0 %2821 }
0x1bda   :  { %v2824_v11 = vpop.permute.xlu1 %2823  ;;  %v2827_v14 = vmul.f32 %v2822_v1, %v2792_v9 }
0x1bdb   :  { %v2828_v15 = vmul.f32 %v2824_v11, %v2807_v12 }
0x1bdc   :  { %2831 = vrot.lane.b32.xlu1 %v2827_v14, %s4370_s18 }
0x1bdd   :  { %2833 = vrot.lane.b32.xlu2 %v2828_v15, %s4370_s18 }
0x1be2   :  { %v2939_v58 = vpop.permute.xlu0 %2938 }
0x1be3   :  { %v2943_v57 = vmul.f32 %v2939_v58, %v2922_v21 }
0x1be5   :  { %2948 = vrot.lane.b32.xlu1 %v2943_v57, %s4370_s18 }
0x1c37   :  { %v2834_v54 = vpop.permute.xlu2 %2833 }
0x1c38   :  { %v5270_v26 = vadd.f32 %v2834_v54, %v2818_v28 }
0x1c3a   :  { %4224 = vtanh.f32 %v5270_v26 }
0x1c3e   :  { %v2947_v38 = vpop.permute.xlu0 %2946 }
0x1c3f   :  { %v5275_v39 = vadd.f32 %v2947_v38, %v2932_v36 }
0x1c40   :  { %v4225_v7 = vpop.eup %4224 }
0x1c41   :  { %4226 = vtanh.f32 %v5275_v39  ;;  %2845 = vrot.lane.b32.xlu0 %v4225_v7, %s5511_s22 }
0x1c47   :  { %v4227_v3 = vpop.eup %4226 }
0x1c48   :  { %2958 = vrot.lane.b32.xlu1 %v4227_v3, %s5511_s22 }
0x1c4e   :  { %v2832_v2 = vpop.permute.xlu1 %2831 }
0x1c4f   :  { %v5281_v41 = vadd.f32 %v2832_v2, %v2817_v8 }
0x1c51   :  { %4228 = vtanh.f32 %v5281_v41 }
0x1c57   :  { %v4229_v43 = vpop.eup %4228  ;;  %v2949_v44 = vpop.permute.xlu1 %2948 }
0x1c58   :  { %v5285_v45 = vadd.f32 %v2949_v44, %v2933_v42  ;;  %2843 = vrot.lane.b32.xlu2 %v4229_v43, %s5511_s22 }
0x1c5a   :  { %4230 = vtanh.f32 %v5285_v45 }
0x1c60   :  { %v4231_v46 = vpop.eup %4230 }
0x1c61   :  { %2960 = vrot.lane.b32.xlu2 %v4231_v46, %s5511_s22 }
0x1cb2   :  { %v2844_v13 = vpop.permute.xlu2 %2843 }
0x1cb3   :  { %v2849_v22 = vmul.f32 %v2844_v13, %v2792_v9  ;;  %v2846_v47 = vpop.permute.xlu0 %2845 }
0x1cb4   :  { %v2850_v49 = vmul.f32 %v2846_v47, %v2807_v12 }
0x1cb5   :  { %v2966_v52 = vpack.c.bf16 %v2849_v22, %v2849_v22 }
0x1cb6   :  { %v2967_v56 = vpack.c.bf16 %v2850_v49, %v2850_v49 }
0x1cb7   :  { %v2970_v53 = vunpack.c.l.b16 %v2966_v52 }
0x1cb8   :  { %v2971_v34 = vunpack.c.l.b16 %v2967_v56 }
0x1cb9   :  { %v2972_v27 = vrot.slane %v2970_v53, 4 }
0x1cba   :  { %v2973_v10 = vrot.slane %v2971_v34, 3  ;;  %v2959_v37 = vpop.permute.xlu1 %2958 }
0x1cbb   :  { %v2961_v30 = vpop.permute.xlu2 %2960  ;;  %v2964_v59 = vmul.f32 %v2959_v37, %v5262_v55 }
0x1cbc   :  { %v2974_v35 = vsel %vm2055_vm8, %v2973_v10, %v2972_v27  ;;  %v2965_v61 = vmul.f32 %v2961_v30, %v2922_v21 }
0x1cbd   :  { %v2975_v60 = vpack.c.b16 %v2974_v35, %v2974_v35  ;;  %v3081_v0 = vpack.c.bf16 %v2964_v59, %v2964_v59 }
0x1cbe   :  { %v3082_v4 = vpack.c.bf16 %v2965_v61, %v2965_v61 }
0x1cbf   :  { %v3085_v62 = vunpack.c.l.b16 %v3081_v0  ;;  %2976 = vrot.lane.b32.xlu0 %v2975_v60, %s4370_s18 }
0x1cc0   :  { %v3086_v25 = vunpack.c.l.b16 %v3082_v4 }
0x1cc1   :  { %v3087_v5 = vrot.slane %v3085_v62, 3 }
0x1cc2   :  { %v3088_v29 = vrot.slane %v3086_v25, 2 }
0x1cc4   :  { %v3089_v48 = vsel %vm2055_vm8, %v3088_v29, %v3087_v5 }
0x1cc5   :  { %v3090_v6 = vpack.c.b16 %v3089_v48, %v3089_v48 }
0x1cc7   :  { %3091 = vrot.lane.b32.xlu1 %v3090_v6, %s4370_s18 }
0x1d31   :  { %v2977_v51 = vpop.permute.xlu0 %2976 }
0x1d32   :  { %3855 = vmatmul.msk.bf16.vlgmr.msrb.gmra.mxu1 %vm74_vm0, %v2977_v51 }
0x1d39   :  { %v3092_v55 = vpop.permute.xlu1 %3091 }
0x1d3a   :  { %3858 = vmatmul.msk.bf16.vlgmr.msra.gmra.mxu0 %vm74_vm0, %v3092_v55 }
0x1daf   :  { %v2990_v9 = vpop.f32.mrf.mxu1 }
0x1db0   :  { %v2995_v1 = vrot.slane %v2990_v9, 3  ;;  %v2996_v11 = vrot.slane %v2990_v9, 4 }
0x1db2   :  { %v2999_v12 = vadd.f32 %v2995_v1, %v5048_v18  ;;  %v3000_v14 = vadd.f32 %v2996_v11, %v5051_v23 }
0x1db4   :  { %4232 = vtanh.f32 %v2999_v12  ;;  %v3856_v54 = vmul.f32 -1.442695, %v2999_v12  ;;  %v3857_v8 = vmul.f32 -1.442695, %v3000_v14 }
0x1db5   :  { %4234 = vtanh.f32 %v3000_v14 }
0x1db7   :  { %v2992_v15 = vpop.f32.mrf.mxu1  ;;  %v3105_v16 = vpop.f32.mrf.mxu0 }
0x1db8   :  { %v3110_v19 = vrot.slane %v3105_v16, 6  ;;  %v3111_v20 = vrot.slane %v3105_v16, 7 }
0x1dba   :  { %v4233_v63 = vpop.eup %4232  ;;  %v3114_v50 = vadd.f32 %v3110_v19, %v5058_v31  ;;  %v3115_v21 = vadd.f32 %v3111_v20, %v5060_v32 }
0x1dbb   :  { %v4235_v58 = vpop.eup %4234  ;;  %3051 = vrot.lane.b32.xlu2 %v4233_v63, %s5511_s22 }
0x1dbc   :  { %4236 = vtanh.f32 %v3114_v50  ;;  %3053 = vrot.lane.b32.xlu0 %v4235_v58, %s5511_s22  ;;  %v3860_v33 = vmul.f32 -1.442695, %v3115_v21  ;;  %v3859_v43 = vmul.f32 -1.442695, %v3114_v50 }
0x1dbd   :  { %4238 = vtanh.f32 %v3115_v21 }
0x1dbe   :  { %4240 = vpow2.f32 %v3856_v54 }
0x1dbf   :  { %v3107_v57 = vpop.f32.mrf.mxu0  ;;  %4242 = vpow2.f32 %v3860_v33 }
0x1dc2   :  { %v4237_v17 = vpop.eup %4236 }
0x1dc3   :  { %v4239_v28 = vpop.eup %4238  ;;  %3166 = vrot.lane.b32.xlu1 %v4237_v17, %s5511_s22 }
0x1dc4   :  { %3168 = vrot.lane.b32.xlu2 %v4239_v28, %s5511_s22  ;;  %v4241_v36 = vpop.eup %4240 }
0x1dc5   :  { %v3007_v38 = vadd.f32 1.0, %v4241_v36  ;;  %v4243_v7 = vpop.eup %4242 }
0x1dc6   :  { %v3123_v3 = vadd.f32 1.0, %v4243_v7  ;;  %v3043_v7 = vrot.slane %v5281_v41, 7 }
0x1dc7   :  { %4244 = vrcp.f32 %v3007_v38  ;;  %v3020_v49 = vand.u32 2147483648, %v3007_v38  ;;  %vm3014_vm9 = vweird.f32 %v3007_v38  ;;  %v3018_v56 = vand.u32 2147483647, %v3007_v38 }
0x1dc8   :  { %4246 = vrcp.f32 %v3123_v3  ;;  %v3150_v0 = vand.u32 2147483648, %v3123_v3  ;;  %vm3144_vm14 = vweird.f32 %v3123_v3  ;;  %v3148_v4 = vand.u32 2147483647, %v3123_v3 }
0x1dc9   :  { %4248 = vpow2.f32 %v3857_v8  ;;  %v3021_v27 = vor.u32 1.1754944e-38, %v3020_v49  ;;  %vm3019_vm12 = vcmp.eq.f32.partialorder %v3018_v56, 8.507059e+37 }
0x1dca   :  { %4250 = vpow2.f32 %v3859_v43  ;;  %v3151_v5 = vor.u32 1.1754944e-38, %v3150_v0  ;;  %vm3149_vm1 = vcmp.eq.f32.partialorder %v3148_v4, 8.507059e+37 }
0x1dcd   :  { %v4245_v24 = vpop.eup %4244 }
0x1dce   :  { %v3010_v2 = vmul.f32 %v4245_v24, %v3007_v38  ;;  %v4247_v42 = vpop.eup %4246  ;;  %vm3015_vm11 = vweird.f32 %v4245_v24 }
0x1dcf   :  { %v4249_v46 = vpop.eup %4248  ;;  %v3140_v13 = vmul.f32 %v4247_v42, %v3123_v3  ;;  %vm3016_vm10 = vmor %vm3014_vm9, %vm3015_vm11  ;;  %vm3145_vm13 = vweird.f32 %v4247_v42 }
0x1dd0   :  { %v3011_v40 = vsub.f32 1.0, %v3010_v2  ;;  %v3008_v22 = vadd.f32 1.0, %v4249_v46  ;;  %v4251_v53 = vpop.eup %4250  ;;  %vm3146_vm15 = vmor %vm3144_vm14, %vm3145_vm13  ;;  %v3158_v2 = vrot.slane %v5275_v39, 1 }
0x1dd1   :  { %v3141_v52 = vsub.f32 1.0, %v3140_v13  ;;  %v3122_v37 = vadd.f32 1.0, %v4251_v53 }
0x1dd2   :  { %v3012_v44 = vmul.f32 %v4245_v24, %v3011_v40  ;;  %4252 = vrcp.f32 %v3008_v22  ;;  %v3035_v14 = vand.u32 2147483648, %v3008_v22  ;;  %vm3029_vm4 = vweird.f32 %v3008_v22 }
0x1dd3   :  { %v3142_v10 = vmul.f32 %v4247_v42, %v3141_v52  ;;  %4254 = vrcp.f32 %v3122_v37  ;;  %v3033_v15 = vand.u32 2147483647, %v3008_v22  ;;  %v3135_v57 = vand.u32 2147483648, %v3122_v37 }
0x1dd4   :  { %v3013_v47 = vadd.f32 %v4245_v24, %v3012_v44  ;;  %v3036_v20 = vor.u32 1.1754944e-38, %v3035_v14  ;;  %vm3129_vm11 = vweird.f32 %v3122_v37  ;;  %v3133_v17 = vand.u32 2147483647, %v3122_v37 }
0x1dd5   :  { %v3143_v61 = vadd.f32 %v4247_v42, %v3142_v10  ;;  %vm3034_vm6 = vcmp.eq.f32.partialorder %v3033_v15, 8.507059e+37  ;;  %v3136_v54 = vor.u32 1.1754944e-38, %v3135_v57  ;;  %v3159_v40 = vrot.slane %v5285_v45, 1 }
0x1dd6   :  { %v3017_v34 = vsel %vm3016_vm10, %v4245_v24, %v3013_v47  ;;  %vm3134_vm10 = vcmp.eq.f32.partialorder %v3133_v17, 8.507059e+37  ;;  %v3044_v45 = vrot.slane %v5270_v26, 7 }
0x1dd7   :  { %v5305_v59 = vsel %vm3019_vm12, %v3021_v27, %v3017_v34  ;;  %v3147_v62 = vsel %vm3146_vm15, %v4247_v42, %v3143_v61 }
0x1dd8   :  { %v4253_v60 = vpop.eup %4252  ;;  %v5309_v29 = vsel %vm3149_vm1, %v3151_v5, %v3147_v62  ;;  %v3047_v3 = vmul.f32 %v3043_v7, %v5305_v59 }
0x1dd9   :  { %v3025_v25 = vmul.f32 %v4253_v60, %v3008_v22  ;;  %v4255_v6 = vpop.eup %4254  ;;  %vm3030_vm3 = vweird.f32 %v4253_v60  ;;  %v3163_v44 = vmul.f32 %v3159_v40, %v5309_v29 }
0x1dda   :  { %v3125_v9 = vmul.f32 %v4255_v6, %v3122_v37  ;;  %vm3031_vm5 = vmor %vm3029_vm4, %vm3030_vm3  ;;  %vm3130_vm7 = vweird.f32 %v4255_v6 }
0x1ddb   :  { %v3026_v55 = vsub.f32 1.0, %v3025_v25  ;;  %vm3131_vm9 = vmor %vm3129_vm11, %vm3130_vm7 }
0x1ddc   :  { %v3126_v11 = vsub.f32 1.0, %v3125_v9 }
0x1ddd   :  { %v3027_v1 = vmul.f32 %v4253_v60, %v3026_v55 }
0x1dde   :  { %v3127_v16 = vmul.f32 %v4255_v6, %v3126_v11 }
0x1ddf   :  { %v3028_v12 = vadd.f32 %v4253_v60, %v3027_v1 }
0x1de0   :  { %v3128_v21 = vadd.f32 %v4255_v6, %v3127_v16 }
0x1de1   :  { %v3032_v19 = vsel %vm3031_vm5, %v4253_v60, %v3028_v12 }
0x1de2   :  { %v3037_v50 = vsel %vm3034_vm6, %v3036_v20, %v3032_v19  ;;  %v3132_v28 = vsel %vm3131_vm9, %v4255_v6, %v3128_v21 }
0x1de3   :  { %v3137_v36 = vsel %vm3134_vm10, %v3136_v54, %v3132_v28  ;;  %v3048_v49 = vmul.f32 %v3044_v45, %v3037_v50 }
0x1de4   :  { %v3162_v42 = vmul.f32 %v3158_v2, %v3137_v36 }
0x1e15   :  { %v3052_v30 = vpop.permute.xlu2 %3051 }
0x1e16   :  { %v3057_v35 = vmul.f32 %v3052_v30, %v5305_v59 }
0x1e18   :  { %3061 = vrot.lane.b32.xlu0 %v3057_v35, %s4370_s18 }
0x1e1e   :  { %v3169_v48 = vpop.permute.xlu2 %3168 }
0x1e1f   :  { %v3173_v51 = vmul.f32 %v3169_v48, %v5309_v29 }
0x1e21   :  { %3178 = vrot.lane.b32.xlu0 %v3173_v51, %s4370_s18 }
0x1e2e   :  { %v3054_v63 = vpop.permute.xlu0 %3053 }
0x1e2f   :  { %v3058_v58 = vmul.f32 %v3054_v63, %v3037_v50 }
0x1e31   :  { %3063 = vrot.lane.b32.xlu1 %v3058_v58, %s4370_s18 }
0x1e35   :  { %v3167_v33 = vpop.permute.xlu1 %3166 }
0x1e36   :  { %v3172_v38 = vmul.f32 %v3167_v33, %v3137_v36 }
0x1e38   :  { %3176 = vrot.lane.b32.xlu2 %v3172_v38, %s4370_s18 }
0x1e8a   :  { %v3062_v24 = vpop.permute.xlu0 %3061 }
0x1e8b   :  { %v5317_v8 = vadd.f32 %v3062_v24, %v3047_v3 }
0x1e8d   :  { %4256 = vtanh.f32 %v5317_v8 }
0x1e92   :  { %v3177_v43 = vpop.permute.xlu2 %3176 }
0x1e93   :  { %v4257_v46 = vpop.eup %4256  ;;  %v5323_v13 = vadd.f32 %v3177_v43, %v3162_v42  ;;  %v3179_v22 = vpop.permute.xlu0 %3178 }
0x1e94   :  { %v5325_v41 = vadd.f32 %v3179_v22, %v3163_v44  ;;  %3073 = vrot.lane.b32.xlu1 %v4257_v46, %s5511_s22 }
0x1e95   :  { %4258 = vtanh.f32 %v5323_v13 }
0x1e96   :  { %4260 = vtanh.f32 %v5325_v41 }
0x1e9b   :  { %v4259_v47 = vpop.eup %4258 }
0x1e9c   :  { %v4261_v39 = vpop.eup %4260  ;;  %3188 = vrot.lane.b32.xlu0 %v4259_v47, %s5511_s22 }
0x1e9d   :  { %3190 = vrot.lane.b32.xlu1 %v4261_v39, %s5511_s22 }
0x1ea3   :  { %v3064_v52 = vpop.permute.xlu1 %3063 }
0x1ea4   :  { %v5333_v56 = vadd.f32 %v3064_v52, %v3048_v49 }
0x1ea6   :  { %4262 = vtanh.f32 %v5333_v56 }
0x1eac   :  { %v4263_v53 = vpop.eup %4262 }
0x1ead   :  { %3075 = vrot.lane.b32.xlu2 %v4263_v53, %s5511_s22 }
0x1f06   :  { %v3074_v34 = vpop.permute.xlu1 %3073 }
0x1f07   :  { %v3076_v27 = vpop.permute.xlu2 %3075  ;;  %v3079_v10 = vmul.f32 %v3074_v34, %v5305_v59 }
0x1f08   :  { %v3080_v37 = vmul.f32 %v3076_v27, %v3037_v50 }
0x1f09   :  { %v3196_v30 = vpack.c.bf16 %v3079_v10, %v3079_v10 }
0x1f0a   :  { %v3197_v35 = vpack.c.bf16 %v3080_v37, %v3080_v37 }
0x1f0b   :  { %v3200_v61 = vunpack.c.l.b16 %v3196_v30 }
0x1f0c   :  { %v3201_v60 = vunpack.c.l.b16 %v3197_v35 }
0x1f0d   :  { %v3202_v0 = vrot.slane %v3200_v61, 5 }
0x1f0e   :  { %v3203_v26 = vrot.slane %v3201_v60, 4  ;;  %v3189_v4 = vpop.permute.xlu0 %3188 }
0x1f0f   :  { %v3194_v62 = vmul.f32 %v3189_v4, %v3137_v36  ;;  %v3191_v25 = vpop.permute.xlu1 %3190 }
0x1f10   :  { %v3204_v5 = vsel %vm2055_vm8, %v3203_v26, %v3202_v0  ;;  %v3195_v48 = vmul.f32 %v3191_v25, %v5309_v29 }
0x1f11   :  { %v3205_v6 = vpack.c.b16 %v3204_v5, %v3204_v5  ;;  %v3311_v51 = vpack.c.bf16 %v3194_v62, %v3194_v62 }
0x1f12   :  { %v3312_v55 = vpack.c.bf16 %v3195_v48, %v3195_v48 }
0x1f13   :  { %v3315_v9 = vunpack.c.l.b16 %v3311_v51  ;;  %3206 = vrot.lane.b32.xlu2 %v3205_v6, %s4370_s18 }
0x1f14   :  { %v3316_v59 = vunpack.c.l.b16 %v3312_v55 }
0x1f15   :  { %v3317_v1 = vrot.slane %v3315_v9, 2 }
0x1f16   :  { %v3318_v11 = vrot.slane %v3316_v59, 1 }
0x1f18   :  { %v3319_v12 = vsel %vm2055_vm8, %v3318_v11, %v3317_v1 }
0x1f19   :  { %v3320_v14 = vpack.c.b16 %v3319_v12, %v3319_v12 }
0x1f1b   :  { %3321 = vrot.lane.b32.xlu0 %v3320_v14, %s4370_s18 }
0x1f6d   :  { %v3207_v15 = vpop.permute.xlu2 %3206 }
0x1f6e   :  { %3861 = vmatmul.msk.bf16.vlgmr.msra.gmra.mxu3 %vm74_vm0, %v3207_v15 }
0x1f8d   :  { %v3322_v16 = vpop.permute.xlu0 %3321 }
0x1f8e   :  { %3864 = vmatmul.msk.bf16.vlgmr.msrb.gmra.mxu2 %vm74_vm0, %v3322_v16 }
0x1ff1   :  { %v3220_v29 = vpop.f32.mrf.mxu3 }
0x1ff2   :  { %v3225_v19 = vrot.slane %v3220_v29, 2  ;;  %v3226_v20 = vrot.slane %v3220_v29, 3 }
0x1ff4   :  { %v3229_v63 = vadd.f32 %v3225_v19, %v5048_v18  ;;  %v3230_v50 = vadd.f32 %v3226_v20, %v5051_v23 }
0x1ff6   :  { %4264 = vtanh.f32 %v3229_v63  ;;  %v3863_v3 = vmul.f32 -1.442695, %v3230_v50  ;;  %v3862_v42 = vmul.f32 -1.442695, %v3229_v63 }
0x1ff7   :  { %4266 = vtanh.f32 %v3230_v50 }
0x1ff9   :  { %v3222_v21 = vpop.f32.mrf.mxu3 }
0x1ffc   :  { %v4265_v58 = vpop.eup %4264 }
0x1ffd   :  { %v4267_v57 = vpop.eup %4266  ;;  %3281 = vrot.lane.b32.xlu1 %v4265_v58, %s5511_s22 }
0x1ffe   :  { %3283 = vrot.lane.b32.xlu2 %v4267_v57, %s5511_s22 }
0x2011   :  { %v3335_v17 = vpop.f32.mrf.mxu2 }
0x2012   :  { %v3340_v28 = vrot.slane %v3335_v17, 7  ;;  %v3344_v54 = vadd.f32 %v3335_v17, %v5060_v32 }
0x2014   :  { %v3343_v33 = vadd.f32 %v3340_v28, %v5058_v31  ;;  %4268 = vtanh.f32 %v3344_v54  ;;  %v3866_v35 = vmul.f32 -1.442695, %v3344_v54 }
0x2016   :  { %4270 = vtanh.f32 %v3343_v33  ;;  %v3865_v60 = vmul.f32 -1.442695, %v3343_v33 }
0x2017   :  { %4272 = vpow2.f32 %v3863_v3 }
0x2019   :  { %v3337_v36 = vpop.f32.mrf.mxu2 }
0x201a   :  { %v4269_v38 = vpop.eup %4268 }
0x201b   :  { %3397 = vrot.lane.b32.xlu1 %v4269_v38, %s5511_s22 }
0x201c   :  { %v4271_v7 = vpop.eup %4270 }
0x201d   :  { %3395 = vrot.lane.b32.xlu0 %v4271_v7, %s5511_s22  ;;  %v4273_v24 = vpop.eup %4272 }
0x201e   :  { %v3238_v2 = vadd.f32 1.0, %v4273_v24 }
0x2020   :  { %4274 = vrcp.f32 %v3238_v2  ;;  %v3265_v45 = vand.u32 2147483648, %v3238_v2  ;;  %vm3259_vm13 = vweird.f32 %v3238_v2  ;;  %v3263_v49 = vand.u32 2147483647, %v3238_v2 }
0x2021   :  { %4276 = vpow2.f32 %v3862_v42  ;;  %v3273_v42 = vrot.slane %v5317_v8, 7  ;;  %v3388_v8 = vrot.slane %v5325_v41, 1 }
0x2022   :  { %v3266_v53 = vor.u32 1.1754944e-38, %v3265_v45  ;;  %vm3264_vm15 = vcmp.eq.f32.partialorder %v3263_v49, 8.507059e+37 }
0x2026   :  { %v4275_v40 = vpop.eup %4274 }
0x2027   :  { %v3255_v43 = vmul.f32 %v4275_v40, %v3238_v2  ;;  %v4277_v46 = vpop.eup %4276  ;;  %vm3260_vm12 = vweird.f32 %v4275_v40 }
0x2028   :  { %v3237_v47 = vadd.f32 1.0, %v4277_v46  ;;  %vm3261_vm14 = vmor %vm3259_vm13, %vm3260_vm12 }
0x2029   :  { %v3256_v44 = vsub.f32 1.0, %v3255_v43  ;;  %v3274_v43 = vrot.slane %v5333_v56, 7 }
0x202a   :  { %4278 = vrcp.f32 %v3237_v47  ;;  %v3250_v4 = vand.u32 2147483648, %v3237_v47  ;;  %vm3244_vm3 = vweird.f32 %v3237_v47  ;;  %v3248_v25 = vand.u32 2147483647, %v3237_v47 }
0x202b   :  { %v3257_v22 = vmul.f32 %v4275_v40, %v3256_v44  ;;  %4280 = vpow2.f32 %v3866_v35 }
0x202c   :  { %4282 = vpow2.f32 %v3865_v60  ;;  %v3251_v51 = vor.u32 1.1754944e-38, %v3250_v4  ;;  %vm3249_vm5 = vcmp.eq.f32.partialorder %v3248_v25, 8.507059e+37 }
0x202d   :  { %v3258_v39 = vadd.f32 %v4275_v40, %v3257_v22 }
0x202f   :  { %v3262_v52 = vsel %vm3261_vm14, %v4275_v40, %v3258_v39 }
0x2030   :  { %v5353_v27 = vsel %vm3264_vm15, %v3266_v53, %v3262_v52  ;;  %v4279_v10 = vpop.eup %4278 }
0x2031   :  { %v3240_v30 = vmul.f32 %v4279_v10, %v3237_v47  ;;  %vm3245_vm1 = vweird.f32 %v4279_v10  ;;  %v4281_v62 = vpop.eup %4280  ;;  %v3278_v46 = vmul.f32 %v3274_v43, %v5353_v27 }
0x2032   :  { %vm3246_vm4 = vmor %vm3244_vm3, %vm3245_vm1  ;;  %v4283_v48 = vpop.eup %4282  ;;  %v3352_v6 = vadd.f32 1.0, %v4281_v62 }
0x2033   :  { %v3241_v61 = vsub.f32 1.0, %v3240_v30  ;;  %v3351_v59 = vadd.f32 1.0, %v4283_v48 }
0x2034   :  { %4284 = vrcp.f32 %v3352_v6  ;;  %v3379_v50 = vand.u32 2147483648, %v3352_v6  ;;  %vm3373_vm7 = vweird.f32 %v3352_v6  ;;  %v3377_v21 = vand.u32 2147483647, %v3352_v6 }
0x2035   :  { %v3242_v0 = vmul.f32 %v4279_v10, %v3241_v61  ;;  %4286 = vrcp.f32 %v3351_v59  ;;  %v3364_v17 = vand.u32 2147483648, %v3351_v59  ;;  %vm3358_vm10 = vweird.f32 %v3351_v59 }
0x2036   :  { %v3380_v28 = vor.u32 1.1754944e-38, %v3379_v50  ;;  %v3362_v54 = vand.u32 2147483647, %v3351_v59  ;;  %vm3378_vm12 = vcmp.eq.f32.partialorder %v3377_v21, 8.507059e+37 }
0x2037   :  { %v3243_v26 = vadd.f32 %v4279_v10, %v3242_v0  ;;  %v3365_v3 = vor.u32 1.1754944e-38, %v3364_v17 }
0x2038   :  { %vm3363_vm14 = vcmp.eq.f32.partialorder %v3362_v54, 8.507059e+37 }
0x2039   :  { %v3247_v5 = vsel %vm3246_vm4, %v4279_v10, %v3243_v26 }
0x203a   :  { %v5357_v55 = vsel %vm3249_vm5, %v3251_v51, %v3247_v5  ;;  %v4285_v11 = vpop.eup %4284 }
0x203b   :  { %v4287_v12 = vpop.eup %4286  ;;  %v3369_v14 = vmul.f32 %v4285_v11, %v3352_v6  ;;  %vm3374_vm6 = vweird.f32 %v4285_v11  ;;  %v3277_v44 = vmul.f32 %v3273_v42, %v5357_v55 }
0x203c   :  { %v3354_v15 = vmul.f32 %v4287_v12, %v3351_v59  ;;  %vm3375_vm11 = vmor %vm3373_vm7, %vm3374_vm6  ;;  %vm3359_vm9 = vweird.f32 %v4287_v12 }
0x203d   :  { %v3370_v16 = vsub.f32 1.0, %v3369_v14  ;;  %vm3360_vm13 = vmor %vm3358_vm10, %vm3359_vm9 }
0x203e   :  { %v3355_v29 = vsub.f32 1.0, %v3354_v15 }
0x203f   :  { %v3371_v19 = vmul.f32 %v4285_v11, %v3370_v16 }
0x2040   :  { %v3356_v20 = vmul.f32 %v4287_v12, %v3355_v29 }
0x2041   :  { %v3372_v63 = vadd.f32 %v4285_v11, %v3371_v19 }
0x2042   :  { %v3357_v58 = vadd.f32 %v4287_v12, %v3356_v20 }
0x2043   :  { %v3376_v57 = vsel %vm3375_vm11, %v4285_v11, %v3372_v63 }
0x2044   :  { %v3381_v33 = vsel %vm3378_vm12, %v3380_v28, %v3376_v57  ;;  %v3361_v38 = vsel %vm3360_vm13, %v4287_v12, %v3357_v58 }
0x2045   :  { %v3366_v2 = vsel %vm3363_vm14, %v3365_v3, %v3361_v38  ;;  %v3392_v56 = vmul.f32 %v3388_v8, %v3381_v33 }
0x2058   :  { %v3284_v34 = vpop.permute.xlu2 %3283 }
0x2059   :  { %v3288_v37 = vmul.f32 %v3284_v34, %v5353_v27 }
0x205b   :  { %3293 = vrot.lane.b32.xlu0 %v3288_v37, %s4370_s18  ;;  %v3387_v37 = vrot.slane %v5323_v13, 1 }
0x205d   :  { %v3391_v30 = vmul.f32 %v3387_v37, %v3366_v2 }
0x206f   :  { %v3282_v9 = vpop.permute.xlu1 %3281 }
0x2070   :  { %v3287_v1 = vmul.f32 %v3282_v9, %v5357_v55 }
0x2072   :  { %3291 = vrot.lane.b32.xlu2 %v3287_v1, %s4370_s18 }
0x208d   :  { %v3398_v36 = vpop.permute.xlu1 %3397 }
0x208e   :  { %v3402_v7 = vmul.f32 %v3398_v36, %v3381_v33 }
0x208f   :  { %v3396_v24 = vpop.permute.xlu0 %3395 }
0x2090   :  { %3407 = vrot.lane.b32.xlu2 %v3402_v7, %s4370_s18  ;;  %v3401_v40 = vmul.f32 %v3396_v24, %v3366_v2 }
0x2092   :  { %3405 = vrot.lane.b32.xlu1 %v3401_v40, %s4370_s18 }
0x20cc   :  { %v3292_v22 = vpop.permute.xlu2 %3291 }
0x20cd   :  { %v3294_v47 = vpop.permute.xlu0 %3293  ;;  %v5367_v39 = vadd.f32 %v3292_v22, %v3277_v44 }
0x20ce   :  { %v5369_v45 = vadd.f32 %v3294_v47, %v3278_v46 }
0x20cf   :  { %4288 = vtanh.f32 %v5367_v39 }
0x20d0   :  { %4290 = vtanh.f32 %v5369_v45 }
0x20d5   :  { %v4289_v49 = vpop.eup %4288 }
0x20d6   :  { %v4291_v52 = vpop.eup %4290  ;;  %3303 = vrot.lane.b32.xlu0 %v4289_v49, %s5511_s22 }
0x20d7   :  { %3305 = vrot.lane.b32.xlu1 %v4291_v52, %s5511_s22 }
0x20ea   :  { %v3408_v53 = vpop.permute.xlu2 %3407 }
0x20eb   :  { %v5376_v34 = vadd.f32 %v3408_v53, %v3392_v56 }
0x20ed   :  { %4292 = vtanh.f32 %v5376_v34 }
0x20f3   :  { %v4293_v10 = vpop.eup %4292 }
0x20f4   :  { %3419 = vrot.lane.b32.xlu0 %v4293_v10, %s5511_s22 }
0x2104   :  { %v3406_v35 = vpop.permute.xlu1 %3405 }
0x2105   :  { %v5381_v61 = vadd.f32 %v3406_v35, %v3391_v30 }
0x2107   :  { %4294 = vtanh.f32 %v5381_v61 }
0x210d   :  { %v4295_v60 = vpop.eup %4294 }
0x210e   :  { %3417 = vrot.lane.b32.xlu2 %v4295_v60, %s5511_s22 }
0x2148   :  { %v3304_v41 = vpop.permute.xlu0 %3303 }
0x2149   :  { %v3309_v0 = vmul.f32 %v3304_v41, %v5357_v55  ;;  %v3306_v26 = vpop.permute.xlu1 %3305 }
0x214a   :  { %v3310_v4 = vmul.f32 %v3306_v26, %v5353_v27 }
0x214b   :  { %v3425_v62 = vpack.c.bf16 %v3309_v0, %v3309_v0 }
0x214c   :  { %v3426_v25 = vpack.c.bf16 %v3310_v4, %v3310_v4 }
0x214d   :  { %v3429_v5 = vunpack.c.l.b16 %v3425_v62 }
0x214e   :  { %v3430_v48 = vunpack.c.l.b16 %v3426_v25 }
0x214f   :  { %v3431_v13 = vrot.slane %v3429_v5, 6 }
0x2150   :  { %v3432_v6 = vrot.slane %v3430_v48, 5 }
0x2152   :  { %v3433_v51 = vsel %vm2055_vm8, %v3432_v6, %v3431_v13 }
0x2153   :  { %v3434_v9 = vpack.c.b16 %v3433_v51, %v3433_v51 }
0x2155   :  { %3435 = vrot.lane.b32.xlu1 %v3434_v9, %s4370_s18 }
0x2166   :  { %v3420_v59 = vpop.permute.xlu0 %3419 }
0x2167   :  { %v3424_v1 = vmul.f32 %v3420_v59, %v3381_v33 }
0x2168   :  { %v3418_v11 = vpop.permute.xlu2 %3417 }
0x2169   :  { %v3423_v12 = vmul.f32 %v3418_v11, %v3366_v2  ;;  %v3541_v14 = vpack.c.bf16 %v3424_v1, %v3424_v1 }
0x216b   :  { %v3540_v55 = vpack.c.bf16 %v3423_v12, %v3423_v12  ;;  %v3545_v16 = vunpack.c.l.b16 %v3541_v14 }
0x216d   :  { %v3544_v15 = vunpack.c.l.b16 %v3540_v55 }
0x216f   :  { %v3546_v27 = vrot.slane %v3544_v15, 1 }
0x2171   :  { %v3547_v29 = vsel %vm2055_vm8, %v3545_v16, %v3546_v27 }
0x2172   :  { %v3548_v19 = vpack.c.b16 %v3547_v29, %v3547_v29 }
0x2174   :  { %3549 = vrot.lane.b32.xlu2 %v3548_v19, %s4370_s18 }
0x21c7   :  { %v3436_v20 = vpop.permute.xlu1 %3435 }
0x21c8   :  { %3867 = vmatmul.msk.bf16.vlgmr.msra.gmra.mxu1 %vm74_vm0, %v3436_v20 }
0x21ce   :  { %v3550_v63 = vpop.permute.xlu2 %3549 }
0x21cf   :  { %3870 = vmatmul.msk.bf16.vlgmr.msrb.gmra.mxu0 %vm74_vm0, %v3550_v63 }
0x2245   :  { %v3449_v50 = vpop.f32.mrf.mxu1 }
0x2246   :  { %v3454_v21 = vrot.slane %v3449_v50, 1  ;;  %v3455_v58 = vrot.slane %v3449_v50, 2 }
0x2248   :  { %v3458_v57 = vadd.f32 %v3454_v21, %v5048_v18  ;;  %v3459_v17 = vadd.f32 %v3455_v58, %v5051_v23 }
0x224a   :  { %4296 = vtanh.f32 %v3458_v57  ;;  %v3868_v2 = vmul.f32 -1.442695, %v3458_v57  ;;  %v3869_v42 = vmul.f32 -1.442695, %v3459_v17 }
0x224b   :  { %4298 = vtanh.f32 %v3459_v17 }
0x224c   :  { %v3563_v54 = vpop.f32.mrf.mxu0 }
0x224d   :  { %v3451_v28 = vpop.f32.mrf.mxu1  ;;  %v3568_v33 = vrot.slane %v3563_v54, 1  ;;  %v3571_v36 = vadd.f32 %v3563_v54, %v5058_v31 }
0x224f   :  { %v3572_v7 = vadd.f32 %v3568_v33, %v5060_v32  ;;  %4300 = vtanh.f32 %v3571_v36  ;;  %v3871_v44 = vmul.f32 -1.442695, %v3571_v36 }
0x2250   :  { %v4297_v38 = vpop.eup %4296 }
0x2251   :  { %v4299_v3 = vpop.eup %4298  ;;  %3510 = vrot.lane.b32.xlu2 %v4297_v38, %s5511_s22  ;;  %4302 = vtanh.f32 %v3572_v7  ;;  %v3872_v22 = vmul.f32 -1.442695, %v3572_v7 }
0x2252   :  { %3512 = vrot.lane.b32.xlu0 %v4299_v3, %s5511_s22  ;;  %4304 = vpow2.f32 %v3868_v2  ;;  %v3502_v2 = vrot.slane %v5367_v39, 7 }
0x2254   :  { %v3565_v18 = vpop.f32.mrf.mxu0 }
0x2255   :  { %v4301_v24 = vpop.eup %4300 }
0x2256   :  { %3623 = vrot.lane.b32.xlu1 %v4301_v24, %s5511_s22 }
0x2257   :  { %v4303_v23 = vpop.eup %4302 }
0x2258   :  { %v4305_v31 = vpop.eup %4304 }
0x2259   :  { %v3466_v40 = vadd.f32 1.0, %v4305_v31 }
0x225a   :  { %3625 = vrot.lane.b32.xlu0 %v4303_v23, %s5511_s22 }
0x225b   :  { %4306 = vrcp.f32 %v3466_v40  ;;  %v3479_v56 = vand.u32 2147483648, %v3466_v40  ;;  %vm3473_vm15 = vweird.f32 %v3466_v40  ;;  %v3477_v10 = vand.u32 2147483647, %v3466_v40 }
0x225c   :  { %4308 = vpow2.f32 %v3869_v42  ;;  %v3615_v42 = vrot.slane %v5381_v61, 1 }
0x225d   :  { %4310 = vpow2.f32 %v3871_v44  ;;  %v3480_v60 = vor.u32 1.1754944e-38, %v3479_v56  ;;  %vm3478_vm3 = vcmp.eq.f32.partialorder %v3477_v10, 8.507059e+37  ;;  %v3616_v56 = vrot.slane %v5376_v34, 1 }
0x225e   :  { %4312 = vpow2.f32 %v3872_v22 }
0x2261   :  { %v4307_v32 = vpop.eup %4306 }
0x2262   :  { %v3469_v43 = vmul.f32 %v4307_v32, %v3466_v40  ;;  %v4309_v49 = vpop.eup %4308  ;;  %vm3474_vm8 = vweird.f32 %v4307_v32 }
0x2263   :  { %v3467_v52 = vadd.f32 1.0, %v4309_v49  ;;  %v4311_v53 = vpop.eup %4310  ;;  %vm3475_vm1 = vmor %vm3473_vm15, %vm3474_vm8  ;;  %v3503_v49 = vrot.slane %v5369_v45, 7 }
0x2264   :  { %v3470_v46 = vsub.f32 1.0, %v3469_v43  ;;  %v4313_v30 = vpop.eup %4312  ;;  %v3579_v35 = vadd.f32 1.0, %v4311_v53 }
0x2265   :  { %4314 = vrcp.f32 %v3467_v52  ;;  %v3580_v26 = vadd.f32 1.0, %v4313_v30  ;;  %v3494_v12 = vand.u32 2147483648, %v3467_v52  ;;  %vm3488_vm5 = vweird.f32 %v3467_v52 }
0x2266   :  { %v3471_v47 = vmul.f32 %v4307_v32, %v3470_v46  ;;  %4316 = vrcp.f32 %v3579_v35  ;;  %v3492_v55 = vand.u32 2147483647, %v3467_v52  ;;  %v3592_v19 = vand.u32 2147483648, %v3579_v35 }
0x2267   :  { %4318 = vrcp.f32 %v3580_v26  ;;  %v3495_v27 = vor.u32 1.1754944e-38, %v3494_v12  ;;  %vm3586_vm9 = vweird.f32 %v3579_v35  ;;  %v3590_v50 = vand.u32 2147483647, %v3579_v35  ;;  %v3676_v12 = vld [vmem:[%s5472_s19 + $0x18] sm:$0xff] }
0x2268   :  { %v3472_v8 = vadd.f32 %v4307_v32, %v3471_v47  ;;  %vm3493_vm11 = vcmp.eq.f32.partialorder %v3492_v55, 8.507059e+37  ;;  %v3607_v17 = vand.u32 2147483648, %v3580_v26  ;;  %v3593_v28 = vor.u32 1.1754944e-38, %v3592_v19  ;;  %v3673_v55 = vld [vmem:[%s5472_s19] sm:$0xff] }
0x2269   :  { %vm3601_vm13 = vweird.f32 %v3580_v26  ;;  %v3605_v54 = vand.u32 2147483647, %v3580_v26  ;;  %vm3591_vm14 = vcmp.eq.f32.partialorder %v3590_v50, 8.507059e+37 }
0x226a   :  { %v3476_v37 = vsel %vm3475_vm1, %v4307_v32, %v3472_v8  ;;  %v3608_v3 = vor.u32 1.1754944e-38, %v3607_v17 }
0x226b   :  { %v5401_v0 = vsel %vm3478_vm3, %v3480_v60, %v3476_v37  ;;  %v4315_v62 = vpop.eup %4314  ;;  %vm3606_vm15 = vcmp.eq.f32.partialorder %v3605_v54, 8.507059e+37 }
0x226c   :  { %v3484_v25 = vmul.f32 %v4315_v62, %v3467_v52  ;;  %v4317_v5 = vpop.eup %4316  ;;  %vm3489_vm4 = vweird.f32 %v4315_v62  ;;  %v3506_v31 = vmul.f32 %v3502_v2, %v5401_v0 }
0x226d   :  { %v4319_v13 = vpop.eup %4318  ;;  %v3582_v6 = vmul.f32 %v4317_v5, %v3579_v35  ;;  %vm3490_vm6 = vmor %vm3488_vm5, %vm3489_vm4  ;;  %vm3587_vm7 = vweird.f32 %v4317_v5 }
0x226e   :  { %v3485_v48 = vsub.f32 1.0, %v3484_v25  ;;  %v3597_v9 = vmul.f32 %v4319_v13, %v3580_v26  ;;  %vm3588_vm10 = vmor %vm3586_vm9, %vm3587_vm7  ;;  %vm3602_vm12 = vweird.f32 %v4319_v13 }
0x226f   :  { %v3583_v59 = vsub.f32 1.0, %v3582_v6  ;;  %vm3603_vm8 = vmor %vm3601_vm13, %vm3602_vm12  ;;  %v3679_v6 = vld [vmem:[%s5472_s19 + $0x30] sm:$0xff] }
0x2270   :  { %v3486_v51 = vmul.f32 %v4315_v62, %v3485_v48  ;;  %v3598_v11 = vsub.f32 1.0, %v3597_v9  ;;  %v3677_v9 = vld [vmem:[%s5472_s19 + $0x20] sm:$0xff] }
0x2271   :  { %v3584_v14 = vmul.f32 %v4317_v5, %v3583_v59  ;;  %v3678_v59 = vld [vmem:[%s5472_s19 + $0x28] sm:$0xff] }
0x2272   :  { %v3487_v1 = vadd.f32 %v4315_v62, %v3486_v51  ;;  %v3599_v16 = vmul.f32 %v4319_v13, %v3598_v11  ;;  %v3680_v51 = vld [vmem:[%s5472_s19 + $0x38] sm:$0xff]  ;;  %v3675_v11 = vld [vmem:[%s5472_s19 + $0x10] sm:$0xff] }
0x2273   :  { %v3585_v29 = vadd.f32 %v4317_v5, %v3584_v14  ;;  %v3683_v14 = vpack.c.bf16 %v3676_v12, %v3675_v11 }
0x2274   :  { %v3491_v15 = vsel %vm3490_vm6, %v4315_v62, %v3487_v1  ;;  %v3600_v58 = vadd.f32 %v4319_v13, %v3599_v16  ;;  %v3684_v1 = vpack.c.bf16 %v3678_v59, %v3677_v9 }
0x2275   :  { %v3496_v63 = vsel %vm3493_vm11, %v3495_v27, %v3491_v15  ;;  %v3589_v57 = vsel %vm3588_vm10, %v4317_v5, %v3585_v29  ;;  %v3674_v15 = vld [vmem:[%s5472_s19 + $0x8] sm:$0xff] }
0x2276   :  { %v3594_v33 = vsel %vm3591_vm14, %v3593_v28, %v3589_v57  ;;  %v3604_v38 = vsel %vm3603_vm8, %v4319_v13, %v3600_v58  ;;  %v3507_v39 = vmul.f32 %v3503_v49, %v3496_v63  ;;  %v3682_v16 = vpack.c.bf16 %v3674_v15, %v3673_v55 }
0x2277   :  { %v3609_v18 = vsel %vm3606_vm15, %v3608_v3, %v3604_v38  ;;  %v3619_v43 = vmul.f32 %v3615_v42, %v3594_v33  ;;  %v3977_v38 = vld [vmem:[%s5473_s20] ss:$0 sm:$0xff] }
0x2278   :  { %v3620_v61 = vmul.f32 %v3616_v56, %v3609_v18 }
0x22ab   :  { %v3511_v41 = vpop.permute.xlu2 %3510 }
0x22ac   :  { %v3516_v4 = vmul.f32 %v3511_v41, %v5401_v0 }
0x22ae   :  { %3520 = vrot.lane.b32.xlu0 %v3516_v4, %s4370_s18 }
0x22c4   :  { %v3513_v20 = vpop.permute.xlu0 %3512 }
0x22c5   :  { %v3517_v21 = vmul.f32 %v3513_v20, %v3496_v63 }
0x22c7   :  { %3522 = vrot.lane.b32.xlu1 %v3517_v21, %s4370_s18 }
0x22c8   :  { %v3624_v36 = vpop.permute.xlu1 %3623 }
0x22c9   :  { %v3629_v7 = vmul.f32 %v3624_v36, %v3594_v33 }
0x22cb   :  { %3633 = vrot.lane.b32.xlu2 %v3629_v7, %s4370_s18 }
0x22cc   :  { %v3626_v24 = vpop.permute.xlu0 %3625 }
0x22cd   :  { %v3630_v23 = vmul.f32 %v3626_v24, %v3609_v18 }
0x22cf   :  { %3635 = vrot.lane.b32.xlu1 %v3630_v23, %s4370_s18 }
0x2320   :  { %v3521_v40 = vpop.permute.xlu0 %3520 }
0x2321   :  { %v3526_v32 = vadd.f32 %v3521_v40, %v3506_v31 }
0x2323   :  { %4320 = vtanh.f32 %v3526_v32 }
0x2325   :  { %v3634_v44 = vpop.permute.xlu2 %3633 }
0x2326   :  { %v3639_v46 = vadd.f32 %v3634_v44, %v3619_v43 }
0x2328   :  { %4322 = vtanh.f32 %v3639_v46 }
0x2329   :  { %v4321_v22 = vpop.eup %4320 }
0x232a   :  { %3532 = vrot.lane.b32.xlu1 %v4321_v22, %s5511_s22 }
0x232e   :  { %v4323_v47 = vpop.eup %4322 }
0x232f   :  { %3645 = vrot.lane.b32.xlu0 %v4323_v47, %s5511_s22 }
0x2339   :  { %v3523_v52 = vpop.permute.xlu1 %3522 }
0x233a   :  { %v3527_v8 = vadd.f32 %v3523_v52, %v3507_v39 }
0x233c   :  { %4324 = vtanh.f32 %v3527_v8 }
0x2341   :  { %v3636_v53 = vpop.permute.xlu1 %3635 }
0x2342   :  { %v4325_v10 = vpop.eup %4324  ;;  %v3640_v37 = vadd.f32 %v3636_v53, %v3620_v61 }
0x2343   :  { %3534 = vrot.lane.b32.xlu2 %v4325_v10, %s5511_s22 }
0x2344   :  { %4326 = vtanh.f32 %v3640_v37 }
0x234a   :  { %v4327_v30 = vpop.eup %4326 }
0x234b   :  { %3647 = vrot.lane.b32.xlu2 %v4327_v30, %s5511_s22 }
0x239c   :  { %v3533_v60 = vpop.permute.xlu1 %3532 }
0x239d   :  { %v3535_v35 = vpop.permute.xlu2 %3534  ;;  %v3538_v26 = vmul.f32 %v3533_v60, %v5401_v0  ;;  %v3685_v0 = vpack.c.bf16 %v3680_v51, %v3679_v6 }
0x239e   :  { %v3539_v41 = vmul.f32 %v3535_v35, %v3496_v63 }
0x239f   :  { %3705 = vmatpush.bf16.msrb.mxu3 %v3685_v0 }
0x23a0   :  { %v3655_v45 = vrot.slane %v3539_v41, 7 }
0x23a1   :  { %v3646_v62 = vpop.permute.xlu0 %3645 }
0x23a2   :  { %v3947_v4 = vpack.i.bf16 %v3655_v45, %v3538_v26  ;;  %v3651_v25 = vmul.f32 %v3646_v62, %v3594_v33 }
0x23a3   :  { %3706 = vmatpush.bf16.msrb.mxu3 %v3684_v1 }
0x23a4   :  { %3948 = vrot.lane.b32.xlu0 %v3947_v4, %s4370_s18  ;;  %v3664_v34 = vrot.slane %v3651_v25, 1 }
0x23a5   :  { %v3648_v5 = vpop.permute.xlu2 %3647 }
0x23a6   :  { %v3652_v48 = vmul.f32 %v3648_v5, %v3609_v18 }
0x23a7   :  { %3707 = vmatpush.bf16.msrb.mxu3 %v3683_v14 }
0x23a8   :  { %v3952_v13 = vpack.i.bf16 %v3652_v48, %v3664_v34 }
0x23aa   :  { %3953 = vrot.lane.b32.xlu1 %v3952_v13, %s5511_s22 }
0x23ab   :  { %3708 = vmatpush.bf16.msrb.mxu3 %v3682_v16 }
0x2416   :  { %v3949_v27 = vpop.permute.xlu0 %3948 }
0x2417   :  { %v3951_v19 = vunpack.i.h.bf16 %v3949_v27  ;;  %v3950_v20 = vunpack.i.l.bf16 %v3949_v27 }
0x241c   :  { %v3954_v29 = vpop.permute.xlu1 %3953 }
0x241d   :  { %v3956_v63 = vunpack.i.h.bf16 %v3954_v29  ;;  %v3955_v50 = vunpack.i.l.bf16 %v3954_v29 }
0x241f   :  { %v3672_v21 = vsel %vm74_vm0, %v3951_v19, %v3956_v63  ;;  %v3671_v58 = vsel %vm74_vm0, %v3950_v20, %v3955_v50  ;;  %vm3714_vm0 = vcmask 9216  }
0x2420   :  { %v3681_v57 = vpack.c.bf16 %v3672_v21, %v3671_v58 }
0x2422   :  { %v3691_v17 = vshrl.u32 %v3681_v57, 16  ;;  %v3694_v28 = vshll.u32 %v3681_v57, 16 }
0x2424   :  { %v3693_v54 = vrot.slane %v3691_v17, 3  ;;  %v3696_v33 = vrot.slane %v3694_v28, 4 }
0x2426   :  { %v3697_v36 = vor.u32 %v3696_v33, %v3693_v54 }
0x2428   :  { %3873 = vmatmul.msk.bf16.vlgmr.msrb.gmra.mxu3 %vm887_vm2, %v3697_v36 }
0x24ab   :  { %v3710_v7 = vpop.f32.mrf.mxu3 }
0x24ac   :  { %v3711_v3 = vadd.f32 %v3977_v38, %v3710_v7 }
0x24ae   :  { %3715 = vst.msk [vmem:[#allocation2] sm:$0x3] %vm3714_vm0, %v3711_v3 }
0x24af   :  { %3726 = dma.vmem_to_hbm [thread:$0]  %s3722_s25, 32, %s3724_s2, [#allocation3]  }
0x24b3   :  { %v3712_v18 = vpop.f32.mrf.mxu3 }
0x24b4   :  { %4352 = dma.done.wait [#allocation3], 32  }
0x24b5   :  { %4353 = vsyncadd [#allocation3], 4294967264 }
0x24b6   :  { %3731 = vsyncpa [#allocation3], 1 }

</bundles_post_ra>
